<compile_context>
chip_gen: v7x
topology: tpu7x:2x2x1
jax: 0.10.0
libtpu: 0.0.40
codegen_flags: <defaults>
</compile_context>

<pallas_src>
import functools

import jax
import jax.numpy as jnp
from jax.experimental import pallas as pl
from jax.experimental.pallas import tpu as pltpu


def _round_up(n, m):
    return ((n + m - 1) // m) * m


def _pick_batch_tile(n, cap=8):
    """Largest divisor of n that is <= cap while keeping >= 2 grid steps."""
    best = 1
    for d in range(2, min(n, cap) + 1):
        if n % d == 0 and (n // d) >= 2:
            best = d
    return best


# --------------------------- fused forward kernel ----------------------------

def _resnet_kernel(*refs, H, W, K, B_tile, compute_dtype):
    """Fused ResNet forward for B_tile batch elements, (C, H*W) lane-dense layout.

    refs = (x_ref,
            w_in, b_in, [w1, b1, w2, b2] * n_blocks, w_out, b_out,
            out_ref, patches_ref)

    x_ref       : (B_tile, Cin_p, H*W) f32    input images, channels on sublanes
    w_*         : (Cout_p, K*K*Cin_p)         matmul-ready conv weights (compute dtype)
    b_*         : (Cout_p, 1) f32             biases
    out_ref     : (B_tile, Cout_p, H*W) f32
    patches_ref : (K*K*C_max_p, H*W)          im2col scratch (compute dtype, VMEM)
    """
    x_ref = refs[0]
    wrefs = refs[1:-2]
    out_ref = refs[-2]
    patches_ref = refs[-1]
    n_blocks = (len(wrefs) - 4) // 4

    HW = H * W
    p = (K - 1) // 2

    # Column-wrap masks, built once per distinct channel count at the full
    # operand shape (JAX does not CSE broadcast_in_dim, so no (1,HW) masks).
    mask_cache = {}

    def get_masks(cin):
        if cin not in mask_cache:
            col = jax.lax.broadcasted_iota(jnp.int32, (cin, HW), 1) % W
            m = {}
            for dx in range(-p, p + 1):
                if dx > 0:
                    m[dx] = col >= (W - dx)
                elif dx < 0:
                    m[dx] = col < (-dx)
            mask_cache[cin] = m
        return mask_cache[cin]

    def conv(x, w_ref, b_ref, *, relu, residual=None):
        """x: (Cin, HW) compute_dtype -> (Cout, HW) f32 (bias/residual/relu applied)."""
        cin = x.shape[0]
        kkc = w_ref.shape[1]
        assert kkc == K * K * cin
        masks = get_masks(cin)

        # Lane-roll cache keyed by total shift (np.roll semantics: out[i] = x[i - s]).
        rolls = {}

        def rolled(shift):
            s = shift % HW
            if s == 0:
                return x
            if s not in rolls:
                rolls[s] = pltpu.roll(x, shift=s, axis=1)
            return rolls[s]

        def write_tap(dy, dx):
            # Tap value[c, i] = x[c, wrap(h+dy), wrap(w+dx)] in the flat layout.
            t = (dy + p) * K + (dx + p)          # row order must match _pack_conv
            a = rolled(-(dy * W + dx))           # non-wrapping columns
            if dx == 0:
                tap = a
            else:
                b = rolled(-(dy * W + dx) + (W if dx > 0 else -W))  # wrapping cols
                tap = jnp.where(masks[dx], b, a)
            patches_ref[t * cin:(t + 1) * cin, :] = tap

        # Chain order: the wrap roll of (dy, dx) is the non-wrap roll of
        # (dy -/+ 1, dx), so each tap reuses one cached roll and introduces at
        # most one new one -> fewer XLU rotates AND short live ranges.
        for dy in range(-p, p + 1):              # dx = 0 column (no selects)
            write_tap(dy, 0)
        for dx in range(1, p + 1):                # dx > 0: dy descending
            for dy in range(p, -p - 1, -1):
                write_tap(dy, dx)
        for dx in range(-1, -p - 1, -1):          # dx < 0: dy ascending
            for dy in range(-p, p + 1):
                write_tap(dy, dx)

        y = jnp.dot(w_ref[...], patches_ref[0:kkc, :],
                    preferred_element_type=jnp.float32)
        y = y + b_ref[...]                        # (Cout, 1) lane broadcast
        if residual is not None:
            y = y + residual.astype(jnp.float32)
        if relu:
            y = jnp.maximum(y, 0.0)
        return y

    # Unrolled loop over the images of this grid step (B_tile is small).
    for b in range(B_tile):
        # Cast once, before tap construction; activations stay in compute_dtype
        # between layers.
        h = conv(x_ref[b].astype(compute_dtype), wrefs[0], wrefs[1], relu=True)
        h = h.astype(compute_dtype)

        off = 2
        for _ in range(n_blocks):                 # relu(conv2(relu(conv1(x))) + x)
            w1, b1, w2, b2 = wrefs[off:off + 4]
            off += 4
            res = h
            mid = conv(h, w1, b1, relu=True).astype(compute_dtype)
            h = conv(mid, w2, b2, relu=True, residual=res).astype(compute_dtype)

        y = conv(h, wrefs[off], wrefs[off + 1], relu=False)   # output layer
        out_ref[b] = y.astype(out_ref.dtype)


# ------------------------------ wrapper / glue --------------------------------

def _pack_conv(w_hwio, b, *, cin_pad, cout_pad, dtype):
    """HWIO (K,K,Cin,Cout) + (Cout,) -> ((Cout_p, K*K*Cin_p) dtype, (Cout_p,1) f32)."""
    K, _, Cin, Cout = w_hwio.shape
    w = jnp.pad(w_hwio, ((0, 0), (0, 0), (0, cin_pad - Cin), (0, cout_pad - Cout)))
    bp = jnp.pad(b, (0, cout_pad - Cout))
    # column order = (ky, kx, cin) -- must match the tap row order in the kernel.
    w_mat = jnp.transpose(w, (3, 0, 1, 2)).reshape(cout_pad, K * K * cin_pad)
    return w_mat.astype(dtype), bp.reshape(cout_pad, 1).astype(jnp.float32)


def resnet_forward(params, x_nchw, *, compute_dtype=jnp.bfloat16, batch_tile=None):
    """Matches ResNet.forward (resblock_type='simple', activation='ReLU')."""
    N, Cin, H, W = x_nchw.shape
    HW = H * W
    w_in, b_in = params["input"]
    w_out, b_out = params["output"]
    K = w_in.shape[0]
    CH = w_in.shape[-1]
    Cout = w_out.shape[-1]
    assert K % 2 == 1, "circular 'same' padding implemented for odd kernel_size"
    assert (K - 1) // 2 < min(H, W)

    # Channel sublane multiple: full native tile (16 rows for packed bf16,
    # 8 for f32) so every tap-slab store in the im2col scratch is tile aligned.
    sub = 8 * (4 // jnp.dtype(compute_dtype).itemsize)
    Cin_p = _round_up(Cin, sub)
    CH_p = _round_up(CH, sub)
    Cout_p = _round_up(Cout, sub)
    C_max_p = max(Cin_p, CH_p)

    B_tile = batch_tile if batch_tile is not None else _pick_batch_tile(N)
    assert N % B_tile == 0
    grid_steps = N // B_tile

    # NCHW -> (N, C, H*W) is a plain reshape (already channel-major, lane-dense).
    x = x_nchw.astype(jnp.float32).reshape(N, Cin, HW)
    x = jnp.pad(x, ((0, 0), (0, Cin_p - Cin), (0, 0)))

    packed = []
    packed += _pack_conv(w_in, b_in, cin_pad=Cin_p, cout_pad=CH_p, dtype=compute_dtype)
    for (w1, b1), (w2, b2) in params["blocks"]:
        packed += _pack_conv(w1, b1, cin_pad=CH_p, cout_pad=CH_p, dtype=compute_dtype)
        packed += _pack_conv(w2, b2, cin_pad=CH_p, cout_pad=CH_p, dtype=compute_dtype)
    packed += _pack_conv(w_out, b_out, cin_pad=CH_p, cout_pad=Cout_p, dtype=compute_dtype)

    kernel = functools.partial(_resnet_kernel, H=H, W=W, K=K, B_tile=B_tile,
                               compute_dtype=compute_dtype)

    in_specs = [pl.BlockSpec((B_tile, Cin_p, HW), lambda n: (n, 0, 0))]
    for arr in packed:                                       # weights / biases
        in_specs.append(pl.BlockSpec(arr.shape, lambda n: (0, 0)))  # VMEM-resident

    # Advisory cost estimate (helps XLA scheduling around the fused call).
    n_blocks = len(params["blocks"])
    flops = int(2 * N * HW * K * K
                * (Cin * CH + n_blocks * 2 * CH * CH + CH * Cout))
    bytes_accessed = int(x.size * 4 + N * Cout_p * HW * 4
                         + sum(int(a.size) * a.dtype.itemsize for a in packed))

    out = pl.pallas_call(
        kernel,
        out_shape=jax.ShapeDtypeStruct((N, Cout_p, HW), jnp.float32),
        grid_spec=pltpu.PrefetchScalarGridSpec(
            num_scalar_prefetch=0,
            grid=(grid_steps,),
            in_specs=in_specs,
            out_specs=pl.BlockSpec((B_tile, Cout_p, HW), lambda n: (n, 0, 0)),
            scratch_shapes=[pltpu.VMEM((K * K * C_max_p, HW), compute_dtype)],
        ),
        compiler_params=pltpu.CompilerParams(
            dimension_semantics=("parallel",)),
        cost_estimate=pl.CostEstimate(flops=flops, transcendentals=0,
                                      bytes_accessed=bytes_accessed),
    )(x, *packed)

    return out[:, :Cout, :].reshape(N, Cout, H, W)


# ----------------------------- parameter setup --------------------------------

def _conv_params(key, cin, cout, k):
    """Deterministic init mimicking PyTorch Conv2d default (uniform +-1/sqrt(fan_in))."""
    k1, k2 = jax.random.split(key)
    fan_in = cin * k * k
    bound = 1.0 / (fan_in ** 0.5)
    w = jax.random.uniform(k1, (k, k, cin, cout), jnp.float32, -bound, bound)
    b = jax.random.uniform(k2, (cout,), jnp.float32, -bound, bound)
    return w, b


def init_resnet_params(key, input_size, output_size, *, resblock_layers=1,
                       resblock_channels=64, kernel_size=3):
    keys = jax.random.split(key, 2 + 2 * resblock_layers)
    params = {
        "input": _conv_params(keys[0], input_size, resblock_channels, kernel_size),
        "blocks": [],
        "output": _conv_params(keys[1], resblock_channels, output_size, kernel_size),
    }
    for i in range(resblock_layers):
        c1 = _conv_params(keys[2 + 2 * i], resblock_channels, resblock_channels, kernel_size)
        c2 = _conv_params(keys[3 + 2 * i], resblock_channels, resblock_channels, kernel_size)
        params["blocks"].append((c1, c2))
    return params


# -------------------------- pure-JAX reference --------------------------------

def _ref_conv(x_nchw, w, b, *, relu=False, residual=None):
    K = w.shape[0]
    p = (K - 1) // 2
    xpad = jnp.pad(x_nchw, ((0, 0), (0, 0), (p, p), (p, p)), mode="wrap")
    y = jax.lax.conv_general_dilated(
        xpad, w, (1, 1), "VALID",
        dimension_numbers=("NCHW", "HWIO", "NCHW"))
    y = y + b.reshape(1, -1, 1, 1)
    if residual is not None:
        y = y + residual
    if relu:
        y = jnp.maximum(y, 0.0)
    return y


def resnet_forward_ref(params, x_nchw):
    w, b = params["input"]
    x = _ref_conv(x_nchw, w, b, relu=True)
    for (w1, b1), (w2, b2) in params["blocks"]:
        res = x
        h = _ref_conv(x, w1, b1, relu=True)
        x = _ref_conv(h, w2, b2, relu=True, residual=res)
    w, b = params["output"]
    return _ref_conv(x, w, b, relu=False)


if __name__ == "__main__":
    # batch=2, input channels=4, output channels=3, resblock_channels=32,
    # 16x16 grid, 1 simple resblock, kernel_size=3.
    B, CIN, COUT, CH, S, LAYERS, K = 2, 4, 3, 32, 16, 1, 3

    key = jax.random.PRNGKey(0)
    kx_, kp_ = jax.random.split(key)
    x = jax.random.normal(kx_, (B, CIN, S, S), jnp.float32)   # NCHW input

    params = init_resnet_params(kp_, CIN, COUT,
                                resblock_layers=LAYERS,
                                resblock_channels=CH,
                                kernel_size=K)

    ref = resnet_forward_ref(params, x)

    # Exact-precision path (f32 operands) -- tight tolerance.
    out_f32 = jax.block_until_ready(
        resnet_forward(params, x, compute_dtype=jnp.float32))
    assert out_f32.shape == (B, COUT, S, S), out_f32.shape
    assert jnp.allclose(out_f32, ref, atol=2e-3, rtol=2e-3), \
        float(jnp.max(jnp.abs(out_f32 - ref)))

    # Performance path (bf16 operands/resident activations, f32 accumulation).
    out_bf16 = jax.block_until_ready(
        resnet_forward(params, x, compute_dtype=jnp.bfloat16))
    assert out_bf16.shape == (B, COUT, S, S), out_bf16.shape
    assert jnp.allclose(out_bf16, ref, atol=5e-2, rtol=5e-2), \
        float(jnp.max(jnp.abs(out_bf16 - ref)))

    print("KERNEL_OK")
</pallas_src>

<mosaic_0001>
module attributes {stable_mosaic.version = 11 : i64} {
  func.func @_resnet_kernel(%arg0: i32, %arg1: memref<1x8x256xf32, #tpu.memory_space<vmem>>, %arg2: memref<32x72xf32, #tpu.memory_space<vmem>>, %arg3: memref<32x1xf32, #tpu.memory_space<vmem>>, %arg4: memref<32x288xf32, #tpu.memory_space<vmem>>, %arg5: memref<32x1xf32, #tpu.memory_space<vmem>>, %arg6: memref<32x288xf32, #tpu.memory_space<vmem>>, %arg7: memref<32x1xf32, #tpu.memory_space<vmem>>, %arg8: memref<8x288xf32, #tpu.memory_space<vmem>>, %arg9: memref<8x1xf32, #tpu.memory_space<vmem>>, %arg10: memref<1x8x256xf32, #tpu.memory_space<vmem>>, %arg11: memref<288x256xf32, #tpu.memory_space<vmem>>) attributes {dimension_semantics = [#tpu.dimension_semantics<parallel>], iteration_bounds = array<i64: 2>, scalar_prefetch = 0 : i64, scratch_operands = 1 : i64, tpu.core_type = #tpu.core_type<tc>, window_params = [{transform_indices = @transform_0, window_bounds = array<i64: 1, 8, 256>}, {pipeline_mode = #tpu.pipeline_mode<synchronous>, transform_indices = @transform_1, window_bounds = array<i64: 32, 72>}, {pipeline_mode = #tpu.pipeline_mode<synchronous>, transform_indices = @transform_2, window_bounds = array<i64: 32, 1>}, {pipeline_mode = #tpu.pipeline_mode<synchronous>, transform_indices = @transform_3, window_bounds = array<i64: 32, 288>}, {pipeline_mode = #tpu.pipeline_mode<synchronous>, transform_indices = @transform_4, window_bounds = array<i64: 32, 1>}, {pipeline_mode = #tpu.pipeline_mode<synchronous>, transform_indices = @transform_5, window_bounds = array<i64: 32, 288>}, {pipeline_mode = #tpu.pipeline_mode<synchronous>, transform_indices = @transform_6, window_bounds = array<i64: 32, 1>}, {pipeline_mode = #tpu.pipeline_mode<synchronous>, transform_indices = @transform_7, window_bounds = array<i64: 8, 288>}, {pipeline_mode = #tpu.pipeline_mode<synchronous>, transform_indices = @transform_8, window_bounds = array<i64: 8, 1>}, {transform_indices = @transform_9, window_bounds = array<i64: 1, 8, 256>}]} {
    %c0 = arith.constant 0 : index
    %c0_0 = arith.constant 0 : index
    %c0_1 = arith.constant 0 : index
    %0 = vector.load %arg1[%c0, %c0_0, %c0_1] : memref<1x8x256xf32, #tpu.memory_space<vmem>>, vector<1x8x256xf32>
    %1 = vector.shape_cast %0 : vector<1x8x256xf32> to vector<8x256xf32>
    %2 = tpu.iota {dimensions = array<i32: 1>} : vector<8x256xi32>
    %c16_i32 = arith.constant 16 : i32
    %c0_i32 = arith.constant 0 : i32
    %3 = arith.cmpi eq, %c16_i32, %c0_i32 : i32
    %c1_i32 = arith.constant 1 : i32
    %4 = arith.select %3, %c1_i32, %c16_i32 : i32
    %5 = vector.broadcast %4 : i32 to vector<8x256xi32>
    %6 = arith.remsi %2, %5 : vector<8x256xi32>
    %c0_i32_2 = arith.constant 0 : i32
    %7 = vector.broadcast %c0_i32_2 : i32 to vector<8x256xi32>
    %8 = arith.cmpi ne, %6, %7 : vector<8x256xi32>
    %c0_i32_3 = arith.constant 0 : i32
    %9 = vector.broadcast %c0_i32_3 : i32 to vector<8x256xi32>
    %10 = arith.cmpi slt, %6, %9 : vector<8x256xi32>
    %c0_i32_4 = arith.constant 0 : i32
    %11 = arith.cmpi slt, %4, %c0_i32_4 : i32
    %12 = vector.broadcast %11 : i1 to vector<8x256xi1>
    %13 = vector.broadcast %12 : vector<8x256xi1> to vector<8x256xi1>
    %14 = arith.xori %10, %13 : vector<8x256xi1>
    %15 = arith.andi %14, %8 : vector<8x256xi1>
    %16 = vector.broadcast %4 : i32 to vector<8x256xi32>
    %17 = arith.addi %6, %16 : vector<8x256xi32>
    %18 = arith.select %15, %17, %6 : vector<8x256xi1>, vector<8x256xi32>
    %c1_i32_5 = arith.constant 1 : i32
    %19 = vector.broadcast %c1_i32_5 : i32 to vector<8x256xi32>
    %20 = arith.cmpi slt, %18, %19 : vector<8x256xi32>
    %c15_i32 = arith.constant 15 : i32
    %21 = vector.broadcast %c15_i32 : i32 to vector<8x256xi32>
    %22 = arith.cmpi sge, %18, %21 : vector<8x256xi32>
    %c16_i32_6 = arith.constant 16 : i32
    %23 = tpu.dynamic_rotate %1 by %c16_i32_6 dim 1 : vector<8x256xf32>, i32 -> vector<8x256xf32>
    %c8 = arith.constant 8 : index
    %c0_7 = arith.constant 0 : index
    %24 = vector.load %arg11[%c8, %c0_7] : memref<288x256xf32, #tpu.memory_space<vmem>>, vector<8x256xf32>
    tpu.vector_store %arg11[%c8, %c0_7], %23 {strides = array<i32>} : memref<288x256xf32, #tpu.memory_space<vmem>>, vector<8x256xf32>,
    %c32 = arith.constant 32 : index
    %c0_8 = arith.constant 0 : index
    %25 = vector.load %arg11[%c32, %c0_8] : memref<288x256xf32, #tpu.memory_space<vmem>>, vector<8x256xf32>
    tpu.vector_store %arg11[%c32, %c0_8], %1 {strides = array<i32>} : memref<288x256xf32, #tpu.memory_space<vmem>>, vector<8x256xf32>,
    %c240_i32 = arith.constant 240 : i32
    %26 = tpu.dynamic_rotate %1 by %c240_i32 dim 1 : vector<8x256xf32>, i32 -> vector<8x256xf32>
    %c56 = arith.constant 56 : index
    %c0_9 = arith.constant 0 : index
    %27 = vector.load %arg11[%c56, %c0_9] : memref<288x256xf32, #tpu.memory_space<vmem>>, vector<8x256xf32>
    tpu.vector_store %arg11[%c56, %c0_9], %26 {strides = array<i32>} : memref<288x256xf32, #tpu.memory_space<vmem>>, vector<8x256xf32>,
    %c239_i32 = arith.constant 239 : i32
    %28 = tpu.dynamic_rotate %1 by %c239_i32 dim 1 : vector<8x256xf32>, i32 -> vector<8x256xf32>
    %c255_i32 = arith.constant 255 : i32
    %29 = tpu.dynamic_rotate %1 by %c255_i32 dim 1 : vector<8x256xf32>, i32 -> vector<8x256xf32>
    %30 = arith.select %22, %29, %28 : vector<8x256xi1>, vector<8x256xf32>
    %c64 = arith.constant 64 : index
    %c0_10 = arith.constant 0 : index
    %31 = vector.load %arg11[%c64, %c0_10] : memref<288x256xf32, #tpu.memory_space<vmem>>, vector<8x256xf32>
    tpu.vector_store %arg11[%c64, %c0_10], %30 {strides = array<i32>} : memref<288x256xf32, #tpu.memory_space<vmem>>, vector<8x256xf32>,
    %c15_i32_11 = arith.constant 15 : i32
    %32 = tpu.dynamic_rotate %1 by %c15_i32_11 dim 1 : vector<8x256xf32>, i32 -> vector<8x256xf32>
    %33 = arith.select %22, %32, %29 : vector<8x256xi1>, vector<8x256xf32>
    %c40 = arith.constant 40 : index
    %c0_12 = arith.constant 0 : index
    %34 = vector.load %arg11[%c40, %c0_12] : memref<288x256xf32, #tpu.memory_space<vmem>>, vector<8x256xf32>
    tpu.vector_store %arg11[%c40, %c0_12], %33 {strides = array<i32>} : memref<288x256xf32, #tpu.memory_space<vmem>>, vector<8x256xf32>,
    %c31_i32 = arith.constant 31 : i32
    %35 = tpu.dynamic_rotate %1 by %c31_i32 dim 1 : vector<8x256xf32>, i32 -> vector<8x256xf32>
    %36 = arith.select %22, %35, %32 : vector<8x256xi1>, vector<8x256xf32>
    %c16 = arith.constant 16 : index
    %c0_13 = arith.constant 0 : index
    %37 = vector.load %arg11[%c16, %c0_13] : memref<288x256xf32, #tpu.memory_space<vmem>>, vector<8x256xf32>
    tpu.vector_store %arg11[%c16, %c0_13], %36 {strides = array<i32>} : memref<288x256xf32, #tpu.memory_space<vmem>>, vector<8x256xf32>,
    %c17_i32 = arith.constant 17 : i32
    %38 = tpu.dynamic_rotate %1 by %c17_i32 dim 1 : vector<8x256xf32>, i32 -> vector<8x256xf32>
    %c1_i32_14 = arith.constant 1 : i32
    %39 = tpu.dynamic_rotate %1 by %c1_i32_14 dim 1 : vector<8x256xf32>, i32 -> vector<8x256xf32>
    %40 = arith.select %20, %39, %38 : vector<8x256xi1>, vector<8x256xf32>
    %c0_15 = arith.constant 0 : index
    %c0_16 = arith.constant 0 : index
    %41 = vector.load %arg11[%c0_15, %c0_16] : memref<288x256xf32, #tpu.memory_space<vmem>>, vector<8x256xf32>
    tpu.vector_store %arg11[%c0_15, %c0_16], %40 {strides = array<i32>} : memref<288x256xf32, #tpu.memory_space<vmem>>, vector<8x256xf32>,
    %c241_i32 = arith.constant 241 : i32
    %42 = tpu.dynamic_rotate %1 by %c241_i32 dim 1 : vector<8x256xf32>, i32 -> vector<8x256xf32>
    %43 = arith.select %20, %42, %39 : vector<8x256xi1>, vector<8x256xf32>
    %c24 = arith.constant 24 : index
    %c0_17 = arith.constant 0 : index
    %44 = vector.load %arg11[%c24, %c0_17] : memref<288x256xf32, #tpu.memory_space<vmem>>, vector<8x256xf32>
    tpu.vector_store %arg11[%c24, %c0_17], %43 {strides = array<i32>} : memref<288x256xf32, #tpu.memory_space<vmem>>, vector<8x256xf32>,
    %c225_i32 = arith.constant 225 : i32
    %45 = tpu.dynamic_rotate %1 by %c225_i32 dim 1 : vector<8x256xf32>, i32 -> vector<8x256xf32>
    %46 = arith.select %20, %45, %42 : vector<8x256xi1>, vector<8x256xf32>
    %c48 = arith.constant 48 : index
    %c0_18 = arith.constant 0 : index
    %47 = vector.load %arg11[%c48, %c0_18] : memref<288x256xf32, #tpu.memory_space<vmem>>, vector<8x256xf32>
    tpu.vector_store %arg11[%c48, %c0_18], %46 {strides = array<i32>} : memref<288x256xf32, #tpu.memory_space<vmem>>, vector<8x256xf32>,
    %c0_19 = arith.constant 0 : index
    %c0_20 = arith.constant 0 : index
    %48 = vector.load %arg2[%c0_19, %c0_20] : memref<32x72xf32, #tpu.memory_space<vmem>>, vector<32x72xf32>
    %c0_21 = arith.constant 0 : index
    %c0_22 = arith.constant 0 : index
    %49 = vector.load %arg11[%c0_21, %c0_22] : memref<288x256xf32, #tpu.memory_space<vmem>>, vector<72x256xf32>
    %cst = arith.constant dense<0.000000e+00> : vector<32x256xf32>
    %50 = tpu.matmul %48, %49, %cst {dimension_numbers = #tpu.dot_dimension_numbers<[1], [0], [0], [1], [0, 0, 1, 1], [], []>} : vector<32x72xf32>, vector<72x256xf32>, vector<32x256xf32> -> vector<32x256xf32>
    %c0_23 = arith.constant 0 : index
    %c0_24 = arith.constant 0 : index
    %51 = vector.load %arg3[%c0_23, %c0_24] : memref<32x1xf32, #tpu.memory_space<vmem>>, vector<32x1xf32>
    %52 = vector.broadcast %51 : vector<32x1xf32> to vector<32x256xf32>
    %53 = arith.addf %50, %52 : vector<32x256xf32>
    %cst_25 = arith.constant 0.000000e+00 : f32
    %54 = vector.broadcast %cst_25 : f32 to vector<32x256xf32>
    %55 = arith.maximumf %53, %54 : vector<32x256xf32>
    %56 = tpu.iota {dimensions = array<i32: 1>} : vector<32x256xi32>
    %c16_i32_26 = arith.constant 16 : i32
    %c0_i32_27 = arith.constant 0 : i32
    %57 = arith.cmpi eq, %c16_i32_26, %c0_i32_27 : i32
    %c1_i32_28 = arith.constant 1 : i32
    %58 = arith.select %57, %c1_i32_28, %c16_i32_26 : i32
    %59 = vector.broadcast %58 : i32 to vector<32x256xi32>
    %60 = arith.remsi %56, %59 : vector<32x256xi32>
    %c0_i32_29 = arith.constant 0 : i32
    %61 = vector.broadcast %c0_i32_29 : i32 to vector<32x256xi32>
    %62 = arith.cmpi ne, %60, %61 : vector<32x256xi32>
    %c0_i32_30 = arith.constant 0 : i32
    %63 = vector.broadcast %c0_i32_30 : i32 to vector<32x256xi32>
    %64 = arith.cmpi slt, %60, %63 : vector<32x256xi32>
    %c0_i32_31 = arith.constant 0 : i32
    %65 = arith.cmpi slt, %58, %c0_i32_31 : i32
    %66 = vector.broadcast %65 : i1 to vector<32x256xi1>
    %67 = vector.broadcast %66 : vector<32x256xi1> to vector<32x256xi1>
    %68 = arith.xori %64, %67 : vector<32x256xi1>
    %69 = arith.andi %68, %62 : vector<32x256xi1>
    %70 = vector.broadcast %58 : i32 to vector<32x256xi32>
    %71 = arith.addi %60, %70 : vector<32x256xi32>
    %72 = arith.select %69, %71, %60 : vector<32x256xi1>, vector<32x256xi32>
    %c1_i32_32 = arith.constant 1 : i32
    %73 = vector.broadcast %c1_i32_32 : i32 to vector<32x256xi32>
    %74 = arith.cmpi slt, %72, %73 : vector<32x256xi32>
    %c15_i32_33 = arith.constant 15 : i32
    %75 = vector.broadcast %c15_i32_33 : i32 to vector<32x256xi32>
    %76 = arith.cmpi sge, %72, %75 : vector<32x256xi32>
    %c16_i32_34 = arith.constant 16 : i32
    %77 = tpu.dynamic_rotate %55 by %c16_i32_34 dim 1 : vector<32x256xf32>, i32 -> vector<32x256xf32>
    %c32_35 = arith.constant 32 : index
    %c0_36 = arith.constant 0 : index
    %78 = vector.load %arg11[%c32_35, %c0_36] : memref<288x256xf32, #tpu.memory_space<vmem>>, vector<32x256xf32>
    tpu.vector_store %arg11[%c32_35, %c0_36], %77 {strides = array<i32>} : memref<288x256xf32, #tpu.memory_space<vmem>>, vector<32x256xf32>,
    %c128 = arith.constant 128 : index
    %c0_37 = arith.constant 0 : index
    %79 = vector.load %arg11[%c128, %c0_37] : memref<288x256xf32, #tpu.memory_space<vmem>>, vector<32x256xf32>
    tpu.vector_store %arg11[%c128, %c0_37], %55 {strides = array<i32>} : memref<288x256xf32, #tpu.memory_space<vmem>>, vector<32x256xf32>,
    %c240_i32_38 = arith.constant 240 : i32
    %80 = tpu.dynamic_rotate %55 by %c240_i32_38 dim 1 : vector<32x256xf32>, i32 -> vector<32x256xf32>
    %c224 = arith.constant 224 : index
    %c0_39 = arith.constant 0 : index
    %81 = vector.load %arg11[%c224, %c0_39] : memref<288x256xf32, #tpu.memory_space<vmem>>, vector<32x256xf32>
    tpu.vector_store %arg11[%c224, %c0_39], %80 {strides = array<i32>} : memref<288x256xf32, #tpu.memory_space<vmem>>, vector<32x256xf32>,
    %c239_i32_40 = arith.constant 239 : i32
    %82 = tpu.dynamic_rotate %55 by %c239_i32_40 dim 1 : vector<32x256xf32>, i32 -> vector<32x256xf32>
    %c255_i32_41 = arith.constant 255 : i32
    %83 = tpu.dynamic_rotate %55 by %c255_i32_41 dim 1 : vector<32x256xf32>, i32 -> vector<32x256xf32>
    %84 = arith.select %76, %83, %82 : vector<32x256xi1>, vector<32x256xf32>
    %c256 = arith.constant 256 : index
    %c0_42 = arith.constant 0 : index
    %85 = vector.load %arg11[%c256, %c0_42] : memref<288x256xf32, #tpu.memory_space<vmem>>, vector<32x256xf32>
    tpu.vector_store %arg11[%c256, %c0_42], %84 {strides = array<i32>} : memref<288x256xf32, #tpu.memory_space<vmem>>, vector<32x256xf32>,
    %c15_i32_43 = arith.constant 15 : i32
    %86 = tpu.dynamic_rotate %55 by %c15_i32_43 dim 1 : vector<32x256xf32>, i32 -> vector<32x256xf32>
    %87 = arith.select %76, %86, %83 : vector<32x256xi1>, vector<32x256xf32>
    %c160 = arith.constant 160 : index
    %c0_44 = arith.constant 0 : index
    %88 = vector.load %arg11[%c160, %c0_44] : memref<288x256xf32, #tpu.memory_space<vmem>>, vector<32x256xf32>
    tpu.vector_store %arg11[%c160, %c0_44], %87 {strides = array<i32>} : memref<288x256xf32, #tpu.memory_space<vmem>>, vector<32x256xf32>,
    %c31_i32_45 = arith.constant 31 : i32
    %89 = tpu.dynamic_rotate %55 by %c31_i32_45 dim 1 : vector<32x256xf32>, i32 -> vector<32x256xf32>
    %90 = arith.select %76, %89, %86 : vector<32x256xi1>, vector<32x256xf32>
    %c64_46 = arith.constant 64 : index
    %c0_47 = arith.constant 0 : index
    %91 = vector.load %arg11[%c64_46, %c0_47] : memref<288x256xf32, #tpu.memory_space<vmem>>, vector<32x256xf32>
    tpu.vector_store %arg11[%c64_46, %c0_47], %90 {strides = array<i32>} : memref<288x256xf32, #tpu.memory_space<vmem>>, vector<32x256xf32>,
    %c17_i32_48 = arith.constant 17 : i32
    %92 = tpu.dynamic_rotate %55 by %c17_i32_48 dim 1 : vector<32x256xf32>, i32 -> vector<32x256xf32>
    %c1_i32_49 = arith.constant 1 : i32
    %93 = tpu.dynamic_rotate %55 by %c1_i32_49 dim 1 : vector<32x256xf32>, i32 -> vector<32x256xf32>
    %94 = arith.select %74, %93, %92 : vector<32x256xi1>, vector<32x256xf32>
    %c0_50 = arith.constant 0 : index
    %c0_51 = arith.constant 0 : index
    %95 = vector.load %arg11[%c0_50, %c0_51] : memref<288x256xf32, #tpu.memory_space<vmem>>, vector<32x256xf32>
    tpu.vector_store %arg11[%c0_50, %c0_51], %94 {strides = array<i32>} : memref<288x256xf32, #tpu.memory_space<vmem>>, vector<32x256xf32>,
    %c241_i32_52 = arith.constant 241 : i32
    %96 = tpu.dynamic_rotate %55 by %c241_i32_52 dim 1 : vector<32x256xf32>, i32 -> vector<32x256xf32>
    %97 = arith.select %74, %96, %93 : vector<32x256xi1>, vector<32x256xf32>
    %c96 = arith.constant 96 : index
    %c0_53 = arith.constant 0 : index
    %98 = vector.load %arg11[%c96, %c0_53] : memref<288x256xf32, #tpu.memory_space<vmem>>, vector<32x256xf32>
    tpu.vector_store %arg11[%c96, %c0_53], %97 {strides = array<i32>} : memref<288x256xf32, #tpu.memory_space<vmem>>, vector<32x256xf32>,
    %c225_i32_54 = arith.constant 225 : i32
    %99 = tpu.dynamic_rotate %55 by %c225_i32_54 dim 1 : vector<32x256xf32>, i32 -> vector<32x256xf32>
    %100 = arith.select %74, %99, %96 : vector<32x256xi1>, vector<32x256xf32>
    %c192 = arith.constant 192 : index
    %c0_55 = arith.constant 0 : index
    %101 = vector.load %arg11[%c192, %c0_55] : memref<288x256xf32, #tpu.memory_space<vmem>>, vector<32x256xf32>
    tpu.vector_store %arg11[%c192, %c0_55], %100 {strides = array<i32>} : memref<288x256xf32, #tpu.memory_space<vmem>>, vector<32x256xf32>,
    %c0_56 = arith.constant 0 : index
    %c0_57 = arith.constant 0 : index
    %102 = vector.load %arg4[%c0_56, %c0_57] : memref<32x288xf32, #tpu.memory_space<vmem>>, vector<32x288xf32>
    %c0_58 = arith.constant 0 : index
    %c0_59 = arith.constant 0 : index
    %103 = vector.load %arg11[%c0_58, %c0_59] : memref<288x256xf32, #tpu.memory_space<vmem>>, vector<288x256xf32>
    %cst_60 = arith.constant dense<0.000000e+00> : vector<32x256xf32>
    %104 = tpu.matmul %102, %103, %cst_60 {dimension_numbers = #tpu.dot_dimension_numbers<[1], [0], [0], [1], [0, 0, 1, 1], [], []>} : vector<32x288xf32>, vector<288x256xf32>, vector<32x256xf32> -> vector<32x256xf32>
    %c0_61 = arith.constant 0 : index
    %c0_62 = arith.constant 0 : index
    %105 = vector.load %arg5[%c0_61, %c0_62] : memref<32x1xf32, #tpu.memory_space<vmem>>, vector<32x1xf32>
    %106 = vector.broadcast %105 : vector<32x1xf32> to vector<32x256xf32>
    %107 = arith.addf %104, %106 : vector<32x256xf32>
    %cst_63 = arith.constant 0.000000e+00 : f32
    %108 = vector.broadcast %cst_63 : f32 to vector<32x256xf32>
    %109 = arith.maximumf %107, %108 : vector<32x256xf32>
    %c16_i32_64 = arith.constant 16 : i32
    %110 = tpu.dynamic_rotate %109 by %c16_i32_64 dim 1 : vector<32x256xf32>, i32 -> vector<32x256xf32>
    %c32_65 = arith.constant 32 : index
    %c0_66 = arith.constant 0 : index
    %111 = vector.load %arg11[%c32_65, %c0_66] : memref<288x256xf32, #tpu.memory_space<vmem>>, vector<32x256xf32>
    tpu.vector_store %arg11[%c32_65, %c0_66], %110 {strides = array<i32>} : memref<288x256xf32, #tpu.memory_space<vmem>>, vector<32x256xf32>,
    %c128_67 = arith.constant 128 : index
    %c0_68 = arith.constant 0 : index
    %112 = vector.load %arg11[%c128_67, %c0_68] : memref<288x256xf32, #tpu.memory_space<vmem>>, vector<32x256xf32>
    tpu.vector_store %arg11[%c128_67, %c0_68], %109 {strides = array<i32>} : memref<288x256xf32, #tpu.memory_space<vmem>>, vector<32x256xf32>,
    %c240_i32_69 = arith.constant 240 : i32
    %113 = tpu.dynamic_rotate %109 by %c240_i32_69 dim 1 : vector<32x256xf32>, i32 -> vector<32x256xf32>
    %c224_70 = arith.constant 224 : index
    %c0_71 = arith.constant 0 : index
    %114 = vector.load %arg11[%c224_70, %c0_71] : memref<288x256xf32, #tpu.memory_space<vmem>>, vector<32x256xf32>
    tpu.vector_store %arg11[%c224_70, %c0_71], %113 {strides = array<i32>} : memref<288x256xf32, #tpu.memory_space<vmem>>, vector<32x256xf32>,
    %c239_i32_72 = arith.constant 239 : i32
    %115 = tpu.dynamic_rotate %109 by %c239_i32_72 dim 1 : vector<32x256xf32>, i32 -> vector<32x256xf32>
    %c255_i32_73 = arith.constant 255 : i32
    %116 = tpu.dynamic_rotate %109 by %c255_i32_73 dim 1 : vector<32x256xf32>, i32 -> vector<32x256xf32>
    %117 = arith.select %76, %116, %115 : vector<32x256xi1>, vector<32x256xf32>
    %c256_74 = arith.constant 256 : index
    %c0_75 = arith.constant 0 : index
    %118 = vector.load %arg11[%c256_74, %c0_75] : memref<288x256xf32, #tpu.memory_space<vmem>>, vector<32x256xf32>
    tpu.vector_store %arg11[%c256_74, %c0_75], %117 {strides = array<i32>} : memref<288x256xf32, #tpu.memory_space<vmem>>, vector<32x256xf32>,
    %c15_i32_76 = arith.constant 15 : i32
    %119 = tpu.dynamic_rotate %109 by %c15_i32_76 dim 1 : vector<32x256xf32>, i32 -> vector<32x256xf32>
    %120 = arith.select %76, %119, %116 : vector<32x256xi1>, vector<32x256xf32>
    %c160_77 = arith.constant 160 : index
    %c0_78 = arith.constant 0 : index
    %121 = vector.load %arg11[%c160_77, %c0_78] : memref<288x256xf32, #tpu.memory_space<vmem>>, vector<32x256xf32>
    tpu.vector_store %arg11[%c160_77, %c0_78], %120 {strides = array<i32>} : memref<288x256xf32, #tpu.memory_space<vmem>>, vector<32x256xf32>,
    %c31_i32_79 = arith.constant 31 : i32
    %122 = tpu.dynamic_rotate %109 by %c31_i32_79 dim 1 : vector<32x256xf32>, i32 -> vector<32x256xf32>
    %123 = arith.select %76, %122, %119 : vector<32x256xi1>, vector<32x256xf32>
    %c64_80 = arith.constant 64 : index
    %c0_81 = arith.constant 0 : index
    %124 = vector.load %arg11[%c64_80, %c0_81] : memref<288x256xf32, #tpu.memory_space<vmem>>, vector<32x256xf32>
    tpu.vector_store %arg11[%c64_80, %c0_81], %123 {strides = array<i32>} : memref<288x256xf32, #tpu.memory_space<vmem>>, vector<32x256xf32>,
    %c17_i32_82 = arith.constant 17 : i32
    %125 = tpu.dynamic_rotate %109 by %c17_i32_82 dim 1 : vector<32x256xf32>, i32 -> vector<32x256xf32>
    %c1_i32_83 = arith.constant 1 : i32
    %126 = tpu.dynamic_rotate %109 by %c1_i32_83 dim 1 : vector<32x256xf32>, i32 -> vector<32x256xf32>
    %127 = arith.select %74, %126, %125 : vector<32x256xi1>, vector<32x256xf32>
    %c0_84 = arith.constant 0 : index
    %c0_85 = arith.constant 0 : index
    %128 = vector.load %arg11[%c0_84, %c0_85] : memref<288x256xf32, #tpu.memory_space<vmem>>, vector<32x256xf32>
    tpu.vector_store %arg11[%c0_84, %c0_85], %127 {strides = array<i32>} : memref<288x256xf32, #tpu.memory_space<vmem>>, vector<32x256xf32>,
    %c241_i32_86 = arith.constant 241 : i32
    %129 = tpu.dynamic_rotate %109 by %c241_i32_86 dim 1 : vector<32x256xf32>, i32 -> vector<32x256xf32>
    %130 = arith.select %74, %129, %126 : vector<32x256xi1>, vector<32x256xf32>
    %c96_87 = arith.constant 96 : index
    %c0_88 = arith.constant 0 : index
    %131 = vector.load %arg11[%c96_87, %c0_88] : memref<288x256xf32, #tpu.memory_space<vmem>>, vector<32x256xf32>
    tpu.vector_store %arg11[%c96_87, %c0_88], %130 {strides = array<i32>} : memref<288x256xf32, #tpu.memory_space<vmem>>, vector<32x256xf32>,
    %c225_i32_89 = arith.constant 225 : i32
    %132 = tpu.dynamic_rotate %109 by %c225_i32_89 dim 1 : vector<32x256xf32>, i32 -> vector<32x256xf32>
    %133 = arith.select %74, %132, %129 : vector<32x256xi1>, vector<32x256xf32>
    %c192_90 = arith.constant 192 : index
    %c0_91 = arith.constant 0 : index
    %134 = vector.load %arg11[%c192_90, %c0_91] : memref<288x256xf32, #tpu.memory_space<vmem>>, vector<32x256xf32>
    tpu.vector_store %arg11[%c192_90, %c0_91], %133 {strides = array<i32>} : memref<288x256xf32, #tpu.memory_space<vmem>>, vector<32x256xf32>,
    %c0_92 = arith.constant 0 : index
    %c0_93 = arith.constant 0 : index
    %135 = vector.load %arg6[%c0_92, %c0_93] : memref<32x288xf32, #tpu.memory_space<vmem>>, vector<32x288xf32>
    %c0_94 = arith.constant 0 : index
    %c0_95 = arith.constant 0 : index
    %136 = vector.load %arg11[%c0_94, %c0_95] : memref<288x256xf32, #tpu.memory_space<vmem>>, vector<288x256xf32>
    %cst_96 = arith.constant dense<0.000000e+00> : vector<32x256xf32>
    %137 = tpu.matmul %135, %136, %cst_96 {dimension_numbers = #tpu.dot_dimension_numbers<[1], [0], [0], [1], [0, 0, 1, 1], [], []>} : vector<32x288xf32>, vector<288x256xf32>, vector<32x256xf32> -> vector<32x256xf32>
    %c0_97 = arith.constant 0 : index
    %c0_98 = arith.constant 0 : index
    %138 = vector.load %arg7[%c0_97, %c0_98] : memref<32x1xf32, #tpu.memory_space<vmem>>, vector<32x1xf32>
    %139 = vector.broadcast %138 : vector<32x1xf32> to vector<32x256xf32>
    %140 = arith.addf %137, %139 : vector<32x256xf32>
    %141 = arith.addf %140, %55 : vector<32x256xf32>
    %cst_99 = arith.constant 0.000000e+00 : f32
    %142 = vector.broadcast %cst_99 : f32 to vector<32x256xf32>
    %143 = arith.maximumf %141, %142 : vector<32x256xf32>
    %c16_i32_100 = arith.constant 16 : i32
    %144 = tpu.dynamic_rotate %143 by %c16_i32_100 dim 1 : vector<32x256xf32>, i32 -> vector<32x256xf32>
    %c32_101 = arith.constant 32 : index
    %c0_102 = arith.constant 0 : index
    %145 = vector.load %arg11[%c32_101, %c0_102] : memref<288x256xf32, #tpu.memory_space<vmem>>, vector<32x256xf32>
    tpu.vector_store %arg11[%c32_101, %c0_102], %144 {strides = array<i32>} : memref<288x256xf32, #tpu.memory_space<vmem>>, vector<32x256xf32>,
    %c128_103 = arith.constant 128 : index
    %c0_104 = arith.constant 0 : index
    %146 = vector.load %arg11[%c128_103, %c0_104] : memref<288x256xf32, #tpu.memory_space<vmem>>, vector<32x256xf32>
    tpu.vector_store %arg11[%c128_103, %c0_104], %143 {strides = array<i32>} : memref<288x256xf32, #tpu.memory_space<vmem>>, vector<32x256xf32>,
    %c240_i32_105 = arith.constant 240 : i32
    %147 = tpu.dynamic_rotate %143 by %c240_i32_105 dim 1 : vector<32x256xf32>, i32 -> vector<32x256xf32>
    %c224_106 = arith.constant 224 : index
    %c0_107 = arith.constant 0 : index
    %148 = vector.load %arg11[%c224_106, %c0_107] : memref<288x256xf32, #tpu.memory_space<vmem>>, vector<32x256xf32>
    tpu.vector_store %arg11[%c224_106, %c0_107], %147 {strides = array<i32>} : memref<288x256xf32, #tpu.memory_space<vmem>>, vector<32x256xf32>,
    %c239_i32_108 = arith.constant 239 : i32
    %149 = tpu.dynamic_rotate %143 by %c239_i32_108 dim 1 : vector<32x256xf32>, i32 -> vector<32x256xf32>
    %c255_i32_109 = arith.constant 255 : i32
    %150 = tpu.dynamic_rotate %143 by %c255_i32_109 dim 1 : vector<32x256xf32>, i32 -> vector<32x256xf32>
    %151 = arith.select %76, %150, %149 : vector<32x256xi1>, vector<32x256xf32>
    %c256_110 = arith.constant 256 : index
    %c0_111 = arith.constant 0 : index
    %152 = vector.load %arg11[%c256_110, %c0_111] : memref<288x256xf32, #tpu.memory_space<vmem>>, vector<32x256xf32>
    tpu.vector_store %arg11[%c256_110, %c0_111], %151 {strides = array<i32>} : memref<288x256xf32, #tpu.memory_space<vmem>>, vector<32x256xf32>,
    %c15_i32_112 = arith.constant 15 : i32
    %153 = tpu.dynamic_rotate %143 by %c15_i32_112 dim 1 : vector<32x256xf32>, i32 -> vector<32x256xf32>
    %154 = arith.select %76, %153, %150 : vector<32x256xi1>, vector<32x256xf32>
    %c160_113 = arith.constant 160 : index
    %c0_114 = arith.constant 0 : index
    %155 = vector.load %arg11[%c160_113, %c0_114] : memref<288x256xf32, #tpu.memory_space<vmem>>, vector<32x256xf32>
    tpu.vector_store %arg11[%c160_113, %c0_114], %154 {strides = array<i32>} : memref<288x256xf32, #tpu.memory_space<vmem>>, vector<32x256xf32>,
    %c31_i32_115 = arith.constant 31 : i32
    %156 = tpu.dynamic_rotate %143 by %c31_i32_115 dim 1 : vector<32x256xf32>, i32 -> vector<32x256xf32>
    %157 = arith.select %76, %156, %153 : vector<32x256xi1>, vector<32x256xf32>
    %c64_116 = arith.constant 64 : index
    %c0_117 = arith.constant 0 : index
    %158 = vector.load %arg11[%c64_116, %c0_117] : memref<288x256xf32, #tpu.memory_space<vmem>>, vector<32x256xf32>
    tpu.vector_store %arg11[%c64_116, %c0_117], %157 {strides = array<i32>} : memref<288x256xf32, #tpu.memory_space<vmem>>, vector<32x256xf32>,
    %c17_i32_118 = arith.constant 17 : i32
    %159 = tpu.dynamic_rotate %143 by %c17_i32_118 dim 1 : vector<32x256xf32>, i32 -> vector<32x256xf32>
    %c1_i32_119 = arith.constant 1 : i32
    %160 = tpu.dynamic_rotate %143 by %c1_i32_119 dim 1 : vector<32x256xf32>, i32 -> vector<32x256xf32>
    %161 = arith.select %74, %160, %159 : vector<32x256xi1>, vector<32x256xf32>
    %c0_120 = arith.constant 0 : index
    %c0_121 = arith.constant 0 : index
    %162 = vector.load %arg11[%c0_120, %c0_121] : memref<288x256xf32, #tpu.memory_space<vmem>>, vector<32x256xf32>
    tpu.vector_store %arg11[%c0_120, %c0_121], %161 {strides = array<i32>} : memref<288x256xf32, #tpu.memory_space<vmem>>, vector<32x256xf32>,
    %c241_i32_122 = arith.constant 241 : i32
    %163 = tpu.dynamic_rotate %143 by %c241_i32_122 dim 1 : vector<32x256xf32>, i32 -> vector<32x256xf32>
    %164 = arith.select %74, %163, %160 : vector<32x256xi1>, vector<32x256xf32>
    %c96_123 = arith.constant 96 : index
    %c0_124 = arith.constant 0 : index
    %165 = vector.load %arg11[%c96_123, %c0_124] : memref<288x256xf32, #tpu.memory_space<vmem>>, vector<32x256xf32>
    tpu.vector_store %arg11[%c96_123, %c0_124], %164 {strides = array<i32>} : memref<288x256xf32, #tpu.memory_space<vmem>>, vector<32x256xf32>,
    %c225_i32_125 = arith.constant 225 : i32
    %166 = tpu.dynamic_rotate %143 by %c225_i32_125 dim 1 : vector<32x256xf32>, i32 -> vector<32x256xf32>
    %167 = arith.select %74, %166, %163 : vector<32x256xi1>, vector<32x256xf32>
    %c192_126 = arith.constant 192 : index
    %c0_127 = arith.constant 0 : index
    %168 = vector.load %arg11[%c192_126, %c0_127] : memref<288x256xf32, #tpu.memory_space<vmem>>, vector<32x256xf32>
    tpu.vector_store %arg11[%c192_126, %c0_127], %167 {strides = array<i32>} : memref<288x256xf32, #tpu.memory_space<vmem>>, vector<32x256xf32>,
    %c0_128 = arith.constant 0 : index
    %c0_129 = arith.constant 0 : index
    %169 = vector.load %arg8[%c0_128, %c0_129] : memref<8x288xf32, #tpu.memory_space<vmem>>, vector<8x288xf32>
    %c0_130 = arith.constant 0 : index
    %c0_131 = arith.constant 0 : index
    %170 = vector.load %arg11[%c0_130, %c0_131] : memref<288x256xf32, #tpu.memory_space<vmem>>, vector<288x256xf32>
    %cst_132 = arith.constant dense<0.000000e+00> : vector<8x256xf32>
    %171 = tpu.matmul %169, %170, %cst_132 {dimension_numbers = #tpu.dot_dimension_numbers<[1], [0], [0], [1], [0, 0, 1, 1], [], []>} : vector<8x288xf32>, vector<288x256xf32>, vector<8x256xf32> -> vector<8x256xf32>
    %c0_133 = arith.constant 0 : index
    %c0_134 = arith.constant 0 : index
    %172 = vector.load %arg9[%c0_133, %c0_134] : memref<8x1xf32, #tpu.memory_space<vmem>>, vector<8x1xf32>
    %173 = vector.broadcast %172 : vector<8x1xf32> to vector<8x256xf32>
    %174 = arith.addf %171, %173 : vector<8x256xf32>
    %c0_135 = arith.constant 0 : index
    %c0_136 = arith.constant 0 : index
    %c0_137 = arith.constant 0 : index
    %175 = vector.load %arg10[%c0_135, %c0_136, %c0_137] : memref<1x8x256xf32, #tpu.memory_space<vmem>>, vector<1x8x256xf32>
    %176 = vector.shape_cast %175 : vector<1x8x256xf32> to vector<8x256xf32>
    %177 = vector.shape_cast %174 : vector<8x256xf32> to vector<1x8x256xf32>
    tpu.vector_store %arg10[%c0_135, %c0_136, %c0_137], %177 {strides = array<i32>} : memref<1x8x256xf32, #tpu.memory_space<vmem>>, vector<1x8x256xf32>,
    return
  }
  func.func @transform_0(%arg0: i32) -> (i32, i32, i32) {
    %c0_i32 = arith.constant 0 : i32
    %c0_i32_0 = arith.constant 0 : i32
    %c0_i32_1 = arith.constant 0 : i32
    return %arg0, %c0_i32, %c0_i32_0 : i32, i32, i32
  }
  func.func @transform_1(%arg0: i32) -> (i32, i32) {
    %c0_i32 = arith.constant 0 : i32
    %c0_i32_0 = arith.constant 0 : i32
    %c0_i32_1 = arith.constant 0 : i32
    return %c0_i32, %c0_i32_0 : i32, i32
  }
  func.func @transform_2(%arg0: i32) -> (i32, i32) {
    %c0_i32 = arith.constant 0 : i32
    %c0_i32_0 = arith.constant 0 : i32
    %c0_i32_1 = arith.constant 0 : i32
    return %c0_i32, %c0_i32_0 : i32, i32
  }
  func.func @transform_3(%arg0: i32) -> (i32, i32) {
    %c0_i32 = arith.constant 0 : i32
    %c0_i32_0 = arith.constant 0 : i32
    %c0_i32_1 = arith.constant 0 : i32
    return %c0_i32, %c0_i32_0 : i32, i32
  }
  func.func @transform_4(%arg0: i32) -> (i32, i32) {
    %c0_i32 = arith.constant 0 : i32
    %c0_i32_0 = arith.constant 0 : i32
    %c0_i32_1 = arith.constant 0 : i32
    return %c0_i32, %c0_i32_0 : i32, i32
  }
  func.func @transform_5(%arg0: i32) -> (i32, i32) {
    %c0_i32 = arith.constant 0 : i32
    %c0_i32_0 = arith.constant 0 : i32
    %c0_i32_1 = arith.constant 0 : i32
    return %c0_i32, %c0_i32_0 : i32, i32
  }
  func.func @transform_6(%arg0: i32) -> (i32, i32) {
    %c0_i32 = arith.constant 0 : i32
    %c0_i32_0 = arith.constant 0 : i32
    %c0_i32_1 = arith.constant 0 : i32
    return %c0_i32, %c0_i32_0 : i32, i32
  }
  func.func @transform_7(%arg0: i32) -> (i32, i32) {
    %c0_i32 = arith.constant 0 : i32
    %c0_i32_0 = arith.constant 0 : i32
    %c0_i32_1 = arith.constant 0 : i32
    return %c0_i32, %c0_i32_0 : i32, i32
  }
  func.func @transform_8(%arg0: i32) -> (i32, i32) {
    %c0_i32 = arith.constant 0 : i32
    %c0_i32_0 = arith.constant 0 : i32
    %c0_i32_1 = arith.constant 0 : i32
    return %c0_i32, %c0_i32_0 : i32, i32
  }
  func.func @transform_9(%arg0: i32) -> (i32, i32, i32) {
    %c0_i32 = arith.constant 0 : i32
    %c0_i32_0 = arith.constant 0 : i32
    %c0_i32_1 = arith.constant 0 : i32
    return %arg0, %c0_i32, %c0_i32_0 : i32, i32, i32
  }
}

</mosaic_0001>

<bundles_post_ra>
// kernel: tpu_custom_call.1
= control target key start
LH: loop header
LB: loop body
LE: loop exit
PB: predicated region body
PF: predicated region fallthrough
CT: control target
= control target key end

     0   :  { %s5779_s0 = inlined_call_operand.hbm [shape: f32[2,8,256], index: 0, kind: input, shape index: {}]   ;;  %s5780_s1 = inlined_call_operand.hbm [shape: f32[32,72], index: 1, kind: input, shape index: {}]   ;;  %s5781_s2 = inlined_call_operand.vmem [shape: f32[32,1], index: 2, kind: input, shape index: {}]   ;;  %s5782_s3 = inlined_call_operand.vmem [shape: f32[32,288], index: 3, kind: input, shape index: {}]   ;;  %s5783_s4 = inlined_call_operand.vmem [shape: f32[32,1], index: 4, kind: input, shape index: {}]   ;;  %s5784_s5 = inlined_call_operand.hbm [shape: f32[32,288], index: 5, kind: input, shape index: {}]   ;;  %s5785_s6 = inlined_call_operand.vmem [shape: f32[32,1], index: 6, kind: input, shape index: {}]   ;;  %s5786_s7 = inlined_call_operand.vmem [shape: f32[8,288], index: 7, kind: input, shape index: {}]   ;;  %s5787_s8 = inlined_call_operand.vmem [shape: f32[8,1], index: 8, kind: input, shape index: {}]   ;;  %s5788_s9 = inlined_call_operand.hbm [shape: f32[2,8,256], index: 9, kind: output, shape index: {}]  }
   0x1   :  { %5812 = sst [smem:[#allocation14_spill]] %s5779_s0 }
   0x2   :  { %5813 = sst [smem:[#allocation15_spill]] %s5780_s1 }
   0x3   :  { %5814 = sst [smem:[#allocation16_spill]] %s5781_s2 }
   0x4   :  { %5815 = sst [smem:[#allocation17_spill]] %s5782_s3 }
   0x5   :  { %5816 = sst [smem:[#allocation18_spill]] %s5783_s4 }
   0x6   :  { %5817 = sst [smem:[#allocation19_spill]] %s5784_s5 }
   0x7   :  { %14 = vsyncpa [#allocation4], 0 }
   0x8   :  { %16 = vsyncpa [#allocation4 + $0x1], 0 }
   0x9   :  { %17 = vsyncpa [#allocation7], 0 }
   0xa   :  { %18 = vsyncpa [#allocation5], 0 }
   0xb   :  { %20 = vsyncpa [#allocation5 + $0x1], 0  ;;  %s3954_s30 = smov 0   ;;  %s3956_s10 = smov 0  }
   0xc   :  { %s3958_s11 = smov 0   ;;  %s3960_s12 = smov 0  }
   0xd LB: > { %s3975_s13 = sadd.s32 4294967295, %s3882_s12   ;;  %s2700_s14 = sadd.s32 4294967294, %s3882_s12   ;;  %s3882_s12 = sphi %s3960_s12, %s5860_s12   ;;  %s3878_s11 = sphi %s3958_s11, %s5859_s11   ;;  %s3874_s10 = sphi %s3956_s10, %s5858_s10   ;;  %s3870_s30 = sphi %s3954_s30, %s5857_s30  }
   0xe   : > { %p46_p0 = scmp.ne.s32.totalorder %s3874_s10, %s3870_s30  ;;  %p5789_p1 = scmp.eq.s32.totalorder %s3975_s13, 0 }
   0xf   : > { %p244_p3 = scmp.eq.s32.totalorder %s2700_s14, 1  ;;  %p2701_p5 = scmp.ge.s32.totalorder %s3882_s12, 1 }
  0x10   : > { %p3984_p4 = por %p5789_p1, %p46_p0  ;;  %p251_p7 = scmp.lt.s32.totalorder %s3882_s12, 3 }
  0x11   : > { %p3989_p6 = por %p244_p3, %p46_p0  ;;  %s3884_s18 = smov [#allocation6]  }
  0x12   : > { %s5818_s15 = scalar_select %p3984_p4, 1, 0 }
  0x13   : > { %s5819_s16 = scalar_select %p3989_p6, 1, 0 }
  0x14   : > { %p3994_p8 = pnand %p2701_p5, %p251_p7  ;;  %s263_s19 = sshll.u32 %s3884_s18, 4  ;;  %s3998_s19 = int_to_ptr.vmem [resolvable:$true] %s263_s19 }
  0x15   : > { %5820 = sst [smem:[#allocation13_spill]] %s5819_s16  ;;  %s3885_s21 = smov [#allocation8]  }
  0x16   : > { %p3013_p9 = pneg %p3994_p8  ;;  %s285_s22 = sshll.u32 %s3885_s21, 4  ;;  %s4009_s22 = int_to_ptr.vmem [resolvable:$true] %s285_s22 }
  0x17   : > { %s5823_s1 = sld [smem:[#allocation15_spill]] }
  0x18   : > { %p4005_p11 = pnand %p3013_p9, %p5789_p1 }
  0x1a   : > { %p3728_p13 = pneg %p4005_p11 }
  0x1d   : > { %s3726_s25 = scalar_lea.hbm %s5823_s1, 512 }
  0x1e   : > { %p3727_p12 = scmp.ne.s32.totalorder %s5823_s1, %s3726_s25  ;;  %p3733_p5 = scmp.lt.u32.totalorder %s3726_s25, %s5823_s1 }
  0x20   : > { %p3729_p0 = pnand %p3728_p13, %p3727_p12 }
  0x22   : > { %p3730_p3 = pneg %p3729_p0 }
  0x24   : > { %p3735_p7 = pnand %p3733_p5, %p3730_p3 }
  0x26   : > { %3738 = shalt.err (!%p3735_p7)
}
  0x27   : > { %s3739_s14 = scalar_lea.vmem %s3998_s19, 512  ;;  %p3747_p2 = scmp.lt.s32.totalorder %s3998_s19, %s3998_s19 }
  0x28   : > { %p3740_p9 = scmp.ne.s32.totalorder %s3998_s19, %s3739_s14  ;;  %p3748_p12 = scmp.lt.s32.totalorder %s3739_s14, %s3739_s14 }
  0x2a   : > { %p3742_p10 = pnand %p3740_p9, %p3728_p13  ;;  %p3749_p0 = por %p3748_p12, %p3747_p2 }
  0x2c   : > { %p3743_p1 = pneg %p3742_p10 }
  0x2e   : > { %p3750_p6 = pnand %p3749_p0, %p3743_p1 }
  0x30   : > { %3753 = shalt.err (!%p3750_p6)
}
  0x31   : > { %s3886_s18 = smov 128   ;;  %s3887_s21 = smov 8  }
  0x32   : > { %3016 = dma.hbm_to_vmem [thread:$0]  (!%p4005_p11), %s5823_s1, 512, %s3998_s19, [#allocation7], %s3886_s18, %s3886_s18, %s3887_s21  }
  0x33   : > { %s5824_s5 = sld [smem:[#allocation19_spill]] }
  0x39   : > { %s3754_s27 = scalar_lea.hbm %s5824_s5, 1536 }
  0x3a   : > { %p3755_p2 = scmp.ne.s32.totalorder %s5824_s5, %s3754_s27  ;;  %p3761_p10 = scmp.lt.u32.totalorder %s3754_s27, %s5824_s5 }
  0x3c   : > { %p3757_p1 = pnand %p3755_p2, %p3728_p13 }
  0x3e   : > { %p3758_p6 = pneg %p3757_p1 }
  0x40   : > { %p3763_p3 = pnand %p3761_p10, %p3758_p6 }
  0x42   : > { %3766 = shalt.err (!%p3763_p3)
}
  0x43   : > { %s3767_s19 = scalar_lea.vmem %s4009_s22, 1536  ;;  %p3775_p12 = scmp.lt.s32.totalorder %s4009_s22, %s4009_s22 }
  0x44   : > { %p3768_p5 = scmp.ne.s32.totalorder %s4009_s22, %s3767_s19  ;;  %p3776_p0 = scmp.lt.s32.totalorder %s3767_s19, %s3767_s19 }
  0x46   : > { %p3770_p7 = pnand %p3768_p5, %p3728_p13  ;;  %p3777_p2 = por %p3776_p0, %p3775_p12 }
  0x48   : > { %p3771_p9 = pneg %p3770_p7 }
  0x4a   : > { %p3778_p1 = pnand %p3777_p2, %p3771_p9 }
  0x4c   : > { %3781 = shalt.err (!%p3778_p1)
}
  0x4d   : > { %s3888_s16 = smov 384   ;;  %s3889_s18 = smov 24  }
  0x4e   : > { %3019 = dma.hbm_to_vmem [thread:$0]  (!%p4005_p11), %s5824_s5, 1536, %s4009_s22, [#allocation7], %s3888_s16, %s3888_s16, %s3889_s18  }
  0x4f   : > { %s4064_s24 = sadd.s32 1, %s3882_s12   ;;  %s33_s26 = sadd.s32 1, %s3878_s11 }
  0x50   : > { %s30_s25 = ssub.s32 %s3882_s12, %s4064_s24  ;;  %p40_p6 = scmp.ne.s32.totalorder %s3878_s11, %s3874_s10 }
  0x51   : > { %p31_p13 = scmp.eq.s32.totalorder %s30_s25, 0  ;;  %p41_p10 = scmp.eq.s32.totalorder %s3882_s12, 0 }
  0x52   : > { %p5825_p5 = scmp.eq.s32.totalorder %s3975_s13, 1  ;;  %p3030_p9 = scmp.lt.s32.totalorder %s3882_s12, 2 }
  0x53   : > { %s4073_s27 = scalar_select %p31_p13, %s3878_s11, %s33_s26  }
  0x54   : > { %p42_p3 = por %p41_p10, %p40_p6  ;;  %p4077_p7 = por %p5825_p5, %p40_p6 }
  0x55   : > { %s308_s20 = sand.u32 1, %s3878_s11   ;;  %s2731_s22 = sshll.u32 %s3882_s12, 8 }
  0x56   : > { %s5826_s28 = scalar_select %p4077_p7, 1, 0 }
  0x57   : > { %s2705_s29 = sshll.u32 %s308_s20, 4  ;;  %s5827_s0 = sld [smem:[#allocation14_spill]] }
  0x58   : > { %s312_s18 = scalar_lea.vmem [#allocation3], %s2705_s29  ;;  %p4091_p11 = pnand %p3030_p9, %p42_p3 }
  0x59   : > { %s320_s21 = sshll.u32 %s312_s18, 4  ;;  %s309_s25 = scalar_lea.sflag [#allocation4], %s308_s20  ;;  %s4089_s21 = int_to_ptr.vmem [resolvable:$true] %s320_s21 }
  0x5a   : > { %p3784_p0 = pneg %p4091_p11 }
  0x5d   : > { %s4087_s16 = scalar_lea.hbm %s5827_s0, %s2731_s22  ;;  %s3787_s14 = scalar_lea.hbm %s5827_s0, 512 }
  0x5e   : > { %s3782_s26 = scalar_lea.hbm %s4087_s16, 256  ;;  %p3788_p13 = scmp.lt.u32.totalorder %s4087_s16, %s5827_s0 }
  0x5f   : > { %p3783_p12 = scmp.ne.s32.totalorder %s4087_s16, %s3782_s26  ;;  %p3789_p6 = scmp.lt.u32.totalorder %s3787_s14, %s3782_s26 }
  0x60   : > { %p3791_p3 = scmp.lt.u32.totalorder %s3782_s26, %s4087_s16 }
  0x61   : > { %p3785_p2 = pnand %p3784_p0, %p3783_p12  ;;  %p3790_p10 = por %p3789_p6, %p3788_p13 }
  0x63   : > { %p3786_p1 = pneg %p3785_p2  ;;  %p3792_p5 = por %p3791_p3, %p3790_p10 }
  0x65   : > { %p3793_p9 = pnand %p3792_p5, %p3786_p1 }
  0x67   : > { %3796 = shalt.err (!%p3793_p9)
}
  0x68   : > { %s3797_s20 = scalar_lea.vmem %s4089_s21, 256  ;;  %s3890_s22 = smov [#allocation3]  }
  0x69   : > { %p3798_p12 = scmp.ne.s32.totalorder %s4089_s21, %s3797_s20  ;;  %s3802_s29 = sshll.u32 %s3890_s22, 4  ;;  %s3803_s29 = int_to_ptr.vmem [resolvable:$false] %s3802_s29 }
  0x6a   : > { %s3804_s19 = scalar_lea.vmem %s3803_s29, 512  ;;  %p3805_p4 = scmp.lt.s32.totalorder %s4089_s21, %s3803_s29 }
  0x6b   : > { %p3800_p2 = pnand %p3798_p12, %p3784_p0  ;;  %p3806_p13 = scmp.lt.s32.totalorder %s3804_s19, %s3797_s20 }
  0x6d   : > { %p3801_p7 = pneg %p3800_p2  ;;  %p3807_p6 = por %p3806_p13, %p3805_p4 }
  0x6f   : > { %p3808_p10 = pnand %p3807_p6, %p3801_p7 }
  0x71   : > { %3811 = shalt.err (!%p3808_p10)
}
  0x72   : > { %3023 = dma.hbm_to_vmem [thread:$0]  (!%p4091_p11), %s4087_s16, 256, %s4089_s21, %s309_s25  }
  0x73   : > { %329 = sbr.rel (%p3994_p8) target bundleno = 1801 (0x709), region = 56  ;;  %s4123_s26 = sand.u32 (!%p3994_p8), 1, %s3874_s10  }
  0x74   : > { %s5793_s14 = sshll.u32 (!%p3994_p8), %s4123_s26, 4  ;;  %s332_s18 = scalar_lea.sflag (!%p3994_p8), [#allocation4], %s4123_s26 }
  0x75   : > { %s335_s20 = scalar_lea.vmem (!%p3994_p8), [#allocation3], %s5793_s14  ;;  %p5829_p4 = scmp.ne.s32.totalorder (!%p3994_p8), %s5818_s15, 0 }
  0x7a   : > { %3857 = dma.done.wait (%p5829_p4), %s332_s18, 256  }
  0x7b   : > { %3859 = vsyncadd (%p5829_p4), %s332_s18, 4294967040  ;;  %p5830_p7 = scmp.eq.s32.totalorder %s3975_s13, 0 }
  0x7d   : > { %3861 = dma.done.wait (%p5830_p7), [#allocation7], 2048   ;;  %p5831_p8 = pmov %p5830_p7 }
  0x7e   : > { %v4137_v0 = vld [vmem:[%s335_s20] sm:$0xff]  ;;  %v4139_v1 = vld [vmem:[%s335_s20 + $0x8] sm:$0xff]  ;;  %s5806_s17 = smov 16   ;;  %s5810_s16 = smov 17   ;;  %v3898_v3 = vmov 0.0   ;;  %v3902_v6 = vmov 0   ;;  %v380_v9 = vlaneseq }
  0x7f   : > { %3863 = vsyncadd (%p5831_p8), [#allocation7], 4294965248  ;;  %v3094_v2 = vpack.i.bf16 %v4139_v1, %v4137_v0  ;;  %s5804_s15 = smov 15   ;;  %s5808_s21 = smov 1   ;;  %634 = vmatprep.mubr.f32.mxu0 %v3898_v3  ;;  %3124 = vset.pattern.permute.xlu0 %v3902_v6  ;;  %vm557_vm14 = vcmask 588800   ;;  %vm1135_vm15 = vcmask 261120  }
  0x80   : > { %s5796_s23 = smov 113   ;;  %s5802_s25 = smov 31   ;;  %3125 = vset.pattern.permute.xlu1 %v3902_v6  ;;  %v4172_v10 = vand.u32 127, %v380_v9 }
  0x81   : > { %3095 = vrot.lane.b32.xlu1 %v3094_v2, %s5806_s17  ;;  %3085 = vrot.lane.b32.xlu0 %v3094_v2, %s5810_s16  ;;  %s5794_s22 = smov 127   ;;  %s5798_s29 = smov 112  }
  0x82   : > { %s5800_s19 = smov 97   ;;  %s3901_s18 = smov 111   ;;  %v382_v11 = vadd.s32 128, %v4172_v10  ;;  %v387_v12 = vand.u32 15, %v4172_v10  ;;  %vm415_vm0 = vcmp.lt.s32.totalorder %v4172_v10, 16  ;;  %vm475_vm1 = vcmp.lt.s32.totalorder %v4172_v10, 17 }
  0x83   : > { %s5832_s2 = sld [smem:[#allocation16_spill]]  ;;  %vm482_vm2 = vcmp.lt.s32.totalorder %v4172_v10, 1  ;;  %vm453_vm4 = vcmp.lt.s32.totalorder %v4172_v10, 15  ;;  %vm464_vm6 = vcmp.lt.s32.totalorder %v4172_v10, 31  ;;  %vm493_vm8 = vcmp.lt.s32.totalorder %v4172_v10, 113  ;;  %s5841_s14 = smov 15  }
  0x84   : > { %v394_v15 = vand.u32 15, %v382_v11  ;;  %vm4179_vm3 = vcmp.lt.s32.totalorder %v387_v12, 1  ;;  %vm4184_vm5 = vcmp.ge.s32.totalorder %v387_v12, 15  ;;  %vm442_vm10 = vcmp.lt.s32.totalorder %v4172_v10, 127  ;;  %s5847_s3 = sld [smem:[#allocation17_spill]]  ;;  %s5848_s4 = sld [smem:[#allocation18_spill]] }
  0x85   : > { %3100 = vrot.lane.b32.xlu1 %v3094_v2, %s5804_s15  ;;  %3090 = vrot.lane.b32.xlu0 %v3094_v2, %s5808_s21  ;;  %vm426_vm11 = vcmp.lt.s32.totalorder %v4172_v10, 112  ;;  %vm504_vm12 = vcmp.lt.s32.totalorder %v4172_v10, 97  ;;  %vm435_vm13 = vcmp.lt.s32.totalorder %v4172_v10, 111  ;;  %s5842_s15 = smov 31   ;;  %s5850_s20 = smov 1   ;;  %v2368_v10 = vld [vmem:[%s5786_s7] sm:$0xff] }
  0x86   : > { %vm4189_vm7 = vcmp.lt.s32.totalorder %v394_v15, 1  ;;  %vm4194_vm9 = vcmp.ge.s32.totalorder %v394_v15, 15  ;;  %s5851_s0 = smov 16   ;;  %p5853_p0 = scmp.ne.s32.totalorder %s5826_s28, 0 }
  0x89   : > { %3110 = vrot.lane.b32.xlu1 %v3094_v2, %s5796_s23  ;;  %3105 = vrot.lane.b32.xlu0 %v3094_v2, %s5802_s25  ;;  %v533_v4 = vld [vmem:[%s5832_s2] sm:$0xff]  ;;  %v534_v5 = vld [vmem:[%s5832_s2 + $0x8] sm:$0xff]  ;;  %s5843_s23 = smov 113   ;;  %s5844_s25 = smov 127  }
  0x8a   : > { %v535_v7 = vld [vmem:[%s5832_s2 + $0x10] sm:$0xff]  ;;  %v536_v8 = vld [vmem:[%s5832_s2 + $0x18] sm:$0xff] }
  0x8d   : > { %440 = vrot.lane.b32.xlu1 %v4139_v1, %s5794_s22  ;;  %438 = vrot.lane.b32.xlu0 %v4137_v0, %s5794_s22  ;;  %s5845_s22 = smov 97  }
  0x91   : > { %3120 = vrot.lane.b32.xlu1 %v3094_v2, %s5798_s29  ;;  %3115 = vrot.lane.b32.xlu0 %v3094_v2, %s5800_s19  ;;  %s5846_s29 = smov 112   ;;  %s5849_s19 = smov 17  }
  0x95   : > { %433 = vrot.lane.b32.xlu1 %v4139_v1, %s3901_s18  ;;  %431 = vrot.lane.b32.xlu0 %v4137_v0, %s3901_s18 }
  0x99   : > { %539 = vperm.xlu0 %3124, %v533_v4   ;;  %544 = vperm.xlu1 %3125, %v534_v5  }
  0x9d   : > { %549 = vperm.xlu1 %3125, %v535_v7   ;;  %554 = vperm.xlu0 %3124, %v536_v8  }
  0xf3   : > { %v3096_v13 = vpop.permute.xlu1 %3095  ;;  %v3086_v14 = vpop.permute.xlu0 %3085 }
  0xf4   : > { %v3088_v16 = vunpack.i.h.bf16 %v3086_v14  ;;  %v3087_v17 = vunpack.i.l.bf16 %v3086_v14  ;;  %v3098_v19 = vunpack.i.h.bf16 %v3096_v13  ;;  %v3097_v20 = vunpack.i.l.bf16 %v3096_v13 }
  0xf6   : > { %v476_v30 = vsel %vm475_vm1, %v3087_v17, %v3088_v16  ;;  %v477_v32 = vsel %vm475_vm1, %v3088_v16, %v3087_v17  ;;  %v416_v36 = vsel %vm415_vm0, %v3097_v20, %v3098_v19  ;;  %v417_v38 = vsel %vm415_vm0, %v3098_v19, %v3097_v20 }
  0xf7   : > { %v3101_v21 = vpop.permute.xlu1 %3100  ;;  %v3091_v22 = vpop.permute.xlu0 %3090 }
  0xf8   : > { %v3093_v24 = vunpack.i.h.bf16 %v3091_v22  ;;  %v3092_v25 = vunpack.i.l.bf16 %v3091_v22  ;;  %v3103_v27 = vunpack.i.h.bf16 %v3101_v21  ;;  %v3102_v28 = vunpack.i.l.bf16 %v3101_v21 }
  0xfa   : > { %v483_v31 = vsel %vm482_vm2, %v3092_v25, %v3093_v24  ;;  %v484_v33 = vsel %vm482_vm2, %v3093_v24, %v3092_v25  ;;  %v454_v46 = vsel %vm453_vm4, %v3102_v28, %v3103_v27  ;;  %v455_v47 = vsel %vm453_vm4, %v3103_v27, %v3102_v28  ;;  %v511_v25 = vld [vmem:[#allocation6] sm:$0xff]  ;;  %v512_v28 = vld [vmem:[#allocation6 + $0x8] sm:$0xff] }
  0xfb   : > { %v3111_v34 = vpop.permute.xlu1 %3110  ;;  %v3106_v35 = vpop.permute.xlu0 %3105  ;;  %v486_v37 = vsel %vm4189_vm7, %v483_v31, %v476_v30  ;;  %v485_v39 = vsel %vm4179_vm3, %v484_v33, %v477_v32  ;;  %v513_v30 = vld [vmem:[#allocation6 + $0x10] sm:$0xff] }
  0xfc   : > { %v3113_v40 = vunpack.i.h.bf16 %v3111_v34  ;;  %v3112_v41 = vunpack.i.l.bf16 %v3111_v34  ;;  %v3108_v42 = vunpack.i.h.bf16 %v3106_v35  ;;  %v3107_v43 = vunpack.i.l.bf16 %v3106_v35 }
  0xfd   : > { %v2733_v44 = vpack.c.bf16 %v416_v36, %v486_v37  ;;  %v2735_v45 = vpack.c.bf16 %v417_v38, %v485_v39 }
  0xfe   : > { %v465_v48 = vsel %vm464_vm6, %v3107_v43, %v3108_v42  ;;  %v495_v49 = vsel %vm493_vm8, %v3113_v40, %v3112_v41  ;;  %v466_v50 = vsel %vm464_vm6, %v3108_v42, %v3107_v43  ;;  %v494_v51 = vsel %vm493_vm8, %v3112_v41, %v3113_v40 }
  0xff   : > { %2734 = vmatprep.subr.bf16.mxu0 %v2733_v44  ;;  %v441_v52 = vpop.permute.xlu1 %440  ;;  %v439_v53 = vpop.permute.xlu0 %438  ;;  %v468_v54 = vsel %vm4194_vm9, %v465_v48, %v454_v46  ;;  %v497_v55 = vsel %vm4189_vm7, %v495_v49, %v483_v31  ;;  %v467_v56 = vsel %vm4184_vm5, %v466_v50, %v455_v47  ;;  %v496_v57 = vsel %vm4179_vm3, %v494_v51, %v484_v33  ;;  %v514_v31 = vld [vmem:[#allocation6 + $0x18] sm:$0xff] }
 0x100   : > { %v443_v58 = vsel %vm442_vm10, %v439_v53, %v441_v52  ;;  %v444_v59 = vsel %vm442_vm10, %v441_v52, %v439_v53  ;;  %2736 = vmatpush1.bf16.msra.mxu0 %v2735_v45  ;;  %v2737_v60 = vpack.c.bf16 %v497_v55, %v468_v54  ;;  %v2739_v61 = vpack.c.bf16 %v496_v57, %v467_v56 }
 0x101   : > { %v457_v62 = vsel %vm4194_vm9, %v454_v46, %v444_v59  ;;  %v456_v2 = vsel %vm4184_vm5, %v455_v47, %v443_v58 }
 0x102   : > { %2738 = vmatprep.subr.bf16.mxu0 %v2737_v60  ;;  %v2741_v63 = vpack.c.bf16 %v457_v62, %v4139_v1  ;;  %v2743_v11 = vpack.c.bf16 %v456_v2, %v4137_v0  ;;  %v1028_v2 = vld [vmem:[%s5847_s3 + $0x8] sm:$0xff] }
 0x103   : > { %v3121_v4 = vpop.permute.xlu1 %3120  ;;  %v3116_v5 = vpop.permute.xlu0 %3115  ;;  %1212 = vmatprep.mubr.f32.mxu1 %v1028_v2 }
 0x104   : > { %v3123_v6 = vunpack.i.h.bf16 %v3121_v4  ;;  %v3122_v7 = vunpack.i.l.bf16 %v3121_v4  ;;  %v3118_v8 = vunpack.i.h.bf16 %v3116_v5  ;;  %v3117_v9 = vunpack.i.l.bf16 %v3116_v5  ;;  %2740 = vmatpush1.bf16.msra.mxu0 %v2739_v61  ;;  %v1111_v4 = vld [vmem:[%s5848_s4] sm:$0xff]  ;;  %v1112_v5 = vld [vmem:[%s5848_s4 + $0x8] sm:$0xff] }
 0x105   : > { %2742 = vmatprep.subr.bf16.mxu0 %v2741_v63 }
 0x106   : > { %v428_v1 = vsel %vm426_vm11, %v3123_v6, %v3122_v7  ;;  %v506_v12 = vsel %vm504_vm12, %v3118_v8, %v3117_v9  ;;  %v427_v13 = vsel %vm426_vm11, %v3122_v7, %v3123_v6  ;;  %v505_v14 = vsel %vm504_vm12, %v3117_v9, %v3118_v8  ;;  %v1113_v6 = vld [vmem:[%s5848_s4 + $0x10] sm:$0xff]  ;;  %v1114_v7 = vld [vmem:[%s5848_s4 + $0x18] sm:$0xff] }
 0x107   : > { %v434_v15 = vpop.permute.xlu1 %433  ;;  %v432_v16 = vpop.permute.xlu0 %431  ;;  %v508_v17 = vsel %vm4189_vm7, %v506_v12, %v495_v49  ;;  %v507_v0 = vsel %vm4179_vm3, %v505_v14, %v494_v51 }
 0x108   : > { %2744 = vmatpush1.bf16.msra.mxu0 %v2743_v11  ;;  %v2745_v19 = vpack.c.bf16 %v428_v1, %v508_v17  ;;  %v2747_v20 = vpack.c.bf16 %v427_v13, %v507_v0  ;;  %v437_v21 = vsel %vm435_vm13, %v434_v15, %v432_v16  ;;  %v436_v22 = vsel %vm435_vm13, %v432_v16, %v434_v15 }
 0x109   : > { %v446_v24 = vsel %vm4194_vm9, %v444_v59, %v437_v21  ;;  %v445_v27 = vsel %vm4184_vm5, %v443_v58, %v436_v22 }
 0x10a   : > { %2746 = vmatprep.subr.bf16.mxu0 %v2745_v19 }
 0x10c   : > { %2748 = vmatpush1.bf16.msra.mxu0 %v2747_v20 }
 0x10d   : > { %586 = vmatprep.subr.mxu0 %v446_v24 }
 0x110   : > { %587 = vmatpush1.msra.mxu0 %v445_v27 }
 0x111   : > { %2713 = vmatmul.mubr.msk.f32.vlgmr.msra.gmra.mrb[0].mxu0 %vm557_vm14, %v511_v25 }
 0x112   : > { %640 = vmatprep.mubr.f32.mxu0 %v3898_v3 }
 0x115   : > { %2714 = vmatmul.mubr.msk.f32.gmra.mrb[2].mxu0 %vm557_vm14, %v512_v28 }
 0x116   : > { %646 = vmatprep.mubr.f32.mxu0 %v3898_v3 }
 0x118   : > { %v540_v32 = vpop.permute.xlu0 %539  ;;  %v545_v36 = vpop.permute.xlu1 %544 }
 0x119   : > { %2715 = vmatmul.mubr.msk.f32.gmra.mrb[4].mxu0 %vm557_vm14, %v513_v30 }
 0x11a   : > { %652 = vmatprep.mubr.f32.mxu0 %v3898_v3 }
 0x11c   : > { %v555_v52 = vpop.permute.xlu0 %554  ;;  %v550_v54 = vpop.permute.xlu1 %549 }
 0x11d   : > { %2716 = vmatmul.mubr.msk.f32.gmra.mrb[6].mxu0 %vm557_vm14, %v514_v31 }
 0x11e   : > { %1301 = vmatprep.mubr.f32.mxu0 %v3898_v3 }
 0x1e4   : > { %v636_v33 = vpop.f32.mrb[0].mxu0 }
 0x1e5   : > { %v638_v34 = vpop.f32.mrb[1].mxu0  ;;  %v637_v35 = vadd.f32 %v636_v33, %v540_v32 }
 0x1e6   : > { %v639_v37 = vadd.f32 %v638_v34, %v540_v32 }
 0x1e7   : > { %v4272_v42 = vmax.f32 %v637_v35, 0.0 }
 0x1e8   : > { %v642_v38 = vpop.f32.mrb[2].mxu0  ;;  %v4276_v44 = vmax.f32 %v639_v37, 0.0 }
 0x1e9   : > { %v643_v39 = vadd.f32 %v642_v38, %v545_v36  ;;  %v644_v40 = vpop.f32.mrb[3].mxu0 }
 0x1ea   : > { %v645_v41 = vadd.f32 %v644_v40, %v545_v36 }
 0x1eb   : > { %v4274_v43 = vmax.f32 %v643_v39, 0.0 }
 0x1ec   : > { %v4278_v45 = vmax.f32 %v645_v41, 0.0  ;;  %v648_v46 = vpop.f32.mrb[4].mxu0 }
 0x1ed   : > { %v650_v47 = vpop.f32.mrb[5].mxu0  ;;  %v3126_v48 = vpack.i.bf16 %v4274_v43, %v4272_v42  ;;  %v649_v56 = vadd.f32 %v648_v46, %v550_v54 }
 0x1ee   : > { %v3146_v49 = vpack.i.bf16 %v4278_v45, %v4276_v44  ;;  %v651_v57 = vadd.f32 %v650_v47, %v550_v54 }
 0x1ef   : > { %3127 = vrot.lane.b32.xlu1 %v3126_v48, %s5810_s16  ;;  %v4294_v60 = vmax.f32 %v649_v56, 0.0 }
 0x1f0   : > { %v654_v50 = vpop.f32.mrb[6].mxu0  ;;  %3147 = vrot.lane.b32.xlu0 %v3146_v49, %s5810_s16  ;;  %v4297_v61 = vmax.f32 %v651_v57, 0.0 }
 0x1f1   : > { %v656_v51 = vpop.f32.mrb[7].mxu0  ;;  %v655_v53 = vadd.f32 %v654_v50, %v555_v52 }
 0x1f2   : > { %v657_v55 = vadd.f32 %v656_v51, %v555_v52 }
 0x1f3   : > { %3132 = vrot.lane.b32.xlu1 %v3126_v48, %s5808_s21  ;;  %v4290_v58 = vmax.f32 %v655_v53, 0.0 }
 0x1f4   : > { %3152 = vrot.lane.b32.xlu0 %v3146_v49, %s5808_s21  ;;  %v4292_v59 = vmax.f32 %v657_v55, 0.0 }
 0x1f5   : > { %v3166_v62 = vpack.i.bf16 %v4290_v58, %v4294_v60 }
 0x1f6   : > { %v3186_v63 = vpack.i.bf16 %v4292_v59, %v4297_v61 }
 0x1f7   : > { %3137 = vrot.lane.b32.xlu1 %v3126_v48, %s5806_s17 }
 0x1f8   : > { %3157 = vrot.lane.b32.xlu0 %v3146_v49, %s5806_s17 }
 0x1fb   : > { %3142 = vrot.lane.b32.xlu1 %v3126_v48, %s5841_s14 }
 0x1fc   : > { %3162 = vrot.lane.b32.xlu0 %v3146_v49, %s5841_s14 }
 0x1ff   : > { %3167 = vrot.lane.b32.xlu1 %v3166_v62, %s5810_s16 }
 0x200   : > { %3187 = vrot.lane.b32.xlu0 %v3186_v63, %s5810_s16  ;;  %s3903_s16 = smov [#allocation9]  }
 0x203   : > { %3172 = vrot.lane.b32.xlu1 %v3166_v62, %s5808_s21 }
 0x204   : > { %3192 = vrot.lane.b32.xlu0 %v3186_v63, %s5808_s21  ;;  %s3816_s21 = sshll.u32 %s3903_s16, 4  ;;  %s3817_s21 = int_to_ptr.vmem [resolvable:$false] %s3816_s21 }
 0x207   : > { %3177 = vrot.lane.b32.xlu1 %v3126_v48, %s5842_s15 }
 0x208   : > { %3197 = vrot.lane.b32.xlu0 %v3146_v49, %s5842_s15 }
 0x20b   : > { %3182 = vrot.lane.b32.xlu1 %v3166_v62, %s5806_s17 }
 0x20c   : > { %3217 = vrot.lane.b32.xlu0 %v3186_v63, %s5806_s17  ;;  %s2597_s17 = scalar_lea.sflag [#allocation5], %s4123_s26 }
 0x20f   : > { %3202 = vrot.lane.b32.xlu1 %v3166_v62, %s5841_s14 }
 0x210   : > { %3222 = vrot.lane.b32.xlu0 %v3186_v63, %s5841_s14 }
 0x213   : > { %3207 = vrot.lane.b32.xlu1 %v3166_v62, %s5842_s15 }
 0x214   : > { %3227 = vrot.lane.b32.xlu0 %v3186_v63, %s5842_s15 }
 0x217   : > { %3212 = vrot.lane.b32.xlu1 %v3126_v48, %s5843_s23 }
 0x218   : > { %3232 = vrot.lane.b32.xlu0 %v3146_v49, %s5843_s23 }
 0x21b   : > { %3237 = vrot.lane.b32.xlu1 %v3166_v62, %s5843_s23 }
 0x21c   : > { %3242 = vrot.lane.b32.xlu0 %v3186_v63, %s5843_s23 }
 0x21f   : > { %3247 = vrot.lane.b32.xlu1 %v3126_v48, %s5844_s25 }
 0x220   : > { %3252 = vrot.lane.b32.xlu0 %v3146_v49, %s5844_s25 }
 0x223   : > { %3257 = vrot.lane.b32.xlu1 %v3166_v62, %s5844_s25 }
 0x224   : > { %3267 = vrot.lane.b32.xlu0 %v3146_v49, %s5845_s22 }
 0x227   : > { %3262 = vrot.lane.b32.xlu1 %v3126_v48, %s5845_s22 }
 0x228   : > { %3282 = vrot.lane.b32.xlu0 %v3186_v63, %s5844_s25 }
 0x22b   : > { %3272 = vrot.lane.b32.xlu1 %v3166_v62, %s5845_s22 }
 0x22c   : > { %3287 = vrot.lane.b32.xlu0 %v3146_v49, %s5846_s29 }
 0x22f   : > { %3277 = vrot.lane.b32.xlu1 %v3126_v48, %s5846_s29 }
 0x230   : > { %3297 = vrot.lane.b32.xlu0 %v3186_v63, %s5845_s22 }
 0x233   : > { %3292 = vrot.lane.b32.xlu1 %v3126_v48, %s3901_s18 }
 0x234   : > { %3302 = vrot.lane.b32.xlu0 %v3146_v49, %s3901_s18 }
 0x237   : > { %3307 = vrot.lane.b32.xlu1 %v3166_v62, %s5846_s29 }
 0x238   : > { %3317 = vrot.lane.b32.xlu0 %v3186_v63, %s5846_s29 }
 0x23b   : > { %3312 = vrot.lane.b32.xlu1 %v3166_v62, %s3901_s18 }
 0x23c   : > { %3322 = vrot.lane.b32.xlu0 %v3186_v63, %s3901_s18 }
 0x23f   : > { %1117 = vperm.xlu1 %3125, %v1111_v4  }
 0x240   : > { %1122 = vperm.xlu0 %3124, %v1112_v5  }
 0x243   : > { %1127 = vperm.xlu1 %3125, %v1113_v6  }
 0x244   : > { %1132 = vperm.xlu0 %3124, %v1114_v7  }
 0x261   : > { %v3128_v8 = vpop.permute.xlu1 %3127 }
 0x262   : > { %v3148_v9 = vpop.permute.xlu0 %3147  ;;  %v3130_v11 = vunpack.i.h.bf16 %v3128_v8  ;;  %v3129_v1 = vunpack.i.l.bf16 %v3128_v8 }
 0x263   : > { %v3150_v12 = vunpack.i.h.bf16 %v3148_v9  ;;  %v3149_v13 = vunpack.i.l.bf16 %v3148_v9 }
 0x265   : > { %v3133_v14 = vpop.permute.xlu1 %3132  ;;  %v899_v20 = vsel %vm475_vm1, %v3129_v1, %v3149_v13  ;;  %v900_v21 = vsel %vm475_vm1, %v3130_v11, %v3150_v12  ;;  %v903_v33 = vsel %vm475_vm1, %v3149_v13, %v3129_v1  ;;  %v904_v35 = vsel %vm475_vm1, %v3150_v12, %v3130_v11 }
 0x266   : > { %v3135_v15 = vunpack.i.h.bf16 %v3133_v14  ;;  %v3134_v16 = vunpack.i.l.bf16 %v3133_v14  ;;  %v3153_v17 = vpop.permute.xlu0 %3152 }
 0x267   : > { %v3155_v0 = vunpack.i.h.bf16 %v3153_v17  ;;  %v3154_v19 = vunpack.i.l.bf16 %v3153_v17 }
 0x269   : > { %v3138_v22 = vpop.permute.xlu1 %3137  ;;  %v4357_v24 = vsel %vm482_vm2, %v3134_v16, %v3154_v19  ;;  %v4361_v25 = vsel %vm482_vm2, %v3135_v15, %v3155_v0  ;;  %v4365_v27 = vsel %vm482_vm2, %v3154_v19, %v3134_v16  ;;  %v4369_v28 = vsel %vm482_vm2, %v3155_v0, %v3135_v15 }
 0x26a   : > { %v3158_v30 = vpop.permute.xlu0 %3157  ;;  %v932_v31 = vsel %vm4189_vm7, %v4357_v24, %v899_v20  ;;  %v934_v32 = vsel %vm4189_vm7, %v4361_v25, %v900_v21  ;;  %v931_v36 = vsel %vm4179_vm3, %v4365_v27, %v903_v33  ;;  %v933_v37 = vsel %vm4179_vm3, %v4369_v28, %v904_v35 }
 0x26b   : > { %v2749_v34 = vpack.c.bf16 %v934_v32, %v932_v31  ;;  %v2751_v39 = vpack.c.bf16 %v933_v37, %v931_v36  ;;  %v3139_v46 = vunpack.i.l.bf16 %v3138_v22  ;;  %v3159_v47 = vunpack.i.l.bf16 %v3158_v30 }
 0x26c   : > { %v3140_v49 = vunpack.i.h.bf16 %v3138_v22  ;;  %v3160_v50 = vunpack.i.h.bf16 %v3158_v30 }
 0x26d   : > { %v4387_v38 = vpop.permute.xlu1 %3142  ;;  %2750 = vmatprep.subr.bf16.mxu1 %v2749_v34  ;;  %v683_v63 = vsel %vm415_vm0, %v3139_v46, %v3159_v47  ;;  %v687_v6 = vsel %vm415_vm0, %v3159_v47, %v3139_v46 }
 0x26e   : > { %v4389_v40 = vpop.permute.xlu0 %3162  ;;  %2752 = vmatpush1.bf16.msra.mxu1 %v2751_v39  ;;  %v684_v5 = vsel %vm415_vm0, %v3140_v49, %v3160_v50  ;;  %v3144_v7 = vunpack.i.l.bf16 %v4387_v38  ;;  %v688_v11 = vsel %vm415_vm0, %v3160_v50, %v3140_v49  ;;  %v3145_v36 = vunpack.i.h.bf16 %v4387_v38 }
 0x26f   : > { %v3164_v16 = vunpack.i.l.bf16 %v4389_v40  ;;  %v3165_v37 = vunpack.i.h.bf16 %v4389_v40  ;;  %v2757_v49 = vpack.c.bf16 %v684_v5, %v683_v63 }
 0x271   : > { %v3168_v41 = vpop.permute.xlu1 %3167  ;;  %v4457_v63 = vsel %vm453_vm4, %v3145_v36, %v3165_v37 }
 0x272   : > { %v3188_v48 = vpop.permute.xlu0 %3187  ;;  %v3170_v51 = vunpack.i.h.bf16 %v3168_v41  ;;  %v3169_v52 = vunpack.i.l.bf16 %v3168_v41 }
 0x273   : > { %v3190_v53 = vunpack.i.h.bf16 %v3188_v48  ;;  %v3189_v54 = vunpack.i.l.bf16 %v3188_v48 }
 0x275   : > { %v3173_v55 = vpop.permute.xlu1 %3172  ;;  %v901_v8 = vsel %vm475_vm1, %v3169_v52, %v3189_v54  ;;  %v902_v9 = vsel %vm475_vm1, %v3170_v51, %v3190_v53  ;;  %v905_v20 = vsel %vm475_vm1, %v3189_v54, %v3169_v52  ;;  %v906_v30 = vsel %vm475_vm1, %v3190_v53, %v3170_v51 }
 0x276   : > { %v3175_v56 = vunpack.i.h.bf16 %v3173_v55  ;;  %v3174_v57 = vunpack.i.l.bf16 %v3173_v55  ;;  %v3193_v62 = vpop.permute.xlu0 %3192  ;;  %v2759_v52 = vpack.c.bf16 %v688_v11, %v687_v6  ;;  %v4441_v53 = vsel %vm453_vm4, %v3144_v7, %v3164_v16 }
 0x277   : > { %v3195_v2 = vunpack.i.h.bf16 %v3193_v62  ;;  %v3194_v4 = vunpack.i.l.bf16 %v3193_v62 }
 0x279   : > { %v3178_v1 = vpop.permute.xlu1 %3177  ;;  %v4406_v12 = vsel %vm482_vm2, %v3174_v57, %v3194_v4  ;;  %v4410_v13 = vsel %vm482_vm2, %v3175_v56, %v3195_v2  ;;  %v4414_v14 = vsel %vm482_vm2, %v3194_v4, %v3174_v57  ;;  %v4418_v15 = vsel %vm482_vm2, %v3195_v2, %v3175_v56 }
 0x27a   : > { %v3198_v17 = vpop.permute.xlu0 %3197  ;;  %v936_v0 = vsel %vm4189_vm7, %v4406_v12, %v901_v8  ;;  %v938_v19 = vsel %vm4189_vm7, %v4410_v13, %v902_v9  ;;  %v3180_v21 = vunpack.i.h.bf16 %v3178_v1  ;;  %v935_v31 = vsel %vm4179_vm3, %v4414_v14, %v905_v20 }
 0x27b   : > { %v2753_v22 = vpack.c.bf16 %v938_v19, %v936_v0  ;;  %v3179_v32 = vunpack.i.l.bf16 %v3178_v1  ;;  %v3200_v33 = vunpack.i.h.bf16 %v3198_v17  ;;  %v3199_v34 = vunpack.i.l.bf16 %v3198_v17 }
 0x27c   : > { %v937_v35 = vsel %vm4179_vm3, %v4418_v15, %v906_v30  ;;  %v4461_v2 = vsel %vm453_vm4, %v3164_v16, %v3144_v7  ;;  %v4469_v9 = vsel %vm453_vm4, %v3165_v37, %v3145_v36 }
 0x27d   : > { %v3183_v39 = vpop.permute.xlu1 %3182  ;;  %2754 = vmatprep.subr.bf16.mxu1 %v2753_v22  ;;  %v2755_v41 = vpack.c.bf16 %v937_v35, %v935_v31  ;;  %v859_v38 = vsel %vm464_vm6, %v3179_v32, %v3199_v34  ;;  %v860_v40 = vsel %vm464_vm6, %v3180_v21, %v3200_v33  ;;  %v863_v54 = vsel %vm464_vm6, %v3199_v34, %v3179_v32 }
 0x27e   : > { %v3185_v46 = vunpack.i.h.bf16 %v3183_v39  ;;  %v3184_v47 = vunpack.i.l.bf16 %v3183_v39  ;;  %v3218_v48 = vpop.permute.xlu0 %3217  ;;  %v864_v55 = vsel %vm464_vm6, %v3200_v33, %v3180_v21  ;;  %v868_v11 = vsel %vm4194_vm9, %v859_v38, %v4441_v53 }
 0x27f   : > { %v3220_v50 = vunpack.i.h.bf16 %v3218_v48  ;;  %v3219_v51 = vunpack.i.l.bf16 %v3218_v48  ;;  %2756 = vmatpush1.bf16.msra.mxu1 %v2755_v41  ;;  %v870_v7 = vsel %vm4194_vm9, %v860_v40, %v4457_v63  ;;  %v867_v1 = vsel %vm4184_vm5, %v863_v54, %v4461_v2 }
 0x280   : > { %2758 = vmatprep.subr.bf16.mxu1 %v2757_v49  ;;  %v869_v16 = vsel %vm4184_vm5, %v864_v55, %v4469_v9  ;;  %v2765_v33 = vpack.c.bf16 %v870_v7, %v868_v11 }
 0x281   : > { %v3203_v56 = vpop.permute.xlu1 %3202  ;;  %v685_v57 = vsel %vm415_vm0, %v3184_v47, %v3219_v51  ;;  %v686_v62 = vsel %vm415_vm0, %v3185_v46, %v3220_v50  ;;  %v689_v6 = vsel %vm415_vm0, %v3219_v51, %v3184_v47  ;;  %v690_v8 = vsel %vm415_vm0, %v3220_v50, %v3185_v46 }
 0x282   : > { %v3223_v4 = vpop.permute.xlu0 %3222  ;;  %v2761_v5 = vpack.c.bf16 %v686_v62, %v685_v57  ;;  %v3205_v17 = vunpack.i.h.bf16 %v3203_v56  ;;  %v3204_v0 = vunpack.i.l.bf16 %v3203_v56  ;;  %v2763_v22 = vpack.c.bf16 %v690_v8, %v689_v6 }
 0x283   : > { %2760 = vmatpush1.bf16.msra.mxu1 %v2759_v52  ;;  %v3225_v19 = vunpack.i.h.bf16 %v3223_v4  ;;  %v3224_v20 = vunpack.i.l.bf16 %v3223_v4  ;;  %v2767_v36 = vpack.c.bf16 %v869_v16, %v867_v1 }
 0x284   : > { %2762 = vmatprep.subr.bf16.mxu1 %v2761_v5 }
 0x285   : > { %v3208_v21 = vpop.permute.xlu1 %3207  ;;  %v4485_v37 = vsel %vm453_vm4, %v3204_v0, %v3224_v20  ;;  %v4489_v39 = vsel %vm453_vm4, %v3205_v17, %v3225_v19  ;;  %v4493_v41 = vsel %vm453_vm4, %v3224_v20, %v3204_v0  ;;  %v4497_v46 = vsel %vm453_vm4, %v3225_v19, %v3205_v17 }
 0x286   : > { %v3210_v30 = vunpack.i.h.bf16 %v3208_v21  ;;  %v3209_v31 = vunpack.i.l.bf16 %v3208_v21  ;;  %v3228_v32 = vpop.permute.xlu0 %3227 }
 0x287   : > { %v3230_v34 = vunpack.i.h.bf16 %v3228_v32  ;;  %v3229_v35 = vunpack.i.l.bf16 %v3228_v32  ;;  %2764 = vmatpush1.bf16.msra.mxu1 %v2763_v22 }
 0x288   : > { %2766 = vmatprep.subr.bf16.mxu1 %v2765_v33 }
 0x289   : > { %v3213_v47 = vpop.permute.xlu1 %3212  ;;  %v861_v48 = vsel %vm464_vm6, %v3209_v31, %v3229_v35  ;;  %v862_v49 = vsel %vm464_vm6, %v3210_v30, %v3230_v34  ;;  %v865_v50 = vsel %vm464_vm6, %v3229_v35, %v3209_v31  ;;  %v866_v51 = vsel %vm464_vm6, %v3230_v34, %v3210_v30 }
 0x28a   : > { %v3215_v52 = vunpack.i.h.bf16 %v3213_v47  ;;  %v3214_v38 = vunpack.i.l.bf16 %v3213_v47  ;;  %v3233_v40 = vpop.permute.xlu0 %3232  ;;  %v872_v54 = vsel %vm4194_vm9, %v861_v48, %v4485_v37  ;;  %v874_v55 = vsel %vm4194_vm9, %v862_v49, %v4489_v39 }
 0x28b   : > { %v3235_v56 = vunpack.i.h.bf16 %v3233_v40  ;;  %v3234_v57 = vunpack.i.l.bf16 %v3233_v40  ;;  %2768 = vmatpush1.bf16.msra.mxu1 %v2767_v36  ;;  %v2769_v62 = vpack.c.bf16 %v874_v55, %v872_v54  ;;  %v871_v4 = vsel %vm4184_vm5, %v865_v50, %v4493_v41 }
 0x28c   : > { %v873_v5 = vsel %vm4184_vm5, %v866_v51, %v4497_v46 }
 0x28d   : > { %v3238_v6 = vpop.permute.xlu1 %3237  ;;  %2770 = vmatprep.subr.bf16.mxu1 %v2769_v62  ;;  %v2771_v8 = vpack.c.bf16 %v873_v5, %v871_v4  ;;  %v4521_v11 = vsel %vm493_vm8, %v3234_v57, %v3214_v38  ;;  %v4525_v7 = vsel %vm493_vm8, %v3235_v56, %v3215_v52  ;;  %v4529_v1 = vsel %vm493_vm8, %v3214_v38, %v3234_v57 }
 0x28e   : > { %v3240_v16 = vunpack.i.h.bf16 %v3238_v6  ;;  %v3239_v17 = vunpack.i.l.bf16 %v3238_v6  ;;  %v3243_v0 = vpop.permute.xlu0 %3242  ;;  %v972_v19 = vsel %vm4189_vm7, %v4521_v11, %v4357_v24  ;;  %v974_v20 = vsel %vm4189_vm7, %v4525_v7, %v4361_v25 }
 0x28f   : > { %v3245_v21 = vunpack.i.h.bf16 %v3243_v0  ;;  %v3244_v22 = vunpack.i.l.bf16 %v3243_v0  ;;  %2772 = vmatpush1.bf16.msra.mxu1 %v2771_v8  ;;  %v2773_v30 = vpack.c.bf16 %v974_v20, %v972_v19  ;;  %v4541_v31 = vsel %vm493_vm8, %v3215_v52, %v3235_v56 }
 0x290   : > { %v971_v32 = vsel %vm4179_vm3, %v4529_v1, %v4365_v27  ;;  %v973_v24 = vsel %vm4179_vm3, %v4541_v31, %v4369_v28  ;;  %v2781_v56 = vpack.c.bf16 %v4278_v45, %v4276_v44  ;;  %v2785_v4 = vpack.c.bf16 %v4292_v59, %v4297_v61 }
 0x291   : > { %v3248_v33 = vpop.permute.xlu1 %3247  ;;  %2774 = vmatprep.subr.bf16.mxu1 %v2773_v30  ;;  %v2775_v25 = vpack.c.bf16 %v973_v24, %v971_v32  ;;  %v4553_v34 = vsel %vm493_vm8, %v3244_v22, %v3239_v17  ;;  %v4557_v35 = vsel %vm493_vm8, %v3245_v21, %v3240_v16  ;;  %v4561_v36 = vsel %vm493_vm8, %v3239_v17, %v3244_v22 }
 0x292   : > { %v3250_v27 = vunpack.i.h.bf16 %v3248_v33  ;;  %v3249_v47 = vunpack.i.l.bf16 %v3248_v33  ;;  %v3253_v48 = vpop.permute.xlu0 %3252  ;;  %v976_v28 = vsel %vm4189_vm7, %v4553_v34, %v4406_v12  ;;  %v978_v49 = vsel %vm4189_vm7, %v4557_v35, %v4410_v13 }
 0x293   : > { %v3255_v50 = vunpack.i.h.bf16 %v3253_v48  ;;  %v3254_v51 = vunpack.i.l.bf16 %v3253_v48  ;;  %2776 = vmatpush1.bf16.msra.mxu1 %v2775_v25  ;;  %v2777_v52 = vpack.c.bf16 %v978_v49, %v976_v28  ;;  %v4573_v38 = vsel %vm493_vm8, %v3240_v16, %v3245_v21 }
 0x294   : > { %v975_v40 = vsel %vm4179_vm3, %v4561_v36, %v4414_v14  ;;  %v977_v12 = vsel %vm4179_vm3, %v4573_v38, %v4418_v15  ;;  %v2783_v15 = vpack.c.bf16 %v4274_v43, %v4272_v42 }
 0x295   : > { %v3258_v54 = vpop.permute.xlu1 %3257  ;;  %2778 = vmatprep.subr.bf16.mxu1 %v2777_v52  ;;  %v2779_v13 = vpack.c.bf16 %v977_v12, %v975_v40  ;;  %v4587_v57 = vsel %vm442_vm10, %v3254_v51, %v3249_v47  ;;  %v4591_v62 = vsel %vm442_vm10, %v3255_v50, %v3250_v27  ;;  %v4607_v0 = vsel %vm442_vm10, %v3249_v47, %v3254_v51 }
 0x296   : > { %v3268_v55 = vpop.permute.xlu0 %3267  ;;  %v828_v5 = vsel %vm4194_vm9, %v4441_v53, %v4587_v57  ;;  %v830_v6 = vsel %vm4194_vm9, %v4457_v63, %v4591_v62  ;;  %v4611_v19 = vsel %vm442_vm10, %v3250_v27, %v3255_v50  ;;  %v3260_v20 = vunpack.i.h.bf16 %v3258_v54 }
 0x297   : > { %2780 = vmatpush1.bf16.msra.mxu1 %v2779_v13  ;;  %v3259_v21 = vunpack.i.l.bf16 %v3258_v54  ;;  %v3270_v30 = vunpack.i.h.bf16 %v3268_v55  ;;  %v3269_v32 = vunpack.i.l.bf16 %v3268_v55  ;;  %v2787_v63 = vpack.c.bf16 %v4290_v58, %v4294_v60 }
 0x298   : > { %2782 = vmatprep.subr.bf16.mxu1 %v2781_v56  ;;  %v2789_v24 = vpack.c.bf16 %v830_v6, %v828_v5  ;;  %v827_v25 = vsel %vm4184_vm5, %v4461_v2, %v4607_v0  ;;  %v829_v27 = vsel %vm4184_vm5, %v4469_v9, %v4611_v19 }
 0x299   : > { %v3263_v14 = vpop.permute.xlu1 %3262  ;;  %v2791_v40 = vpack.c.bf16 %v829_v27, %v827_v25 }
 0x29a   : > { %v3265_v8 = vunpack.i.h.bf16 %v3263_v14  ;;  %v3264_v16 = vunpack.i.l.bf16 %v3263_v14  ;;  %v3283_v17 = vpop.permute.xlu0 %3282 }
 0x29b   : > { %v3285_v22 = vunpack.i.h.bf16 %v3283_v17  ;;  %v3284_v53 = vunpack.i.l.bf16 %v3283_v17  ;;  %2784 = vmatpush1.bf16.msra.mxu1 %v2783_v15 }
 0x29c   : > { %2786 = vmatprep.subr.bf16.mxu1 %v2785_v4  ;;  %v1007_v9 = vsel %vm504_vm12, %v3269_v32, %v3264_v16  ;;  %v1008_v50 = vsel %vm504_vm12, %v3270_v30, %v3265_v8  ;;  %v1003_v12 = vsel %vm504_vm12, %v3264_v16, %v3269_v32  ;;  %v1004_v54 = vsel %vm504_vm12, %v3265_v8, %v3270_v30 }
 0x29d   : > { %v3273_v33 = vpop.permute.xlu1 %3272  ;;  %v4625_v47 = vsel %vm442_vm10, %v3284_v53, %v3259_v21  ;;  %v4629_v48 = vsel %vm442_vm10, %v3285_v22, %v3260_v20  ;;  %v4635_v49 = vsel %vm442_vm10, %v3259_v21, %v3284_v53  ;;  %v4639_v2 = vsel %vm442_vm10, %v3260_v20, %v3285_v22 }
 0x29e   : > { %v4631_v28 = vpop.permute.xlu0 %3287  ;;  %v832_v51 = vsel %vm4194_vm9, %v4485_v37, %v4625_v47  ;;  %v834_v52 = vsel %vm4194_vm9, %v4489_v39, %v4629_v48  ;;  %v831_v55 = vsel %vm4184_vm5, %v4493_v41, %v4635_v49  ;;  %v833_v37 = vsel %vm4184_vm5, %v4497_v46, %v4639_v2 }
 0x29f   : > { %2788 = vmatpush1.bf16.msra.mxu1 %v2787_v63  ;;  %v1012_v39 = vsel %vm4189_vm7, %v1007_v9, %v4521_v11  ;;  %v1014_v56 = vsel %vm4189_vm7, %v1008_v50, %v4525_v7  ;;  %v3275_v14 = vunpack.i.h.bf16 %v3273_v33  ;;  %v3274_v15 = vunpack.i.l.bf16 %v3273_v33 }
 0x2a0   : > { %2790 = vmatprep.subr.bf16.mxu1 %v2789_v24  ;;  %v3290_v4 = vunpack.i.h.bf16 %v4631_v28  ;;  %v2793_v6 = vpack.c.bf16 %v834_v52, %v832_v51  ;;  %v3289_v41 = vunpack.i.l.bf16 %v4631_v28  ;;  %v1011_v46 = vsel %vm4179_vm3, %v1003_v12, %v4529_v1 }
 0x2a1   : > { %v3278_v13 = vpop.permute.xlu1 %3277  ;;  %v2795_v17 = vpack.c.bf16 %v833_v37, %v831_v55  ;;  %v2797_v20 = vpack.c.bf16 %v1014_v56, %v1012_v39  ;;  %v1013_v7 = vsel %vm4179_vm3, %v1004_v54, %v4541_v31 }
 0x2a2   : > { %v3298_v5 = vpop.permute.xlu0 %3297  ;;  %v3279_v11 = vunpack.i.l.bf16 %v3278_v13  ;;  %v3280_v25 = vunpack.i.h.bf16 %v3278_v13  ;;  %v2799_v9 = vpack.c.bf16 %v1013_v7, %v1011_v46 }
 0x2a3   : > { %v3300_v8 = vunpack.i.h.bf16 %v3298_v5  ;;  %v3299_v16 = vunpack.i.l.bf16 %v3298_v5  ;;  %2792 = vmatpush1.bf16.msra.mxu1 %v2791_v40 }
 0x2a4   : > { %2794 = vmatprep.subr.bf16.mxu1 %v2793_v6  ;;  %v728_v5 = vsel %vm426_vm11, %v3290_v4, %v3280_v25 }
 0x2a5   : > { %v1005_v21 = vsel %vm504_vm12, %v3274_v15, %v3299_v16  ;;  %v1006_v22 = vsel %vm504_vm12, %v3275_v14, %v3300_v8  ;;  %v1009_v53 = vsel %vm504_vm12, %v3299_v16, %v3274_v15  ;;  %v1010_v1 = vsel %vm504_vm12, %v3300_v8, %v3275_v14  ;;  %v3293_v30 = vpop.permute.xlu1 %3292 }
 0x2a6   : > { %v3295_v32 = vunpack.i.h.bf16 %v3293_v30  ;;  %v3294_v63 = vunpack.i.l.bf16 %v3293_v30  ;;  %v3303_v24 = vpop.permute.xlu0 %3302  ;;  %v1016_v31 = vsel %vm4189_vm7, %v1009_v53, %v4553_v34  ;;  %v1018_v33 = vsel %vm4189_vm7, %v1010_v1, %v4557_v35 }
 0x2a7   : > { %v3305_v27 = vunpack.i.h.bf16 %v3303_v24  ;;  %v3304_v28 = vunpack.i.l.bf16 %v3303_v24  ;;  %2796 = vmatpush1.bf16.msra.mxu1 %v2795_v17  ;;  %v2801_v50 = vpack.c.bf16 %v1018_v33, %v1016_v31  ;;  %v1015_v51 = vsel %vm4179_vm3, %v1005_v21, %v4561_v36 }
 0x2a8   : > { %2798 = vmatprep.subr.bf16.mxu1 %v2797_v20  ;;  %v1017_v52 = vsel %vm4179_vm3, %v1006_v22, %v4573_v38  ;;  %v727_v34 = vsel %vm426_vm11, %v3289_v41, %v3279_v11  ;;  %v723_v8 = vsel %vm426_vm11, %v3279_v11, %v3289_v41 }
 0x2a9   : > { %v755_v35 = vsel %vm435_vm13, %v3294_v63, %v3304_v28  ;;  %v756_v40 = vsel %vm435_vm13, %v3295_v32, %v3305_v27  ;;  %v759_v12 = vsel %vm435_vm13, %v3304_v28, %v3294_v63  ;;  %v760_v54 = vsel %vm435_vm13, %v3305_v27, %v3295_v32  ;;  %v3308_v36 = vpop.permute.xlu1 %3307 }
 0x2aa   : > { %v3310_v13 = vunpack.i.h.bf16 %v3308_v36  ;;  %v3309_v55 = vunpack.i.l.bf16 %v3308_v36  ;;  %v3318_v37 = vpop.permute.xlu0 %3317  ;;  %v788_v38 = vsel %vm4194_vm9, %v4587_v57, %v759_v12  ;;  %v790_v39 = vsel %vm4194_vm9, %v4591_v62, %v760_v54  ;;  %v1037_v12 = vld [vmem:[%s5847_s3 + $0x50] sm:$0xff]  ;;  %v1038_v54 = vld [vmem:[%s5847_s3 + $0x58] sm:$0xff]  ;;  %v1036_v36 = vld [vmem:[%s5847_s3 + $0x48] sm:$0xff] }
 0x2ab   : > { %v3320_v56 = vunpack.i.h.bf16 %v3318_v37  ;;  %v3319_v14 = vunpack.i.l.bf16 %v3318_v37  ;;  %2800 = vmatpush1.bf16.msra.mxu1 %v2799_v9  ;;  %v2813_v15 = vpack.c.bf16 %v790_v39, %v788_v38  ;;  %v787_v6 = vsel %vm4184_vm5, %v4607_v0, %v755_v35  ;;  %v1035_v35 = vld [vmem:[%s5847_s3 + $0x40] sm:$0xff] }
 0x2ac   : > { %2802 = vmatprep.subr.bf16.mxu1 %v2801_v50  ;;  %v789_v57 = vsel %vm4184_vm5, %v4611_v19, %v756_v40  ;;  %v724_v62 = vsel %vm426_vm11, %v3280_v25, %v3290_v4  ;;  %v2803_v46 = vpack.c.bf16 %v1017_v52, %v1015_v51  ;;  %v2805_v19 = vpack.c.bf16 %v728_v5, %v727_v34  ;;  %v1030_v52 = vld [vmem:[%s5847_s3 + $0x18] sm:$0xff]  ;;  %v1033_v40 = vld [vmem:[%s5847_s3 + $0x30] sm:$0xff] }
 0x2ad   : > { %v3313_v16 = vpop.permute.xlu1 %3312  ;;  %2814 = vmatprep.subr.bf16.mxu0 %v2813_v15  ;;  %v2815_v17 = vpack.c.bf16 %v789_v57, %v787_v6  ;;  %v729_v20 = vsel %vm426_vm11, %v3319_v14, %v3309_v55  ;;  %v730_v0 = vsel %vm426_vm11, %v3320_v56, %v3310_v13  ;;  %v2807_v4 = vpack.c.bf16 %v724_v62, %v723_v8  ;;  %v1034_v34 = vld [vmem:[%s5847_s3 + $0x38] sm:$0xff] }
 0x2ae   : > { %v3315_v7 = vunpack.i.h.bf16 %v3313_v16  ;;  %v3314_v21 = vunpack.i.l.bf16 %v3313_v16  ;;  %v3323_v22 = vpop.permute.xlu0 %3322  ;;  %v2809_v41 = vpack.c.bf16 %v730_v0, %v729_v20  ;;  %v725_v11 = vsel %vm426_vm11, %v3309_v55, %v3319_v14 }
 0x2af   : > { %v3325_v53 = vunpack.i.h.bf16 %v3323_v22  ;;  %v3324_v1 = vunpack.i.l.bf16 %v3323_v22  ;;  %2804 = vmatpush1.bf16.msra.mxu1 %v2803_v46  ;;  %2816 = vmatpush1.bf16.msra.mxu0 %v2815_v17  ;;  %v726_v30 = vsel %vm426_vm11, %v3310_v13, %v3320_v56 }
 0x2b0   : > { %2806 = vmatprep.subr.bf16.mxu1 %v2805_v19  ;;  %v2811_v51 = vpack.c.bf16 %v726_v30, %v725_v11 }
 0x2b1   : > { %v757_v32 = vsel %vm435_vm13, %v3314_v21, %v3324_v1  ;;  %v758_v63 = vsel %vm435_vm13, %v3315_v7, %v3325_v53  ;;  %v761_v24 = vsel %vm435_vm13, %v3324_v1, %v3314_v21  ;;  %v762_v31 = vsel %vm435_vm13, %v3325_v53, %v3315_v7 }
 0x2b2   : > { %v792_v33 = vsel %vm4194_vm9, %v4625_v47, %v761_v24  ;;  %v794_v25 = vsel %vm4194_vm9, %v4629_v48, %v762_v31  ;;  %v791_v27 = vsel %vm4184_vm5, %v4635_v49, %v757_v32  ;;  %v793_v28 = vsel %vm4184_vm5, %v4639_v2, %v758_v63  ;;  %v1029_v47 = vld [vmem:[%s5847_s3 + $0x10] sm:$0xff]  ;;  %v1027_v48 = vld [vmem:[%s5847_s3] sm:$0xff]  ;;  %v1032_v2 = vld [vmem:[%s5847_s3 + $0x28] sm:$0xff] }
 0x2b3   : > { %2808 = vmatpush1.bf16.msra.mxu1 %v2807_v4  ;;  %v2817_v9 = vpack.c.bf16 %v794_v25, %v792_v33  ;;  %v2819_v50 = vpack.c.bf16 %v793_v28, %v791_v27  ;;  %v1031_v49 = vld [vmem:[%s5847_s3 + $0x20] sm:$0xff]  ;;  %s3818_s3 = scalar_lea.vmem %s3817_s21, 512 }
 0x2b4   : > { %2810 = vmatprep.subr.bf16.mxu1 %v2809_v41 }
 0x2b5   : > { %2818 = vmatprep.subr.bf16.mxu0 %v2817_v9 }
 0x2b6   : > { %2820 = vmatpush1.bf16.msra.mxu0 %v2819_v50 }
 0x2b7   : > { %2812 = vmatpush1.bf16.msra.mxu1 %v2811_v51 }
 0x2b9   : > { %2717 = vmatmul.mubr.msk.f32.vlgmr.msra.gmra.mrb[8].mxu0 %vm1135_vm15, %v1029_v47 }
 0x2ba   : > { %1213 = vmatmul.mubr.f32.vlgmr.msra.gmra.mrb[0].mxu1 %v1027_v48  ;;  %1307 = vmatprep.mubr.f32.mxu0 %v3898_v3 }
 0x2bb   : > { %1218 = vmatprep.mubr.f32.mxu1 %v1031_v49 }
 0x2bd   : > { %2718 = vmatmul.mubr.msk.f32.gmra.mrb[10].mxu0 %vm1135_vm15, %v1032_v2 }
 0x2be   : > { %1219 = vmatmul.mubr.f32.gmra.mrb[2].mxu1 %v1030_v52  ;;  %1313 = vmatprep.mubr.f32.mxu0 %v3898_v3  ;;  %v1118_v13 = vpop.permute.xlu1 %1117 }
 0x2bf   : > { %1224 = vmatprep.mubr.f32.mxu1 %v1034_v34  ;;  %v1123_v15 = vpop.permute.xlu0 %1122 }
 0x2c1   : > { %2719 = vmatmul.mubr.msk.f32.gmra.mrb[12].mxu0 %vm1135_vm15, %v1035_v35 }
 0x2c2   : > { %1225 = vmatmul.mubr.f32.gmra.mrb[4].mxu1 %v1033_v40  ;;  %1319 = vmatprep.mubr.f32.mxu0 %v3898_v3  ;;  %v1128_v20 = vpop.permute.xlu1 %1127 }
 0x2c3   : > { %1230 = vmatprep.mubr.f32.mxu1 %v1037_v12  ;;  %v1133_v63 = vpop.permute.xlu0 %1132 }
 0x2c5   : > { %2720 = vmatmul.mubr.msk.f32.gmra.mrb[14].mxu0 %vm1135_vm15, %v1038_v54 }
 0x2c6   : > { %1231 = vmatmul.mubr.f32.gmra.mrb[6].mxu1 %v1036_v36 }
 0x38c   : > { %v1303_v55 = vpop.f32.mrb[8].mxu0 }
 0x38d   : > { %v1214_v37 = vpop.f32.mrb[0].mxu1  ;;  %v1305_v38 = vpop.f32.mrb[9].mxu0 }
 0x38e   : > { %v1215_v39 = vadd.f32 %v1214_v37, %v1118_v13  ;;  %v1216_v56 = vpop.f32.mrb[1].mxu1  ;;  %v1695_v37 = vld [vmem:[#allocation8 + $0x8] sm:$0xff] }
 0x38f   : > { %v1217_v14 = vadd.f32 %v1216_v56, %v1118_v13  ;;  %1878 = vmatprep.mubr.f32.mxu0 %v1695_v37  ;;  %v1780_v56 = vld [vmem:[%s5785_s6 + $0x10] sm:$0xff] }
 0x390   : > { %v1304_v5 = vadd.f32 %v1303_v55, %v1215_v39  ;;  %v1309_v6 = vpop.f32.mrb[10].mxu0  ;;  %v1779_v39 = vld [vmem:[%s5785_s6 + $0x8] sm:$0xff] }
 0x391   : > { %v1306_v57 = vadd.f32 %v1305_v38, %v1217_v14  ;;  %v1220_v8 = vpop.f32.mrb[2].mxu1  ;;  %v1311_v62 = vpop.f32.mrb[11].mxu0  ;;  %v1778_v38 = vld [vmem:[%s5785_s6] sm:$0xff]  ;;  %v1781_v14 = vld [vmem:[%s5785_s6 + $0x18] sm:$0xff] }
 0x392   : > { %v1221_v16 = vadd.f32 %v1220_v8, %v1123_v15  ;;  %v1222_v46 = vpop.f32.mrb[3].mxu1  ;;  %v1326_v53 = vmax.f32 %v1304_v5, 0.0 }
 0x393   : > { %v1223_v17 = vadd.f32 %v1222_v46, %v1123_v15  ;;  %v1327_v11 = vmax.f32 %v1306_v57, 0.0 }
 0x394   : > { %v1310_v0 = vadd.f32 %v1309_v6, %v1221_v16  ;;  %v1315_v7 = vpop.f32.mrb[12].mxu0 }
 0x395   : > { %v1312_v21 = vadd.f32 %v1311_v62, %v1223_v17  ;;  %v1226_v22 = vpop.f32.mrb[4].mxu1  ;;  %v1317_v19 = vpop.f32.mrb[13].mxu0 }
 0x396   : > { %v1328_v1 = vmax.f32 %v1310_v0, 0.0  ;;  %v1227_v4 = vadd.f32 %v1226_v22, %v1128_v20  ;;  %v1228_v41 = vpop.f32.mrb[5].mxu1 }
 0x397   : > { %v1329_v30 = vmax.f32 %v1312_v21, 0.0  ;;  %v1229_v32 = vadd.f32 %v1228_v41, %v1128_v20 }
 0x398   : > { %v1316_v24 = vadd.f32 %v1315_v7, %v1227_v4  ;;  %v3326_v31 = vpack.i.bf16 %v1328_v1, %v1326_v53  ;;  %v1321_v33 = vpop.f32.mrb[14].mxu0  ;;  %v4801_v12 = vpack.c.bf16 %v1328_v1, %v1326_v53 }
 0x399   : > { %v1318_v25 = vadd.f32 %v1317_v19, %v1229_v32  ;;  %v1232_v27 = vpop.f32.mrb[6].mxu1  ;;  %v3346_v28 = vpack.i.bf16 %v1329_v30, %v1327_v11  ;;  %v1323_v9 = vpop.f32.mrb[15].mxu0  ;;  %v4799_v40 = vpack.c.bf16 %v1329_v30, %v1327_v11 }
 0x39a   : > { %v1330_v50 = vmax.f32 %v1316_v24, 0.0  ;;  %v1233_v51 = vadd.f32 %v1232_v27, %v1133_v63  ;;  %v1234_v47 = vpop.f32.mrb[7].mxu1  ;;  %3327 = vrot.lane.b32.xlu1 %v3326_v31, %s5849_s19 }
 0x39b   : > { %v1331_v48 = vmax.f32 %v1318_v25, 0.0  ;;  %v1235_v49 = vadd.f32 %v1234_v47, %v1133_v63  ;;  %3347 = vrot.lane.b32.xlu0 %v3346_v28, %s5849_s19 }
 0x39c   : > { %v1322_v2 = vadd.f32 %v1321_v33, %v1233_v51 }
 0x39d   : > { %v1324_v52 = vadd.f32 %v1323_v9, %v1235_v49 }
 0x39e   : > { %v1332_v34 = vmax.f32 %v1322_v2, 0.0  ;;  %3332 = vrot.lane.b32.xlu1 %v3326_v31, %s5850_s20 }
 0x39f   : > { %v1333_v35 = vmax.f32 %v1324_v52, 0.0  ;;  %3352 = vrot.lane.b32.xlu0 %v3346_v28, %s5850_s20 }
 0x3a0   : > { %v3366_v54 = vpack.i.bf16 %v1332_v34, %v1330_v50  ;;  %v4807_v55 = vpack.c.bf16 %v1332_v34, %v1330_v50 }
 0x3a1   : > { %v3386_v36 = vpack.i.bf16 %v1333_v35, %v1331_v48  ;;  %v4805_v13 = vpack.c.bf16 %v1333_v35, %v1331_v48 }
 0x3a2   : > { %3337 = vrot.lane.b32.xlu1 %v3326_v31, %s5851_s0 }
 0x3a3   : > { %3357 = vrot.lane.b32.xlu0 %v3346_v28, %s5851_s0 }
 0x3a6   : > { %3342 = vrot.lane.b32.xlu1 %v3326_v31, %s5841_s14 }
 0x3a7   : > { %3362 = vrot.lane.b32.xlu0 %v3346_v28, %s5841_s14 }
 0x3aa   : > { %3367 = vrot.lane.b32.xlu1 %v3366_v54, %s5849_s19 }
 0x3ab   : > { %3387 = vrot.lane.b32.xlu0 %v3386_v36, %s5849_s19 }
 0x3ae   : > { %3372 = vrot.lane.b32.xlu1 %v3366_v54, %s5850_s20 }
 0x3af   : > { %3392 = vrot.lane.b32.xlu0 %v3386_v36, %s5850_s20 }
 0x3b2   : > { %3377 = vrot.lane.b32.xlu1 %v3326_v31, %s5842_s15 }
 0x3b3   : > { %3397 = vrot.lane.b32.xlu0 %v3346_v28, %s5842_s15 }
 0x3b6   : > { %3382 = vrot.lane.b32.xlu1 %v3366_v54, %s5851_s0 }
 0x3b7   : > { %3417 = vrot.lane.b32.xlu0 %v3386_v36, %s5851_s0 }
 0x3ba   : > { %3402 = vrot.lane.b32.xlu1 %v3366_v54, %s5841_s14 }
 0x3bb   : > { %3422 = vrot.lane.b32.xlu0 %v3386_v36, %s5841_s14 }
 0x3be   : > { %3407 = vrot.lane.b32.xlu1 %v3366_v54, %s5842_s15 }
 0x3bf   : > { %3427 = vrot.lane.b32.xlu0 %v3386_v36, %s5842_s15 }
 0x3c2   : > { %3412 = vrot.lane.b32.xlu1 %v3326_v31, %s5843_s23 }
 0x3c3   : > { %3432 = vrot.lane.b32.xlu0 %v3346_v28, %s5843_s23 }
 0x3c6   : > { %3437 = vrot.lane.b32.xlu1 %v3366_v54, %s5843_s23 }
 0x3c7   : > { %3442 = vrot.lane.b32.xlu0 %v3386_v36, %s5843_s23 }
 0x3ca   : > { %3447 = vrot.lane.b32.xlu1 %v3326_v31, %s5844_s25 }
 0x3cb   : > { %3452 = vrot.lane.b32.xlu0 %v3346_v28, %s5844_s25 }
 0x3ce   : > { %3457 = vrot.lane.b32.xlu1 %v3366_v54, %s5844_s25 }
 0x3cf   : > { %3467 = vrot.lane.b32.xlu0 %v3386_v36, %s5844_s25 }
 0x3d2   : > { %3462 = vrot.lane.b32.xlu1 %v3326_v31, %s5845_s22 }
 0x3d3   : > { %3472 = vrot.lane.b32.xlu0 %v3346_v28, %s5845_s22 }
 0x3d6   : > { %3477 = vrot.lane.b32.xlu1 %v3366_v54, %s5845_s22 }
 0x3d7   : > { %3482 = vrot.lane.b32.xlu0 %v3386_v36, %s5845_s22 }
 0x3da   : > { %3487 = vrot.lane.b32.xlu1 %v3326_v31, %s5846_s29 }
 0x3db   : > { %3492 = vrot.lane.b32.xlu0 %v3346_v28, %s5846_s29 }
 0x3de   : > { %3497 = vrot.lane.b32.xlu1 %v3366_v54, %s5846_s29 }
 0x3df   : > { %3502 = vrot.lane.b32.xlu0 %v3386_v36, %s5846_s29 }
 0x3e2   : > { %3507 = vrot.lane.b32.xlu1 %v3326_v31, %s3901_s18 }
 0x3e3   : > { %3512 = vrot.lane.b32.xlu0 %v3346_v28, %s3901_s18 }
 0x3e6   : > { %3517 = vrot.lane.b32.xlu1 %v3366_v54, %s3901_s18 }
 0x3e7   : > { %3522 = vrot.lane.b32.xlu0 %v3386_v36, %s3901_s18 }
 0x3ea   : > { %1784 = vperm.xlu1 %3125, %v1778_v38  }
 0x3eb   : > { %1789 = vperm.xlu0 %3124, %v1779_v39  }
 0x3ee   : > { %1794 = vperm.xlu1 %3125, %v1780_v56  }
 0x3ef   : > { %1799 = vperm.xlu0 %3124, %v1781_v14  }
 0x40c   : > { %v3328_v15 = vpop.permute.xlu1 %3327 }
 0x40d   : > { %v3348_v5 = vpop.permute.xlu0 %3347  ;;  %v3330_v6 = vunpack.i.h.bf16 %v3328_v15  ;;  %v3329_v57 = vunpack.i.l.bf16 %v3328_v15 }
 0x40e   : > { %v3350_v8 = vunpack.i.h.bf16 %v3348_v5  ;;  %v3349_v62 = vunpack.i.l.bf16 %v3348_v5 }
 0x410   : > { %v3333_v16 = vpop.permute.xlu1 %3332  ;;  %v1566_v21 = vsel %vm475_vm1, %v3329_v57, %v3349_v62  ;;  %v1567_v22 = vsel %vm475_vm1, %v3330_v6, %v3350_v8  ;;  %v1570_v11 = vsel %vm475_vm1, %v3349_v62, %v3329_v57  ;;  %v1571_v24 = vsel %vm475_vm1, %v3350_v8, %v3330_v6 }
 0x411   : > { %v3335_v46 = vunpack.i.h.bf16 %v3333_v16  ;;  %v3334_v17 = vunpack.i.l.bf16 %v3333_v16  ;;  %v3353_v20 = vpop.permute.xlu0 %3352 }
 0x412   : > { %v3355_v0 = vunpack.i.h.bf16 %v3353_v20  ;;  %v3354_v7 = vunpack.i.l.bf16 %v3353_v20 }
 0x414   : > { %v4861_v19 = vsel %vm482_vm2, %v3334_v17, %v3354_v7  ;;  %v4865_v53 = vsel %vm482_vm2, %v3335_v46, %v3355_v0  ;;  %v4869_v1 = vsel %vm482_vm2, %v3354_v7, %v3334_v17  ;;  %v4873_v4 = vsel %vm482_vm2, %v3355_v0, %v3335_v46  ;;  %v3338_v41 = vpop.permute.xlu1 %3337 }
 0x415   : > { %v3358_v30 = vpop.permute.xlu0 %3357  ;;  %v1599_v32 = vsel %vm4189_vm7, %v4861_v19, %v1566_v21  ;;  %v1601_v63 = vsel %vm4189_vm7, %v4865_v53, %v1567_v22  ;;  %v1598_v33 = vsel %vm4179_vm3, %v4869_v1, %v1570_v11  ;;  %v1600_v25 = vsel %vm4179_vm3, %v4873_v4, %v1571_v24 }
 0x416   : > { %v2821_v31 = vpack.c.bf16 %v1601_v63, %v1599_v32  ;;  %v2823_v28 = vpack.c.bf16 %v1600_v25, %v1598_v33  ;;  %v3340_v47 = vunpack.i.h.bf16 %v3338_v41  ;;  %v3339_v48 = vunpack.i.l.bf16 %v3338_v41 }
 0x417   : > { %v3360_v49 = vunpack.i.h.bf16 %v3358_v30  ;;  %v3359_v2 = vunpack.i.l.bf16 %v3358_v30 }
 0x418   : > { %v4891_v27 = vpop.permute.xlu1 %3342  ;;  %2822 = vmatprep.subr.bf16.mxu0 %v2821_v31 }
 0x419   : > { %v4893_v9 = vpop.permute.xlu0 %3362  ;;  %2824 = vmatpush1.bf16.msra.mxu0 %v2823_v28  ;;  %v1350_v15 = vsel %vm415_vm0, %v3339_v48, %v3359_v2  ;;  %v1351_v5 = vsel %vm415_vm0, %v3340_v47, %v3360_v49  ;;  %v3344_v31 = vunpack.i.l.bf16 %v4891_v27  ;;  %v1354_v28 = vsel %vm415_vm0, %v3359_v2, %v3339_v48 }
 0x41a   : > { %v3364_v33 = vunpack.i.l.bf16 %v4893_v9 }
 0x41c   : > { %v3368_v50 = vpop.permute.xlu1 %3367 }
 0x41d   : > { %v3388_v51 = vpop.permute.xlu0 %3387  ;;  %v3370_v52 = vunpack.i.h.bf16 %v3368_v50  ;;  %v3369_v34 = vunpack.i.l.bf16 %v3368_v50  ;;  %v1355_v50 = vsel %vm415_vm0, %v3360_v49, %v3340_v47 }
 0x41e   : > { %v3390_v35 = vunpack.i.h.bf16 %v3388_v51  ;;  %v3389_v54 = vunpack.i.l.bf16 %v3388_v51  ;;  %v3345_v51 = vunpack.i.h.bf16 %v4891_v27  ;;  %v2831_v47 = vpack.c.bf16 %v1355_v50, %v1354_v28 }
 0x41f   : > { %v4949_v27 = vsel %vm453_vm4, %v3344_v31, %v3364_v33 }
 0x420   : > { %v3373_v36 = vpop.permute.xlu1 %3372  ;;  %v1568_v6 = vsel %vm475_vm1, %v3369_v34, %v3389_v54  ;;  %v1569_v57 = vsel %vm475_vm1, %v3370_v52, %v3390_v35  ;;  %v1572_v8 = vsel %vm475_vm1, %v3389_v54, %v3369_v34  ;;  %v1573_v62 = vsel %vm475_vm1, %v3390_v35, %v3370_v52 }
 0x421   : > { %v3375_v37 = vunpack.i.h.bf16 %v3373_v36  ;;  %v3374_v38 = vunpack.i.l.bf16 %v3373_v36  ;;  %v3393_v39 = vpop.permute.xlu0 %3392  ;;  %v3365_v52 = vunpack.i.h.bf16 %v4893_v9 }
 0x422   : > { %v3395_v56 = vunpack.i.h.bf16 %v3393_v39  ;;  %v3394_v14 = vunpack.i.l.bf16 %v3393_v39 }
 0x424   : > { %v4909_v16 = vsel %vm482_vm2, %v3374_v38, %v3394_v14  ;;  %v4913_v46 = vsel %vm482_vm2, %v3375_v37, %v3395_v56  ;;  %v4917_v17 = vsel %vm482_vm2, %v3394_v14, %v3374_v38  ;;  %v4921_v20 = vsel %vm482_vm2, %v3395_v56, %v3375_v37  ;;  %v3378_v0 = vpop.permute.xlu1 %3377 }
 0x425   : > { %v3380_v7 = vunpack.i.h.bf16 %v3378_v0  ;;  %v3379_v21 = vunpack.i.l.bf16 %v3378_v0  ;;  %v3398_v22 = vpop.permute.xlu0 %3397  ;;  %v1603_v41 = vsel %vm4189_vm7, %v4909_v16, %v1568_v6  ;;  %v1605_v11 = vsel %vm4189_vm7, %v4913_v46, %v1569_v57 }
 0x426   : > { %v3400_v30 = vunpack.i.h.bf16 %v3398_v22  ;;  %v3399_v32 = vunpack.i.l.bf16 %v3398_v22  ;;  %v2825_v63 = vpack.c.bf16 %v1605_v11, %v1603_v41  ;;  %v1602_v24 = vsel %vm4179_vm3, %v4917_v17, %v1572_v8 }
 0x427   : > { %v1604_v25 = vsel %vm4179_vm3, %v4921_v20, %v1573_v62  ;;  %v2829_v38 = vpack.c.bf16 %v1351_v5, %v1350_v15  ;;  %v4957_v14 = vsel %vm453_vm4, %v3345_v51, %v3365_v52  ;;  %v4961_v15 = vsel %vm453_vm4, %v3364_v33, %v3344_v31 }
 0x428   : > { %v3383_v34 = vpop.permute.xlu1 %3382  ;;  %2826 = vmatprep.subr.bf16.mxu0 %v2825_v63  ;;  %v2827_v37 = vpack.c.bf16 %v1604_v25, %v1602_v24  ;;  %v1526_v39 = vsel %vm464_vm6, %v3379_v21, %v3399_v32  ;;  %v1527_v48 = vsel %vm464_vm6, %v3380_v7, %v3400_v30  ;;  %v1530_v9 = vsel %vm464_vm6, %v3399_v32, %v3379_v21 }
 0x429   : > { %v3385_v35 = vunpack.i.h.bf16 %v3383_v34  ;;  %v3384_v54 = vunpack.i.l.bf16 %v3383_v34  ;;  %v3418_v36 = vpop.permute.xlu0 %3417  ;;  %v1531_v49 = vsel %vm464_vm6, %v3400_v30, %v3380_v7  ;;  %v4969_v8 = vsel %vm453_vm4, %v3365_v52, %v3345_v51 }
 0x42a   : > { %v3420_v2 = vunpack.i.h.bf16 %v3418_v36  ;;  %v3419_v56 = vunpack.i.l.bf16 %v3418_v36  ;;  %2828 = vmatpush1.bf16.msra.mxu0 %v2827_v37  ;;  %v1535_v7 = vsel %vm4194_vm9, %v1526_v39, %v4949_v27  ;;  %v1537_v21 = vsel %vm4194_vm9, %v1527_v48, %v4957_v14 }
 0x42b   : > { %2830 = vmatprep.subr.bf16.mxu0 %v2829_v38  ;;  %v1534_v11 = vsel %vm4184_vm5, %v1530_v9, %v4961_v15  ;;  %v1536_v30 = vsel %vm4184_vm5, %v1531_v49, %v4969_v8 }
 0x42c   : > { %v3403_v5 = vpop.permute.xlu1 %3402  ;;  %v1352_v6 = vsel %vm415_vm0, %v3384_v54, %v3419_v56  ;;  %v1353_v57 = vsel %vm415_vm0, %v3385_v35, %v3420_v2  ;;  %v1356_v22 = vsel %vm415_vm0, %v3419_v56, %v3384_v54  ;;  %v1357_v41 = vsel %vm415_vm0, %v3420_v2, %v3385_v35 }
 0x42d   : > { %v3423_v62 = vpop.permute.xlu0 %3422  ;;  %v2833_v0 = vpack.c.bf16 %v1353_v57, %v1352_v6  ;;  %v3405_v32 = vunpack.i.h.bf16 %v3403_v5  ;;  %v3404_v63 = vunpack.i.l.bf16 %v3403_v5  ;;  %v2835_v25 = vpack.c.bf16 %v1357_v41, %v1356_v22 }
 0x42e   : > { %v3425_v24 = vunpack.i.h.bf16 %v3423_v62  ;;  %v3424_v31 = vunpack.i.l.bf16 %v3423_v62  ;;  %2832 = vmatpush1.bf16.msra.mxu0 %v2831_v47  ;;  %v2837_v35 = vpack.c.bf16 %v1537_v21, %v1535_v7  ;;  %v2839_v54 = vpack.c.bf16 %v1536_v30, %v1534_v11 }
 0x42f   : > { %2834 = vmatprep.subr.bf16.mxu0 %v2833_v0 }
 0x430   : > { %v3408_v33 = vpop.permute.xlu1 %3407  ;;  %v4989_v36 = vsel %vm453_vm4, %v3404_v63, %v3424_v31  ;;  %v4993_v37 = vsel %vm453_vm4, %v3405_v32, %v3425_v24  ;;  %v4997_v38 = vsel %vm453_vm4, %v3424_v31, %v3404_v63  ;;  %v5001_v39 = vsel %vm453_vm4, %v3425_v24, %v3405_v32 }
 0x431   : > { %v3410_v28 = vunpack.i.h.bf16 %v3408_v33  ;;  %v3409_v50 = vunpack.i.l.bf16 %v3408_v33  ;;  %v3428_v51 = vpop.permute.xlu0 %3427 }
 0x432   : > { %v3430_v52 = vunpack.i.h.bf16 %v3428_v51  ;;  %v3429_v34 = vunpack.i.l.bf16 %v3428_v51  ;;  %2836 = vmatpush1.bf16.msra.mxu0 %v2835_v25 }
 0x433   : > { %2838 = vmatprep.subr.bf16.mxu0 %v2837_v35 }
 0x434   : > { %v1528_v48 = vsel %vm464_vm6, %v3409_v50, %v3429_v34  ;;  %v1529_v2 = vsel %vm464_vm6, %v3410_v28, %v3430_v52  ;;  %v1532_v56 = vsel %vm464_vm6, %v3429_v34, %v3409_v50  ;;  %v1533_v47 = vsel %vm464_vm6, %v3430_v52, %v3410_v28  ;;  %v3413_v9 = vpop.permute.xlu1 %3412 }
 0x435   : > { %v3415_v49 = vunpack.i.h.bf16 %v3413_v9  ;;  %v3414_v5 = vunpack.i.l.bf16 %v3413_v9  ;;  %v3433_v6 = vpop.permute.xlu0 %3432  ;;  %v1539_v57 = vsel %vm4194_vm9, %v1528_v48, %v4989_v36  ;;  %v1541_v62 = vsel %vm4194_vm9, %v1529_v2, %v4993_v37 }
 0x436   : > { %v3435_v0 = vunpack.i.h.bf16 %v3433_v6  ;;  %v3434_v7 = vunpack.i.l.bf16 %v3433_v6  ;;  %v2841_v21 = vpack.c.bf16 %v1541_v62, %v1539_v57  ;;  %v1538_v22 = vsel %vm4184_vm5, %v1532_v56, %v4997_v38  ;;  %2840 = vmatpush1.bf16.msra.mxu0 %v2839_v54 }
 0x437   : > { %v1540_v41 = vsel %vm4184_vm5, %v1533_v47, %v5001_v39 }
 0x438   : > { %v5025_v11 = vsel %vm493_vm8, %v3414_v5, %v3434_v7  ;;  %v5029_v30 = vsel %vm493_vm8, %v3415_v49, %v3435_v0  ;;  %v5033_v32 = vsel %vm493_vm8, %v3434_v7, %v3414_v5  ;;  %v5037_v63 = vsel %vm493_vm8, %v3435_v0, %v3415_v49  ;;  %v3438_v24 = vpop.permute.xlu1 %3437  ;;  %2842 = vmatprep.subr.bf16.mxu0 %v2841_v21 }
 0x439   : > { %v3440_v31 = vunpack.i.h.bf16 %v3438_v24  ;;  %v3439_v33 = vunpack.i.l.bf16 %v3438_v24  ;;  %v3443_v25 = vpop.permute.xlu0 %3442  ;;  %v2843_v28 = vpack.c.bf16 %v1540_v41, %v1538_v22  ;;  %v1639_v50 = vsel %vm4189_vm7, %v5033_v32, %v4861_v19 }
 0x43a   : > { %v3445_v51 = vunpack.i.h.bf16 %v3443_v25  ;;  %v3444_v52 = vunpack.i.l.bf16 %v3443_v25  ;;  %v1641_v34 = vsel %vm4189_vm7, %v5037_v63, %v4865_v53  ;;  %v1638_v35 = vsel %vm4179_vm3, %v5025_v11, %v4869_v1 }
 0x43b   : > { %2844 = vmatpush1.bf16.msra.mxu0 %v2843_v28  ;;  %v2845_v54 = vpack.c.bf16 %v1641_v34, %v1639_v50  ;;  %v1640_v48 = vsel %vm4179_vm3, %v5029_v30, %v4873_v4 }
 0x43c   : > { %v5057_v19 = vsel %vm493_vm8, %v3439_v33, %v3444_v52  ;;  %v5061_v2 = vsel %vm493_vm8, %v3440_v31, %v3445_v51  ;;  %v5065_v53 = vsel %vm493_vm8, %v3444_v52, %v3439_v33  ;;  %v5069_v1 = vsel %vm493_vm8, %v3445_v51, %v3440_v31  ;;  %v3448_v56 = vpop.permute.xlu1 %3447 }
 0x43d   : > { %v3450_v47 = vunpack.i.h.bf16 %v3448_v56  ;;  %v3449_v9 = vunpack.i.l.bf16 %v3448_v56  ;;  %2846 = vmatprep.subr.bf16.mxu0 %v2845_v54  ;;  %v3453_v4 = vpop.permute.xlu0 %3452  ;;  %v2847_v49 = vpack.c.bf16 %v1640_v48, %v1638_v35  ;;  %v1643_v5 = vsel %vm4189_vm7, %v5065_v53, %v4909_v16 }
 0x43e   : > { %v3455_v6 = vunpack.i.h.bf16 %v3453_v4  ;;  %v3454_v57 = vunpack.i.l.bf16 %v3453_v4  ;;  %v1645_v62 = vsel %vm4189_vm7, %v5069_v1, %v4913_v46  ;;  %v1642_v0 = vsel %vm4179_vm3, %v5057_v19, %v4917_v17 }
 0x43f   : > { %2848 = vmatpush1.bf16.msra.mxu0 %v2847_v49  ;;  %v2849_v7 = vpack.c.bf16 %v1645_v62, %v1643_v5  ;;  %v1644_v21 = vsel %vm4179_vm3, %v5061_v2, %v4921_v20 }
 0x440   : > { %v3458_v16 = vpop.permute.xlu1 %3457  ;;  %v2851_v41 = vpack.c.bf16 %v1644_v21, %v1642_v0  ;;  %v5089_v24 = vsel %vm442_vm10, %v3454_v57, %v3449_v9  ;;  %v5093_v46 = vsel %vm442_vm10, %v3455_v6, %v3450_v47  ;;  %v5098_v28 = vsel %vm442_vm10, %v3449_v9, %v3454_v57 }
 0x441   : > { %2850 = vmatprep.subr.bf16.mxu0 %v2849_v7  ;;  %v3468_v22 = vpop.permute.xlu0 %3467  ;;  %v3460_v17 = vunpack.i.h.bf16 %v3458_v16  ;;  %v3459_v31 = vunpack.i.l.bf16 %v3458_v16  ;;  %v5102_v50 = vsel %vm442_vm10, %v3450_v47, %v3455_v6  ;;  %v1495_v52 = vsel %vm4194_vm9, %v4949_v27, %v5089_v24 }
 0x442   : > { %v3470_v33 = vunpack.i.h.bf16 %v3468_v22  ;;  %v3469_v25 = vunpack.i.l.bf16 %v3468_v22 }
 0x443   : > { %2852 = vmatpush1.bf16.msra.mxu0 %v2851_v41 }
 0x444   : > { %2854 = vmatprep.subr.bf16.mxu0 %v4799_v40  ;;  %v3463_v20 = vpop.permute.xlu1 %3462  ;;  %v1497_v40 = vsel %vm4194_vm9, %v4957_v14, %v5093_v46  ;;  %v5114_v56 = vsel %vm442_vm10, %v3469_v25, %v3459_v31  ;;  %v5118_v47 = vsel %vm442_vm10, %v3470_v33, %v3460_v17  ;;  %v1494_v14 = vsel %vm4184_vm5, %v4961_v15, %v5098_v28 }
 0x445   : > { %v3473_v51 = vpop.permute.xlu0 %3472  ;;  %v3465_v34 = vunpack.i.h.bf16 %v3463_v20  ;;  %v3464_v35 = vunpack.i.l.bf16 %v3463_v20  ;;  %v5128_v9 = vsel %vm442_vm10, %v3459_v31, %v3469_v25  ;;  %v5132_v4 = vsel %vm442_vm10, %v3460_v17, %v3470_v33 }
 0x446   : > { %v3475_v54 = vunpack.i.h.bf16 %v3473_v51  ;;  %v3474_v48 = vunpack.i.l.bf16 %v3473_v51  ;;  %v2861_v5 = vpack.c.bf16 %v1497_v40, %v1495_v52  ;;  %v1499_v6 = vsel %vm4194_vm9, %v4989_v36, %v5114_v56 }
 0x447   : > { %2856 = vmatpush1.bf16.msra.mxu0 %v4801_v12  ;;  %v1496_v12 = vsel %vm4184_vm5, %v4969_v8, %v5102_v50  ;;  %v1501_v57 = vsel %vm4194_vm9, %v4993_v37, %v5118_v47  ;;  %v1498_v22 = vsel %vm4184_vm5, %v4997_v38, %v5128_v9  ;;  %v1500_v36 = vsel %vm4184_vm5, %v5001_v39, %v5132_v4 }
 0x448   : > { %2858 = vmatprep.subr.bf16.mxu0 %v4805_v13  ;;  %v3478_v27 = vpop.permute.xlu1 %3477  ;;  %v1674_v13 = vsel %vm504_vm12, %v3474_v48, %v3464_v35  ;;  %v1675_v15 = vsel %vm504_vm12, %v3475_v54, %v3465_v34  ;;  %v2863_v16 = vpack.c.bf16 %v1496_v12, %v1494_v14  ;;  %v1670_v37 = vsel %vm504_vm12, %v3464_v35, %v3474_v48 }
 0x449   : > { %v3483_v49 = vpop.permute.xlu0 %3482  ;;  %v3480_v62 = vunpack.i.h.bf16 %v3478_v27  ;;  %v3479_v0 = vunpack.i.l.bf16 %v3478_v27  ;;  %v1671_v41 = vsel %vm504_vm12, %v3465_v34, %v3475_v54  ;;  %v1679_v17 = vsel %vm4189_vm7, %v1674_v13, %v5033_v32 }
 0x44a   : > { %v3485_v7 = vunpack.i.h.bf16 %v3483_v49  ;;  %v3484_v8 = vunpack.i.l.bf16 %v3483_v49  ;;  %v1681_v38 = vsel %vm4189_vm7, %v1675_v15, %v5037_v63  ;;  %v2865_v31 = vpack.c.bf16 %v1501_v57, %v1499_v6 }
 0x44b   : > { %2860 = vmatpush1.bf16.msra.mxu0 %v4807_v55  ;;  %v2867_v20 = vpack.c.bf16 %v1500_v36, %v1498_v22  ;;  %v2869_v51 = vpack.c.bf16 %v1681_v38, %v1679_v17  ;;  %v1678_v32 = vsel %vm4179_vm3, %v1670_v37, %v5025_v11  ;;  %v1680_v63 = vsel %vm4179_vm3, %v1671_v41, %v5029_v30 }
 0x44c   : > { %2862 = vmatprep.subr.bf16.mxu0 %v2861_v5  ;;  %v3488_v21 = vpop.permute.xlu1 %3487  ;;  %v1676_v33 = vsel %vm504_vm12, %v3484_v8, %v3479_v0  ;;  %v1677_v39 = vsel %vm504_vm12, %v3485_v7, %v3480_v62  ;;  %v1672_v52 = vsel %vm504_vm12, %v3479_v0, %v3484_v8  ;;  %v1673_v40 = vsel %vm504_vm12, %v3480_v62, %v3485_v7 }
 0x44d   : > { %v3493_v55 = vpop.permute.xlu0 %3492  ;;  %v3489_v34 = vunpack.i.l.bf16 %v3488_v21  ;;  %v3490_v48 = vunpack.i.h.bf16 %v3488_v21  ;;  %v1683_v14 = vsel %vm4189_vm7, %v1676_v33, %v5065_v53  ;;  %v1685_v11 = vsel %vm4189_vm7, %v1677_v39, %v5069_v1 }
 0x44e   : > { %v3494_v35 = vunpack.i.l.bf16 %v3493_v55  ;;  %v3495_v27 = vunpack.i.h.bf16 %v3493_v55  ;;  %v2871_v49 = vpack.c.bf16 %v1680_v63, %v1678_v32  ;;  %v1682_v5 = vsel %vm4179_vm3, %v1672_v52, %v5057_v19 }
 0x44f   : > { %2864 = vmatpush1.bf16.msra.mxu0 %v2863_v16  ;;  %v2873_v15 = vpack.c.bf16 %v1685_v11, %v1683_v14  ;;  %v1684_v6 = vsel %vm4179_vm3, %v1673_v40, %v5061_v2 }
 0x450   : > { %2866 = vmatprep.subr.bf16.mxu0 %v2865_v31  ;;  %v3498_v25 = vpop.permute.xlu1 %3497  ;;  %v1394_v53 = vsel %vm426_vm11, %v3494_v35, %v3489_v34  ;;  %v1395_v0 = vsel %vm426_vm11, %v3495_v27, %v3490_v48  ;;  %v2875_v36 = vpack.c.bf16 %v1684_v6, %v1682_v5  ;;  %v1390_v2 = vsel %vm426_vm11, %v3489_v34, %v3494_v35  ;;  %v1694_v5 = vld [vmem:[#allocation8] sm:$0xff] }
 0x451   : > { %v3503_v54 = vpop.permute.xlu0 %3502  ;;  %v3500_v12 = vunpack.i.h.bf16 %v3498_v25  ;;  %v3499_v57 = vunpack.i.l.bf16 %v3498_v25  ;;  %v1391_v37 = vsel %vm426_vm11, %v3490_v48, %v3495_v27  ;;  %v2877_v41 = vpack.c.bf16 %v1395_v0, %v1394_v53  ;;  %v1703_v0 = vld [vmem:[#allocation8 + $0x48] sm:$0xff] }
 0x452   : > { %v3505_v1 = vunpack.i.h.bf16 %v3503_v54  ;;  %v3504_v62 = vunpack.i.l.bf16 %v3503_v54 }
 0x453   : > { %2868 = vmatpush1.bf16.msra.mxu0 %v2867_v20 }
 0x454   : > { %2870 = vmatprep.subr.bf16.mxu0 %v2869_v51  ;;  %v3508_v30 = vpop.permute.xlu1 %3507  ;;  %v1396_v38 = vsel %vm426_vm11, %v3504_v62, %v3499_v57  ;;  %v1397_v31 = vsel %vm426_vm11, %v3505_v1, %v3500_v12  ;;  %v2879_v51 = vpack.c.bf16 %v1391_v37, %v1390_v2  ;;  %v1392_v32 = vsel %vm426_vm11, %v3499_v57, %v3504_v62  ;;  %v1701_v57 = vld [vmem:[#allocation8 + $0x38] sm:$0xff]  ;;  %v1704_v62 = vld [vmem:[#allocation8 + $0x50] sm:$0xff] }
 0x455   : > { %v3513_v13 = vpop.permute.xlu0 %3512  ;;  %v3510_v7 = vunpack.i.h.bf16 %v3508_v30  ;;  %v3509_v8 = vunpack.i.l.bf16 %v3508_v30  ;;  %v1393_v63 = vsel %vm426_vm11, %v3500_v12, %v3505_v1  ;;  %v2881_v52 = vpack.c.bf16 %v1397_v31, %v1396_v38 }
 0x456   : > { %v3515_v21 = vunpack.i.h.bf16 %v3513_v13  ;;  %v3514_v19 = vunpack.i.l.bf16 %v3513_v13  ;;  %v2883_v14 = vpack.c.bf16 %v1393_v63, %v1392_v32  ;;  %v1698_v13 = vld [vmem:[#allocation8 + $0x20] sm:$0xff] }
 0x457   : > { %2872 = vmatpush1.bf16.msra.mxu0 %v2871_v49 }
 0x458   : > { %2874 = vmatprep.subr.bf16.mxu0 %v2873_v15  ;;  %v3518_v16 = vpop.permute.xlu1 %3517  ;;  %v1426_v55 = vsel %vm435_vm13, %v3514_v19, %v3509_v8  ;;  %v1427_v17 = vsel %vm435_vm13, %v3515_v21, %v3510_v7  ;;  %v1422_v40 = vsel %vm435_vm13, %v3509_v8, %v3514_v19  ;;  %v1423_v34 = vsel %vm435_vm13, %v3510_v7, %v3515_v21  ;;  %v1702_v7 = vld [vmem:[#allocation8 + $0x40] sm:$0xff]  ;;  %v1705_v8 = vld [vmem:[#allocation8 + $0x58] sm:$0xff] }
 0x459   : > { %v3523_v22 = vpop.permute.xlu0 %3522  ;;  %v3520_v33 = vunpack.i.h.bf16 %v3518_v16  ;;  %v3519_v39 = vunpack.i.l.bf16 %v3518_v16  ;;  %v1455_v35 = vsel %vm4194_vm9, %v5089_v24, %v1426_v55  ;;  %v1457_v54 = vsel %vm4194_vm9, %v5093_v46, %v1427_v17 }
 0x45a   : > { %v3525_v25 = vunpack.i.h.bf16 %v3523_v22  ;;  %v3524_v20 = vunpack.i.l.bf16 %v3523_v22  ;;  %v2885_v11 = vpack.c.bf16 %v1457_v54, %v1455_v35  ;;  %v1454_v30 = vsel %vm4184_vm5, %v5098_v28, %v1422_v40 }
 0x45b   : > { %2876 = vmatpush1.bf16.msra.mxu0 %v2875_v36  ;;  %v1456_v24 = vsel %vm4184_vm5, %v5102_v50, %v1423_v34 }
 0x45c   : > { %2878 = vmatprep.subr.bf16.mxu0 %v2877_v41  ;;  %v1428_v48 = vsel %vm435_vm13, %v3524_v20, %v3519_v39  ;;  %v1429_v27 = vsel %vm435_vm13, %v3525_v25, %v3520_v33  ;;  %v1424_v46 = vsel %vm435_vm13, %v3519_v39, %v3524_v20  ;;  %v1425_v49 = vsel %vm435_vm13, %v3520_v33, %v3525_v25 }
 0x45d   : > { %v1459_v12 = vsel %vm4194_vm9, %v5114_v56, %v1428_v48  ;;  %v1461_v28 = vsel %vm4194_vm9, %v5118_v47, %v1429_v27  ;;  %v2887_v15 = vpack.c.bf16 %v1456_v24, %v1454_v30  ;;  %v1458_v6 = vsel %vm4184_vm5, %v5128_v9, %v1424_v46  ;;  %v1697_v56 = vld [vmem:[#allocation8 + $0x18] sm:$0xff]  ;;  %v1700_v47 = vld [vmem:[#allocation8 + $0x30] sm:$0xff] }
 0x45e   : > { %v2889_v50 = vpack.c.bf16 %v1461_v28, %v1459_v12  ;;  %v1460_v53 = vsel %vm4184_vm5, %v5132_v4, %v1425_v49  ;;  %v1696_v9 = vld [vmem:[#allocation8 + $0x10] sm:$0xff]  ;;  %v1699_v4 = vld [vmem:[#allocation8 + $0x28] sm:$0xff] }
 0x45f   : > { %2880 = vmatpush1.bf16.msra.mxu0 %v2879_v51  ;;  %v2891_v1 = vpack.c.bf16 %v1460_v53, %v1458_v6 }
 0x460   : > { %2882 = vmatprep.subr.bf16.mxu0 %v2881_v52 }
 0x463   : > { %2884 = vmatpush1.bf16.msra.mxu0 %v2883_v14 }
 0x464   : > { %2886 = vmatprep.subr.bf16.mxu0 %v2885_v11 }
 0x466   : > { %1879 = vmatmul.mubr.f32.vlgmr.msra.gmra.mrb[16].mxu0 %v1694_v5 }
 0x467   : > { %2888 = vmatpush1.bf16.msra.mxu0 %v2887_v15  ;;  %1884 = vmatprep.mubr.f32.mxu0 %v1698_v13  ;;  %v2443_v15 = vld [vmem:[%s5787_s8] sm:$0xff] }
 0x468   : > { %2890 = vmatprep.subr.bf16.mxu0 %v2889_v50 }
 0x469   : > { %v1785_v21 = vpop.permute.xlu1 %1784 }
 0x46a   : > { %1885 = vmatmul.mubr.f32.gmra.mrb[18].mxu0 %v1697_v56  ;;  %v1790_v2 = vpop.permute.xlu0 %1789 }
 0x46b   : > { %2892 = vmatpush1.bf16.msra.mxu0 %v2891_v1  ;;  %1890 = vmatprep.mubr.f32.mxu0 %v1701_v57 }
 0x46d   : > { %v1795_v39 = vpop.permute.xlu1 %1794 }
 0x46e   : > { %1891 = vmatmul.mubr.f32.gmra.mrb[20].mxu0 %v1700_v47  ;;  %v1800_v54 = vpop.permute.xlu0 %1799 }
 0x46f   : > { %1896 = vmatprep.mubr.f32.mxu0 %v1704_v62 }
 0x472   : > { %1897 = vmatmul.mubr.f32.gmra.mrb[22].mxu0 %v1703_v0 }
 0x473   : > { %1967 = vmatprep.mubr.f32.mxu0 %v3898_v3 }
 0x476   : > { %2721 = vmatmul.mubr.msk.f32.vlgmr.msra.gmra.mrb[16].mxu0 %vm1135_vm15, %v1696_v9 }
 0x477   : > { %1973 = vmatprep.mubr.f32.mxu0 %v3898_v3 }
 0x47a   : > { %2722 = vmatmul.mubr.msk.f32.gmra.mrb[18].mxu0 %vm1135_vm15, %v1699_v4 }
 0x47b   : > { %1979 = vmatprep.mubr.f32.mxu0 %v3898_v3 }
 0x47e   : > { %2723 = vmatmul.mubr.msk.f32.gmra.mrb[20].mxu0 %vm1135_vm15, %v1702_v7 }
 0x47f   : > { %1985 = vmatprep.mubr.f32.mxu0 %v3898_v3 }
 0x482   : > { %2724 = vmatmul.mubr.msk.f32.gmra.mrb[22].mxu0 %vm1135_vm15, %v1705_v8 }
 0x483   : > { %2587 = vmatprep.mubr.f32.mxu0 %v3898_v3 }
 0x549   : > { %v1969_v19 = vpop.f32.mrb[16].mxu0 }
 0x54a   : > { %v2981_v16 = vadd.f32 %v1969_v19, %v1785_v21  ;;  %v1971_v22 = vpop.f32.mrb[17].mxu0 }
 0x54b   : > { %v2982_v36 = vadd.f32 %v1971_v22, %v1785_v21 }
 0x54c   : > { %v1992_v41 = vadd.f32 %v2981_v16, %v4272_v42 }
 0x54d   : > { %v1975_v37 = vpop.f32.mrb[18].mxu0  ;;  %v1993_v38 = vadd.f32 %v2982_v36, %v4276_v44 }
 0x54e   : > { %v2983_v55 = vadd.f32 %v1975_v37, %v1790_v2  ;;  %v1977_v17 = vpop.f32.mrb[19].mxu0  ;;  %v2000_v20 = vmax.f32 %v1992_v41, 0.0 }
 0x54f   : > { %v2984_v31 = vadd.f32 %v1977_v17, %v1790_v2  ;;  %v2001_v52 = vmax.f32 %v1993_v38, 0.0 }
 0x550   : > { %v1994_v33 = vadd.f32 %v2983_v55, %v4274_v43 }
 0x551   : > { %v1995_v25 = vadd.f32 %v2984_v31, %v4278_v45  ;;  %v1981_v3 = vpop.f32.mrb[20].mxu0 }
 0x552   : > { %v2002_v51 = vmax.f32 %v1994_v33, 0.0  ;;  %v2985_v32 = vadd.f32 %v1981_v3, %v1795_v39  ;;  %v1983_v63 = vpop.f32.mrb[21].mxu0 }
 0x553   : > { %v2003_v40 = vmax.f32 %v1995_v25, 0.0  ;;  %v2986_v34 = vadd.f32 %v1983_v63, %v1795_v39 }
 0x554   : > { %v1996_v42 = vadd.f32 %v2985_v32, %v4294_v60  ;;  %v3526_v35 = vpack.i.bf16 %v2002_v51, %v2000_v20  ;;  %v5274_v5 = vpack.c.bf16 %v2002_v51, %v2000_v20 }
 0x555   : > { %v1997_v44 = vadd.f32 %v2986_v34, %v4297_v61  ;;  %v1987_v48 = vpop.f32.mrb[22].mxu0  ;;  %v3546_v27 = vpack.i.bf16 %v2003_v40, %v2001_v52  ;;  %v5272_v61 = vpack.c.bf16 %v2003_v40, %v2001_v52 }
 0x556   : > { %v2004_v43 = vmax.f32 %v1996_v42, 0.0  ;;  %v2987_v14 = vadd.f32 %v1987_v48, %v1800_v54  ;;  %v1989_v11 = vpop.f32.mrb[23].mxu0  ;;  %3527 = vrot.lane.b32.xlu1 %v3526_v35, %s5849_s19 }
 0x557   : > { %v2005_v45 = vmax.f32 %v1997_v44, 0.0  ;;  %v2988_v30 = vadd.f32 %v1989_v11, %v1800_v54  ;;  %3547 = vrot.lane.b32.xlu0 %v3546_v27, %s5849_s19 }
 0x558   : > { %v1998_v24 = vadd.f32 %v2987_v14, %v4290_v58 }
 0x559   : > { %v1999_v46 = vadd.f32 %v2988_v30, %v4292_v59  ;;  %v2369_v59 = vld [vmem:[%s5786_s7 + $0x8] sm:$0xff] }
 0x55a   : > { %v2006_v60 = vmax.f32 %v1998_v24, 0.0  ;;  %3532 = vrot.lane.b32.xlu1 %v3526_v35, %s5850_s20  ;;  %2516 = vmatprep.mubr.f32.mxu1 %v2369_v59 }
 0x55b   : > { %v2007_v49 = vmax.f32 %v1999_v46, 0.0  ;;  %3552 = vrot.lane.b32.xlu0 %v3546_v27, %s5850_s20 }
 0x55c   : > { %v3566_v12 = vpack.i.bf16 %v2006_v60, %v2004_v43  ;;  %v5280_v58 = vpack.c.bf16 %v2006_v60, %v2004_v43 }
 0x55d   : > { %v3586_v28 = vpack.i.bf16 %v2007_v49, %v2005_v45  ;;  %v5278_v13 = vpack.c.bf16 %v2007_v49, %v2005_v45 }
 0x55e   : > { %3537 = vrot.lane.b32.xlu1 %v3526_v35, %s5851_s0 }
 0x55f   : > { %3557 = vrot.lane.b32.xlu0 %v3546_v27, %s5851_s0 }
 0x562   : > { %3542 = vrot.lane.b32.xlu1 %v3526_v35, %s5841_s14 }
 0x563   : > { %3562 = vrot.lane.b32.xlu0 %v3546_v27, %s5841_s14 }
 0x566   : > { %3567 = vrot.lane.b32.xlu1 %v3566_v12, %s5849_s19 }
 0x567   : > { %3587 = vrot.lane.b32.xlu0 %v3586_v28, %s5849_s19 }
 0x56a   : > { %3572 = vrot.lane.b32.xlu1 %v3566_v12, %s5850_s20 }
 0x56b   : > { %3592 = vrot.lane.b32.xlu0 %v3586_v28, %s5850_s20 }
 0x56e   : > { %3577 = vrot.lane.b32.xlu1 %v3526_v35, %s5842_s15 }
 0x56f   : > { %3597 = vrot.lane.b32.xlu0 %v3546_v27, %s5842_s15 }
 0x572   : > { %3582 = vrot.lane.b32.xlu1 %v3566_v12, %s5851_s0 }
 0x573   : > { %3617 = vrot.lane.b32.xlu0 %v3586_v28, %s5851_s0 }
 0x576   : > { %3602 = vrot.lane.b32.xlu1 %v3566_v12, %s5841_s14 }
 0x577   : > { %3622 = vrot.lane.b32.xlu0 %v3586_v28, %s5841_s14 }
 0x57a   : > { %3607 = vrot.lane.b32.xlu1 %v3566_v12, %s5842_s15 }
 0x57b   : > { %3627 = vrot.lane.b32.xlu0 %v3586_v28, %s5842_s15 }
 0x57e   : > { %3612 = vrot.lane.b32.xlu1 %v3526_v35, %s5843_s23 }
 0x57f   : > { %3632 = vrot.lane.b32.xlu0 %v3546_v27, %s5843_s23 }
 0x582   : > { %3637 = vrot.lane.b32.xlu1 %v3566_v12, %s5843_s23 }
 0x583   : > { %3642 = vrot.lane.b32.xlu0 %v3586_v28, %s5843_s23 }
 0x586   : > { %3647 = vrot.lane.b32.xlu1 %v3526_v35, %s5844_s25 }
 0x587   : > { %3652 = vrot.lane.b32.xlu0 %v3546_v27, %s5844_s25 }
 0x58a   : > { %3657 = vrot.lane.b32.xlu1 %v3566_v12, %s5844_s25 }
 0x58b   : > { %3667 = vrot.lane.b32.xlu0 %v3546_v27, %s5845_s22 }
 0x58e   : > { %3662 = vrot.lane.b32.xlu1 %v3526_v35, %s5845_s22 }
 0x58f   : > { %3682 = vrot.lane.b32.xlu0 %v3586_v28, %s5844_s25 }
 0x592   : > { %3672 = vrot.lane.b32.xlu1 %v3566_v12, %s5845_s22 }
 0x593   : > { %3687 = vrot.lane.b32.xlu0 %v3546_v27, %s5846_s29 }
 0x596   : > { %3677 = vrot.lane.b32.xlu1 %v3526_v35, %s5846_s29 }
 0x597   : > { %3697 = vrot.lane.b32.xlu0 %v3586_v28, %s5845_s22  ;;  %s2732_s22 = sshll.u32 %s3975_s13, 8 }
 0x598   : > { %s5735_s2 = scalar_lea.hbm %s5788_s9, %s2732_s22 }
 0x59a   : > { %3692 = vrot.lane.b32.xlu1 %v3526_v35, %s3901_s18 }
 0x59b   : > { %3702 = vrot.lane.b32.xlu0 %v3546_v27, %s3901_s18 }
 0x59e   : > { %3707 = vrot.lane.b32.xlu1 %v3566_v12, %s5846_s29 }
 0x59f   : > { %3717 = vrot.lane.b32.xlu0 %v3586_v28, %s5846_s29  ;;  %s5852_s29 = sshll.u32 %s4123_s26, 4 }
 0x5a0   : > { %s377_s19 = scalar_lea.vmem [#allocation9], %s5852_s29 }
 0x5a1   : > { %s2611_s20 = sshll.u32 %s377_s19, 4  ;;  %s5737_s20 = int_to_ptr.vmem [resolvable:$true] %s2611_s20 }
 0x5a2   : > { %3712 = vrot.lane.b32.xlu1 %v3566_v12, %s3901_s18  ;;  %s3812_s13 = scalar_lea.vmem %s5737_s20, 256  ;;  %p3819_p5 = scmp.lt.s32.totalorder %s5737_s20, %s3817_s21 }
 0x5a3   : > { %3722 = vrot.lane.b32.xlu0 %v3586_v28, %s3901_s18  ;;  %p3813_p11 = scmp.ne.s32.totalorder %s5737_s20, %s3812_s13  ;;  %p3820_p9 = scmp.lt.s32.totalorder %s3818_s3, %s3812_s13 }
 0x5a5   : > { %p3814_p1 = pnand %p3813_p11, %p5853_p0  ;;  %p3821_p12 = por %p3820_p9, %p3819_p5 }
 0x5a6   : > { %2446 = vperm.xlu1 %3125, %v2443_v15  }
 0x5a7   : > { %p3815_p3 = pneg %p3814_p1 }
 0x5a9   : > { %p3822_p2 = pnand %p3821_p12, %p3815_p3 }
 0x5c8   : > { %v3528_v50 = vpop.permute.xlu1 %3527 }
 0x5c9   : > { %v3548_v6 = vpop.permute.xlu0 %3547  ;;  %v3530_v53 = vunpack.i.h.bf16 %v3528_v50  ;;  %v3529_v56 = vunpack.i.l.bf16 %v3528_v50 }
 0x5ca   : > { %v3550_v57 = vunpack.i.h.bf16 %v3548_v6  ;;  %v3549_v1 = vunpack.i.l.bf16 %v3548_v6 }
 0x5cc   : > { %v3533_v47 = vpop.permute.xlu1 %3532  ;;  %v2240_v8 = vsel %vm475_vm1, %v3529_v56, %v3549_v1  ;;  %v2241_v21 = vsel %vm475_vm1, %v3530_v53, %v3550_v57  ;;  %v2244_v37 = vsel %vm475_vm1, %v3549_v1, %v3529_v56  ;;  %v2245_v38 = vsel %vm475_vm1, %v3550_v57, %v3530_v53 }
 0x5cd   : > { %v3535_v62 = vunpack.i.h.bf16 %v3533_v47  ;;  %v3534_v0 = vunpack.i.l.bf16 %v3533_v47  ;;  %v3553_v9 = vpop.permute.xlu0 %3552 }
 0x5ce   : > { %v3555_v4 = vunpack.i.h.bf16 %v3553_v9  ;;  %v3554_v7 = vunpack.i.l.bf16 %v3553_v9 }
 0x5d0   : > { %v5328_v19 = vsel %vm482_vm2, %v3534_v0, %v3554_v7  ;;  %v5332_v16 = vsel %vm482_vm2, %v3535_v62, %v3555_v4  ;;  %v5336_v22 = vsel %vm482_vm2, %v3554_v7, %v3534_v0  ;;  %v5340_v36 = vsel %vm482_vm2, %v3555_v4, %v3535_v62  ;;  %v3538_v2 = vpop.permute.xlu1 %3537 }
 0x5d1   : > { %v3558_v41 = vpop.permute.xlu0 %3557  ;;  %v2273_v55 = vsel %vm4189_vm7, %v5328_v19, %v2240_v8  ;;  %v2275_v17 = vsel %vm4189_vm7, %v5332_v16, %v2241_v21  ;;  %v2272_v33 = vsel %vm4179_vm3, %v5336_v22, %v2244_v37  ;;  %v2274_v39 = vsel %vm4179_vm3, %v5340_v36, %v2245_v38 }
 0x5d2   : > { %v2893_v31 = vpack.c.bf16 %v2275_v17, %v2273_v55  ;;  %v2895_v3 = vpack.c.bf16 %v2274_v39, %v2272_v33  ;;  %v3540_v63 = vunpack.i.h.bf16 %v3538_v2  ;;  %v3539_v52 = vunpack.i.l.bf16 %v3538_v2 }
 0x5d3   : > { %v3560_v40 = vunpack.i.h.bf16 %v3558_v41  ;;  %v3559_v34 = vunpack.i.l.bf16 %v3558_v41 }
 0x5d4   : > { %v5358_v25 = vpop.permute.xlu1 %3542  ;;  %2894 = vmatprep.subr.bf16.mxu1 %v2893_v31 }
 0x5d5   : > { %v5360_v20 = vpop.permute.xlu0 %3562  ;;  %2896 = vmatpush1.bf16.msra.mxu1 %v2895_v3  ;;  %v2024_v30 = vsel %vm415_vm0, %v3539_v52, %v3559_v34  ;;  %v2025_v24 = vsel %vm415_vm0, %v3540_v63, %v3560_v40  ;;  %v3544_v7 = vunpack.i.l.bf16 %v5358_v25  ;;  %v2028_v2 = vsel %vm415_vm0, %v3559_v34, %v3539_v52 }
 0x5d6   : > { %v3564_v8 = vunpack.i.l.bf16 %v5360_v20  ;;  %v2029_v37 = vsel %vm415_vm0, %v3560_v40, %v3540_v63  ;;  %v3545_v41 = vunpack.i.h.bf16 %v5358_v25  ;;  %v3565_v55 = vunpack.i.h.bf16 %v5360_v20 }
 0x5d7   : > { %v2901_v3 = vpack.c.bf16 %v2025_v24, %v2024_v30  ;;  %v2903_v63 = vpack.c.bf16 %v2029_v37, %v2028_v2 }
 0x5d8   : > { %v3568_v51 = vpop.permute.xlu1 %3567  ;;  %v5416_v25 = vsel %vm453_vm4, %v3544_v7, %v3564_v8 }
 0x5d9   : > { %v3588_v32 = vpop.permute.xlu0 %3587  ;;  %v3570_v42 = vunpack.i.h.bf16 %v3568_v51  ;;  %v3569_v35 = vunpack.i.l.bf16 %v3568_v51 }
 0x5da   : > { %v3590_v54 = vunpack.i.h.bf16 %v3588_v32  ;;  %v3589_v44 = vunpack.i.l.bf16 %v3588_v32 }
 0x5dc   : > { %v3573_v48 = vpop.permute.xlu1 %3572  ;;  %v2242_v46 = vsel %vm475_vm1, %v3569_v35, %v3589_v44  ;;  %v2243_v60 = vsel %vm475_vm1, %v3570_v42, %v3590_v54  ;;  %v2246_v49 = vsel %vm475_vm1, %v3589_v44, %v3569_v35  ;;  %v2247_v12 = vsel %vm475_vm1, %v3590_v54, %v3570_v42 }
 0x5dd   : > { %v3575_v27 = vunpack.i.h.bf16 %v3573_v48  ;;  %v3574_v43 = vunpack.i.l.bf16 %v3573_v48  ;;  %v3593_v14 = vpop.permute.xlu0 %3592  ;;  %v5424_v42 = vsel %vm453_vm4, %v3545_v41, %v3565_v55  ;;  %v5428_v35 = vsel %vm453_vm4, %v3564_v8, %v3544_v7 }
 0x5de   : > { %v3595_v11 = vunpack.i.h.bf16 %v3593_v14  ;;  %v3594_v45 = vunpack.i.l.bf16 %v3593_v14 }
 0x5e0   : > { %v5376_v28 = vsel %vm482_vm2, %v3574_v43, %v3594_v45  ;;  %v5380_v59 = vsel %vm482_vm2, %v3575_v27, %v3595_v11  ;;  %v5384_v15 = vsel %vm482_vm2, %v3594_v45, %v3574_v43  ;;  %v5388_v50 = vsel %vm482_vm2, %v3595_v11, %v3575_v27  ;;  %v3578_v6 = vpop.permute.xlu1 %3577 }
 0x5e1   : > { %v3580_v53 = vunpack.i.h.bf16 %v3578_v6  ;;  %v3579_v56 = vunpack.i.l.bf16 %v3578_v6  ;;  %v3598_v57 = vpop.permute.xlu0 %3597  ;;  %v2277_v1 = vsel %vm4189_vm7, %v5376_v28, %v2242_v46  ;;  %v2279_v47 = vsel %vm4189_vm7, %v5380_v59, %v2243_v60 }
 0x5e2   : > { %v3600_v62 = vunpack.i.h.bf16 %v3598_v57  ;;  %v3599_v0 = vunpack.i.l.bf16 %v3598_v57  ;;  %v2897_v9 = vpack.c.bf16 %v2279_v47, %v2277_v1  ;;  %v2276_v4 = vsel %vm4179_vm3, %v5384_v15, %v2246_v49 }
 0x5e3   : > { %v2278_v21 = vsel %vm4179_vm3, %v5388_v50, %v2247_v12  ;;  %v5436_v27 = vsel %vm453_vm4, %v3565_v55, %v3545_v41 }
 0x5e4   : > { %v3583_v17 = vpop.permute.xlu1 %3582  ;;  %2898 = vmatprep.subr.bf16.mxu1 %v2897_v9  ;;  %v2899_v39 = vpack.c.bf16 %v2278_v21, %v2276_v4  ;;  %v2200_v51 = vsel %vm464_vm6, %v3579_v56, %v3599_v0  ;;  %v2201_v32 = vsel %vm464_vm6, %v3580_v53, %v3600_v62  ;;  %v2204_v20 = vsel %vm464_vm6, %v3599_v0, %v3579_v56 }
 0x5e5   : > { %v3585_v38 = vunpack.i.h.bf16 %v3583_v17  ;;  %v3584_v31 = vunpack.i.l.bf16 %v3583_v17  ;;  %v3618_v33 = vpop.permute.xlu0 %3617  ;;  %v2205_v40 = vsel %vm464_vm6, %v3600_v62, %v3580_v53  ;;  %v2209_v11 = vsel %vm4194_vm9, %v2200_v51, %v5416_v25 }
 0x5e6   : > { %v3620_v52 = vunpack.i.h.bf16 %v3618_v33  ;;  %v3619_v34 = vunpack.i.l.bf16 %v3618_v33  ;;  %2900 = vmatpush1.bf16.msra.mxu1 %v2899_v39  ;;  %v2211_v45 = vsel %vm4194_vm9, %v2201_v32, %v5424_v42  ;;  %v2208_v46 = vsel %vm4184_vm5, %v2204_v20, %v5428_v35 }
 0x5e7   : > { %2902 = vmatprep.subr.bf16.mxu1 %v2901_v3  ;;  %v2210_v60 = vsel %vm4184_vm5, %v2205_v40, %v5436_v27  ;;  %v2909_v4 = vpack.c.bf16 %v2211_v45, %v2209_v11 }
 0x5e8   : > { %v3603_v54 = vpop.permute.xlu1 %3602  ;;  %v2026_v44 = vsel %vm415_vm0, %v3584_v31, %v3619_v34  ;;  %v2027_v48 = vsel %vm415_vm0, %v3585_v38, %v3620_v52  ;;  %v2030_v30 = vsel %vm415_vm0, %v3619_v34, %v3584_v31  ;;  %v2031_v24 = vsel %vm415_vm0, %v3620_v52, %v3585_v38 }
 0x5e9   : > { %v3623_v43 = vpop.permute.xlu0 %3622  ;;  %v2905_v14 = vpack.c.bf16 %v2027_v48, %v2026_v44  ;;  %v3605_v49 = vunpack.i.h.bf16 %v3603_v54  ;;  %v3604_v12 = vunpack.i.l.bf16 %v3603_v54  ;;  %v2907_v57 = vpack.c.bf16 %v2031_v24, %v2030_v30 }
 0x5ea   : > { %v3625_v6 = vunpack.i.h.bf16 %v3623_v43  ;;  %v3624_v53 = vunpack.i.l.bf16 %v3623_v43  ;;  %2904 = vmatpush1.bf16.msra.mxu1 %v2903_v63  ;;  %v2911_v7 = vpack.c.bf16 %v2210_v60, %v2208_v46 }
 0x5eb   : > { %2906 = vmatprep.subr.bf16.mxu1 %v2905_v14 }
 0x5ec   : > { %v3608_v56 = vpop.permute.xlu1 %3607  ;;  %v5456_v8 = vsel %vm453_vm4, %v3604_v12, %v3624_v53  ;;  %v5460_v21 = vsel %vm453_vm4, %v3605_v49, %v3625_v6  ;;  %v5464_v2 = vsel %vm453_vm4, %v3624_v53, %v3604_v12  ;;  %v5468_v37 = vsel %vm453_vm4, %v3625_v6, %v3605_v49 }
 0x5ed   : > { %v3610_v1 = vunpack.i.h.bf16 %v3608_v56  ;;  %v3609_v47 = vunpack.i.l.bf16 %v3608_v56  ;;  %v3628_v62 = vpop.permute.xlu0 %3627 }
 0x5ee   : > { %v3630_v0 = vunpack.i.h.bf16 %v3628_v62  ;;  %v3629_v9 = vunpack.i.l.bf16 %v3628_v62  ;;  %2908 = vmatpush1.bf16.msra.mxu1 %v2907_v57 }
 0x5ef   : > { %2910 = vmatprep.subr.bf16.mxu1 %v2909_v4 }
 0x5f0   : > { %v2202_v41 = vsel %vm464_vm6, %v3609_v47, %v3629_v9  ;;  %v2203_v55 = vsel %vm464_vm6, %v3610_v1, %v3630_v0  ;;  %v2206_v17 = vsel %vm464_vm6, %v3629_v9, %v3609_v47  ;;  %v2207_v38 = vsel %vm464_vm6, %v3630_v0, %v3610_v1  ;;  %v3613_v31 = vpop.permute.xlu1 %3612 }
 0x5f1   : > { %v3615_v33 = vunpack.i.h.bf16 %v3613_v31  ;;  %v3614_v39 = vunpack.i.l.bf16 %v3613_v31  ;;  %v3633_v3 = vpop.permute.xlu0 %3632  ;;  %v2213_v51 = vsel %vm4194_vm9, %v2202_v41, %v5456_v8  ;;  %v2215_v32 = vsel %vm4194_vm9, %v2203_v55, %v5460_v21 }
 0x5f2   : > { %v3635_v52 = vunpack.i.h.bf16 %v3633_v3  ;;  %v3634_v34 = vunpack.i.l.bf16 %v3633_v3  ;;  %v2913_v63 = vpack.c.bf16 %v2215_v32, %v2213_v51  ;;  %v2212_v20 = vsel %vm4184_vm5, %v2206_v17, %v5464_v2  ;;  %2912 = vmatpush1.bf16.msra.mxu1 %v2911_v7 }
 0x5f3   : > { %v2214_v40 = vsel %vm4184_vm5, %v2207_v38, %v5468_v37 }
 0x5f4   : > { %v5492_v54 = vsel %vm493_vm8, %v3614_v39, %v3634_v34  ;;  %v5496_v44 = vsel %vm493_vm8, %v3615_v33, %v3635_v52  ;;  %v5500_v48 = vsel %vm493_vm8, %v3634_v34, %v3614_v39  ;;  %v5504_v43 = vsel %vm493_vm8, %v3635_v52, %v3615_v33  ;;  %v3638_v14 = vpop.permute.xlu1 %3637  ;;  %2914 = vmatprep.subr.bf16.mxu1 %v2913_v63 }
 0x5f5   : > { %v3640_v11 = vunpack.i.h.bf16 %v3638_v14  ;;  %v3639_v45 = vunpack.i.l.bf16 %v3638_v14  ;;  %v3643_v30 = vpop.permute.xlu0 %3642  ;;  %v2915_v24 = vpack.c.bf16 %v2214_v40, %v2212_v20  ;;  %v2313_v46 = vsel %vm4189_vm7, %v5500_v48, %v5328_v19 }
 0x5f6   : > { %v3645_v60 = vunpack.i.h.bf16 %v3643_v30  ;;  %v3644_v49 = vunpack.i.l.bf16 %v3643_v30  ;;  %v2315_v12 = vsel %vm4189_vm7, %v5504_v43, %v5332_v16  ;;  %v2312_v6 = vsel %vm4179_vm3, %v5492_v54, %v5336_v22 }
 0x5f7   : > { %2916 = vmatpush1.bf16.msra.mxu1 %v2915_v24  ;;  %v2917_v53 = vpack.c.bf16 %v2315_v12, %v2313_v46  ;;  %v2314_v56 = vsel %vm4179_vm3, %v5496_v44, %v5340_v36 }
 0x5f8   : > { %v5524_v19 = vsel %vm493_vm8, %v3639_v45, %v3644_v49  ;;  %v5528_v57 = vsel %vm493_vm8, %v3640_v11, %v3645_v60  ;;  %v5532_v16 = vsel %vm493_vm8, %v3644_v49, %v3639_v45  ;;  %v5536_v22 = vsel %vm493_vm8, %v3645_v60, %v3640_v11  ;;  %v3648_v1 = vpop.permute.xlu1 %3647 }
 0x5f9   : > { %v3650_v47 = vunpack.i.h.bf16 %v3648_v1  ;;  %v3649_v62 = vunpack.i.l.bf16 %v3648_v1  ;;  %2918 = vmatprep.subr.bf16.mxu1 %v2917_v53  ;;  %v3653_v36 = vpop.permute.xlu0 %3652  ;;  %v2919_v0 = vpack.c.bf16 %v2314_v56, %v2312_v6  ;;  %v2317_v9 = vsel %vm4189_vm7, %v5532_v16, %v5376_v28 }
 0x5fa   : > { %v3655_v4 = vunpack.i.h.bf16 %v3653_v36  ;;  %v3654_v7 = vunpack.i.l.bf16 %v3653_v36  ;;  %v2319_v41 = vsel %vm4189_vm7, %v5536_v22, %v5380_v59  ;;  %v2316_v55 = vsel %vm4179_vm3, %v5524_v19, %v5384_v15 }
 0x5fb   : > { %2920 = vmatpush1.bf16.msra.mxu1 %v2919_v0  ;;  %v2921_v17 = vpack.c.bf16 %v2319_v41, %v2317_v9  ;;  %v2318_v38 = vsel %vm4179_vm3, %v5528_v57, %v5388_v50 }
 0x5fc   : > { %v3658_v28 = vpop.permute.xlu1 %3657  ;;  %v2923_v33 = vpack.c.bf16 %v2318_v38, %v2316_v55  ;;  %v5556_v39 = vsel %vm442_vm10, %v3654_v7, %v3649_v62  ;;  %v5560_v59 = vsel %vm442_vm10, %v3655_v4, %v3650_v47  ;;  %v5564_v15 = vsel %vm442_vm10, %v3649_v62, %v3654_v7 }
 0x5fd   : > { %2922 = vmatprep.subr.bf16.mxu1 %v2921_v17  ;;  %v3668_v31 = vpop.permute.xlu0 %3667  ;;  %v5568_v50 = vsel %vm442_vm10, %v3650_v47, %v3655_v4  ;;  %v3660_v51 = vunpack.i.h.bf16 %v3658_v28  ;;  %v3659_v32 = vunpack.i.l.bf16 %v3658_v28  ;;  %v2169_v34 = vsel %vm4194_vm9, %v5416_v25, %v5556_v39 }
 0x5fe   : > { %v2171_v63 = vsel %vm4194_vm9, %v5424_v42, %v5560_v59  ;;  %v3670_v45 = vunpack.i.h.bf16 %v3668_v31  ;;  %v2168_v42 = vsel %vm4184_vm5, %v5428_v35, %v5564_v15 }
 0x5ff   : > { %2924 = vmatpush1.bf16.msra.mxu1 %v2923_v33  ;;  %v2933_v60 = vpack.c.bf16 %v2171_v63, %v2169_v34 }
 0x600   : > { %2926 = vmatprep.subr.bf16.mxu1 %v5272_v61  ;;  %v3663_v3 = vpop.permute.xlu1 %3662  ;;  %v3669_v61 = vunpack.i.l.bf16 %v3668_v31 }
 0x601   : > { %v3683_v52 = vpop.permute.xlu0 %3682  ;;  %v3665_v20 = vunpack.i.h.bf16 %v3663_v3  ;;  %v3664_v40 = vunpack.i.l.bf16 %v3663_v3 }
 0x602   : > { %v3685_v14 = vunpack.i.h.bf16 %v3683_v52  ;;  %v3684_v11 = vunpack.i.l.bf16 %v3683_v52 }
 0x603   : > { %2928 = vmatpush1.bf16.msra.mxu1 %v5274_v5  ;;  %v2170_v5 = vsel %vm4184_vm5, %v5436_v27, %v5568_v50  ;;  %v2349_v49 = vsel %vm504_vm12, %v3670_v45, %v3665_v20  ;;  %v2345_v56 = vsel %vm504_vm12, %v3665_v20, %v3670_v45  ;;  %v2344_v1 = vsel %vm504_vm12, %v3664_v40, %v3669_v61 }
 0x604   : > { %v5582_v30 = vsel %vm442_vm10, %v3684_v11, %v3659_v32  ;;  %v5586_v25 = vsel %vm442_vm10, %v3685_v14, %v3660_v51  ;;  %2930 = vmatprep.subr.bf16.mxu1 %v5278_v13  ;;  %v3673_v24 = vpop.permute.xlu1 %3672  ;;  %v2348_v13 = vsel %vm504_vm12, %v3669_v61, %v3664_v40  ;;  %v5605_v12 = vsel %vm442_vm10, %v3659_v32, %v3684_v11 }
 0x605   : > { %v5597_v46 = vpop.permute.xlu0 %3687  ;;  %v5609_v35 = vsel %vm442_vm10, %v3660_v51, %v3685_v14  ;;  %v2935_v27 = vpack.c.bf16 %v2170_v5, %v2168_v42  ;;  %v2173_v6 = vsel %vm4194_vm9, %v5456_v8, %v5582_v30  ;;  %v2175_v53 = vsel %vm4194_vm9, %v5460_v21, %v5586_v25 }
 0x606   : > { %v3675_v47 = vunpack.i.h.bf16 %v3673_v24  ;;  %v3674_v62 = vunpack.i.l.bf16 %v3673_v24  ;;  %v2172_v8 = vsel %vm4184_vm5, %v5464_v2, %v5605_v12  ;;  %v2174_v21 = vsel %vm4184_vm5, %v5468_v37, %v5609_v35 }
 0x607   : > { %2932 = vmatpush1.bf16.msra.mxu1 %v5280_v58  ;;  %v2353_v0 = vsel %vm4189_vm7, %v2348_v13, %v5500_v48  ;;  %v2355_v9 = vsel %vm4189_vm7, %v2349_v49, %v5504_v43  ;;  %v3690_v4 = vunpack.i.h.bf16 %v5597_v46  ;;  %v2937_v55 = vpack.c.bf16 %v2175_v53, %v2173_v6 }
 0x608   : > { %2934 = vmatprep.subr.bf16.mxu1 %v2933_v60  ;;  %v3678_v58 = vpop.permute.xlu1 %3677  ;;  %v3689_v2 = vunpack.i.l.bf16 %v5597_v46  ;;  %v2352_v37 = vsel %vm4179_vm3, %v2344_v1, %v5492_v54  ;;  %v2939_v43 = vpack.c.bf16 %v2174_v21, %v2172_v8  ;;  %v2941_v31 = vpack.c.bf16 %v2355_v9, %v2353_v0 }
 0x609   : > { %v3698_v36 = vpop.permute.xlu0 %3697  ;;  %v3680_v17 = vunpack.i.h.bf16 %v3678_v58  ;;  %v3679_v38 = vunpack.i.l.bf16 %v3678_v58  ;;  %v2354_v33 = vsel %vm4179_vm3, %v2345_v56, %v5496_v44 }
 0x60a   : > { %v3700_v7 = vunpack.i.h.bf16 %v3698_v36  ;;  %v3699_v41 = vunpack.i.l.bf16 %v3698_v36  ;;  %v2943_v14 = vpack.c.bf16 %v2354_v33, %v2352_v37 }
 0x60b   : > { %2936 = vmatpush1.bf16.msra.mxu1 %v2935_v27  ;;  %v2068_v11 = vsel %vm426_vm11, %v3689_v2, %v3679_v38  ;;  %v2069_v45 = vsel %vm426_vm11, %v3690_v4, %v3680_v17 }
 0x60c   : > { %v2350_v48 = vsel %vm504_vm12, %v3699_v41, %v3674_v62  ;;  %2938 = vmatprep.subr.bf16.mxu1 %v2937_v55  ;;  %v3693_v28 = vpop.permute.xlu1 %3692  ;;  %v2346_v3 = vsel %vm504_vm12, %v3674_v62, %v3699_v41  ;;  %v2351_v51 = vsel %vm504_vm12, %v3700_v7, %v3675_v47  ;;  %v2347_v44 = vsel %vm504_vm12, %v3675_v47, %v3700_v7 }
 0x60d   : > { %v3695_v32 = vunpack.i.h.bf16 %v3693_v28  ;;  %v3694_v52 = vunpack.i.l.bf16 %v3693_v28  ;;  %v3703_v54 = vpop.permute.xlu0 %3702  ;;  %v2357_v20 = vsel %vm4189_vm7, %v2350_v48, %v5532_v16  ;;  %v2359_v40 = vsel %vm4189_vm7, %v2351_v51, %v5536_v22 }
 0x60e   : > { %v3705_v34 = vunpack.i.h.bf16 %v3703_v54  ;;  %v3704_v63 = vunpack.i.l.bf16 %v3703_v54  ;;  %v2945_v5 = vpack.c.bf16 %v2359_v40, %v2357_v20  ;;  %v2356_v49 = vsel %vm4179_vm3, %v2346_v3, %v5524_v19 }
 0x60f   : > { %2940 = vmatpush1.bf16.msra.mxu1 %v2939_v43  ;;  %v2358_v53 = vsel %vm4179_vm3, %v2347_v44, %v5528_v57  ;;  %v2065_v19 = vsel %vm426_vm11, %v3680_v17, %v3690_v4  ;;  %v2064_v47 = vsel %vm426_vm11, %v3679_v38, %v3689_v2  ;;  %v2949_v0 = vpack.c.bf16 %v2069_v45, %v2068_v11 }
 0x610   : > { %v2096_v61 = vsel %vm435_vm13, %v3694_v52, %v3704_v63  ;;  %v2097_v16 = vsel %vm435_vm13, %v3695_v32, %v3705_v34  ;;  %v2100_v26 = vsel %vm435_vm13, %v3704_v63, %v3694_v52  ;;  %v2101_v22 = vsel %vm435_vm13, %v3705_v34, %v3695_v32  ;;  %2942 = vmatprep.subr.bf16.mxu1 %v2941_v31  ;;  %v3708_v24 = vpop.permute.xlu1 %3707 }
 0x611   : > { %v3718_v42 = vpop.permute.xlu0 %3717  ;;  %v2129_v46 = vsel %vm4194_vm9, %v5556_v39, %v2100_v26  ;;  %v2131_v60 = vsel %vm4194_vm9, %v5560_v59, %v2101_v22  ;;  %v3710_v13 = vunpack.i.h.bf16 %v3708_v24  ;;  %v3709_v27 = vunpack.i.l.bf16 %v3708_v24 }
 0x612   : > { %v2957_v6 = vpack.c.bf16 %v2131_v60, %v2129_v46  ;;  %v3720_v56 = vunpack.i.h.bf16 %v3718_v42  ;;  %v3719_v1 = vunpack.i.l.bf16 %v3718_v42  ;;  %v2128_v39 = vsel %vm4184_vm5, %v5564_v15, %v2096_v61 }
 0x613   : > { %2944 = vmatpush1.bf16.msra.mxu1 %v2943_v14  ;;  %v2130_v59 = vsel %vm4184_vm5, %v5568_v50, %v2097_v16  ;;  %v2947_v8 = vpack.c.bf16 %v2358_v53, %v2356_v49  ;;  %v2951_v9 = vpack.c.bf16 %v2065_v19, %v2064_v47 }
 0x614   : > { %2946 = vmatprep.subr.bf16.mxu1 %v2945_v5  ;;  %v3713_v18 = vpop.permute.xlu1 %3712  ;;  %2958 = vmatprep.subr.bf16.mxu0 %v2957_v6  ;;  %v2959_v57 = vpack.c.bf16 %v2130_v59, %v2128_v39  ;;  %v2066_v50 = vsel %vm426_vm11, %v3709_v27, %v3719_v1  ;;  %v2070_v4 = vsel %vm426_vm11, %v3719_v1, %v3709_v27 }
 0x615   : > { %v3715_v62 = vunpack.i.h.bf16 %v3713_v18  ;;  %v3714_v58 = vunpack.i.l.bf16 %v3713_v18  ;;  %v3723_v36 = vpop.permute.xlu0 %3722  ;;  %v2071_v7 = vsel %vm426_vm11, %v3720_v56, %v3710_v13  ;;  %v2067_v43 = vsel %vm426_vm11, %v3710_v13, %v3720_v56 }
 0x616   : > { %v3725_v21 = vunpack.i.h.bf16 %v3723_v36  ;;  %v3724_v15 = vunpack.i.l.bf16 %v3723_v36  ;;  %2960 = vmatpush1.bf16.msra.mxu0 %v2959_v57  ;;  %v2953_v31 = vpack.c.bf16 %v2071_v7, %v2070_v4  ;;  %v2955_v23 = vpack.c.bf16 %v2067_v43, %v2066_v50 }
 0x617   : > { %2948 = vmatpush1.bf16.msra.mxu1 %v2947_v8 }
 0x618   : > { %v2098_v41 = vsel %vm435_vm13, %v3714_v58, %v3724_v15  ;;  %v2099_v55 = vsel %vm435_vm13, %v3715_v62, %v3725_v21  ;;  %v2102_v2 = vsel %vm435_vm13, %v3724_v15, %v3714_v58  ;;  %v2103_v17 = vsel %vm435_vm13, %v3725_v21, %v3715_v62  ;;  %2950 = vmatprep.subr.bf16.mxu1 %v2949_v0 }
 0x619   : > { %v2132_v38 = vsel %vm4184_vm5, %v5605_v12, %v2098_v41  ;;  %v2134_v37 = vsel %vm4184_vm5, %v5609_v35, %v2099_v55  ;;  %v2133_v48 = vsel %vm4194_vm9, %v5582_v30, %v2102_v2  ;;  %v2135_v28 = vsel %vm4194_vm9, %v5586_v25, %v2103_v17  ;;  %v2370_v30 = vld [vmem:[%s5786_s7 + $0x10] sm:$0xff] }
 0x61a   : > { %v2961_v33 = vpack.c.bf16 %v2135_v28, %v2133_v48  ;;  %v2963_v3 = vpack.c.bf16 %v2134_v37, %v2132_v38 }
 0x61b   : > { %2952 = vmatpush1.bf16.msra.mxu1 %v2951_v9 }
 0x61c   : > { %2954 = vmatprep.subr.bf16.mxu1 %v2953_v31  ;;  %2962 = vmatprep.subr.bf16.mxu0 %v2961_v33 }
 0x61d   : > { %2964 = vmatpush1.bf16.msra.mxu0 %v2963_v3 }
 0x61f   : > { %2956 = vmatpush1.bf16.msra.mxu1 %v2955_v23 }
 0x620   : > { %2725 = vmatmul.mubr.msk.f32.vlgmr.msra.gmra.mrb[24].mxu0 %vm1135_vm15, %v2370_v30 }
 0x622   : > { %2517 = vmatmul.mubr.f32.vlgmr.msra.gmra.mrb[8].mxu1 %v2368_v10 }
 0x625   : > { %v2447_v12 = vpop.permute.xlu1 %2446 }
 0x6f3   : > { %v2589_v29 = vpop.f32.mrb[24].mxu0 }
 0x6f4   : > { %v2591_v25 = vpop.f32.mrb[25].mxu0 }
 0x6f5   : > { %v2518_v35 = vpop.f32.mrb[8].mxu1 }
 0x6f6   : > { %v2519_v51 = vadd.f32 %v2518_v35, %v2447_v12  ;;  %v2520_v32 = vpop.f32.mrb[9].mxu1 }
 0x6f7   : > { %v2521_v52 = vadd.f32 %v2520_v32, %v2447_v12 }
 0x6f8   : > { %v2590_v54 = vadd.f32 %v2589_v29, %v2519_v51 }
 0x6f9   : > { %v2592_v34 = vadd.f32 %v2591_v25, %v2521_v52 }
 0x6fa   : > { %2594 = vst [vmem:[%s377_s19] sm:$0xff] %v2590_v54 }
 0x6fb   : > { %2595 = vst [vmem:[%s377_s19 + $0x8] sm:$0xff] %v2592_v34 }
 0x6fc   : > { %3825 = shalt.err (!%p3822_p2)
}
 0x6fd   : > { %s3826_s26 = scalar_lea.hbm %s5735_s2, 256  ;;  %s3830_s14 = scalar_lea.hbm %s5788_s9, 512 }
 0x6fe   : > { %p3827_p13 = scmp.ne.s32.totalorder %s5735_s2, %s3826_s26  ;;  %p3831_p4 = scmp.lt.u32.totalorder %s5735_s2, %s5788_s9 }
 0x6ff   : > { %p3832_p7 = scmp.lt.u32.totalorder %s3830_s14, %s3826_s26  ;;  %p3834_p11 = scmp.lt.u32.totalorder %s3826_s26, %s5735_s2 }
 0x700   : > { %p3828_p6 = pnand %p3827_p13, %p5853_p0 }
 0x701   : > { %p3833_p8 = por %p3832_p7, %p3831_p4 }
 0x702   : > { %p3829_p10 = pneg %p3828_p6 }
 0x703   : > { %p3835_p1 = por %p3834_p11, %p3833_p8 }
 0x705   : > { %p3836_p3 = pnand %p3835_p1, %p3829_p10 }
 0x707   : > { %3839 = shalt.err (!%p3836_p3)
}
 0x708   : > { %3011 = dma.vmem_to_hbm [thread:$0]  (%p5853_p0), %s5737_s20, 256, %s5735_s2, %s2597_s17  }
 0x709 PF: > { %s5854_s23 = sld [smem:[#allocation13_spill]]  ;;  %s2623_s25 = sand.u32 1, %s3870_s30  }
 0x70a   : > { %p5856_p9 = scmp.ge.s32.totalorder %s3882_s12, 2  ;;  %s2624_s22 = scalar_lea.sflag [#allocation5], %s2623_s25 }
 0x70f   : > { %p5855_p5 = scmp.ne.s32.totalorder %s5854_s23, 0 }
 0x711   : > { %p3025_p12 = pnand %p5856_p9, %p5855_p5 }
 0x713   : > { %3865 = dma.done.wait (!%p3025_p12), %s2624_s22, 256  }
 0x714   : > { %3867 = vsyncadd (!%p3025_p12), %s2624_s22, 4294967040  ;;  %p23_p2 = scmp.ge.s32.totalorder %s4064_s24, 4   ;;  %s5857_s30 = smov %s3874_s10 }
 0x715   : > { %s5858_s10 = smov %s3878_s11  ;;  %s5859_s11 = smov %s4073_s27 }
 0x716   : > { %s5860_s12 = smov %s4064_s24  ;;  %25 = sbr.rel (!%p23_p2) target bundleno = 13 (0xd), region = 109 }
 0x71d   :  { %2629 = vsyncpa [#allocation4], 1 }
 0x71e   :  { %2631 = vsyncpa [#allocation4 + $0x1], 1 }
 0x71f   :  { %2632 = vsyncpa [#allocation7], 1 }
 0x720   :  { %2633 = vsyncpa [#allocation5], 1 }
 0x721   :  { %2635 = vsyncpa [#allocation5 + $0x1], 1 }

</bundles_post_ra>
